<compile_context>
chip_gen: v6e
topology: v6e:2x2x1
jax: 0.10.0
libtpu: 0.0.40
codegen_flags: <defaults>
</compile_context>

<pallas_src>
import jax
import jax.numpy as jnp
from jax.experimental import pallas as pl
from jax.experimental.pallas import tpu as pltpu


# ----------------------------------------------------------------------------
# In-kernel helper: Conv1d over a (padded) VMEM activation as K tap-matmuls
# ----------------------------------------------------------------------------
def _conv_tap_matmul(src_ref, w_ref, l_out, stride, bias=None, leaky=False):
    """src_ref: (L_pad, C_in) activation (already zero-padded for this conv).
    w_ref:   (K, C_in, C_out) weight, BN scale already folded in.
    Returns  (l_out, C_out) float32."""
    k_taps, c_in, c_out = w_ref.shape
    acc = jnp.zeros((l_out, c_out), jnp.float32)
    for k in range(k_taps):                       # static unroll (K = 6 or 16)
        if stride == 1:
            xk = src_ref[pl.ds(k, l_out), :]                     # (l_out, c_in)
        else:
            xk = src_ref[pl.ds(k, l_out, stride=stride), :]      # strided sublane read
        wk = w_ref[k]                                            # (c_in, c_out)
        if c_in == 1:
            # degenerate contraction -> plain VPU broadcast multiply
            acc = acc + xk * wk
        else:
            acc = acc + jnp.dot(xk, wk, preferred_element_type=jnp.float32)
    if bias is not None:
        acc = acc + bias
    if leaky:
        acc = jnp.where(acc > 0, acc, 0.2 * acc)
    return acc


# ----------------------------------------------------------------------------
# Fused discriminator kernel (one grid step = one batch element)
# ----------------------------------------------------------------------------
def _discriminator_kernel(x_ref, w1_ref, w2_ref, b2_ref, w3_ref, b3_ref, w4_ref,
                          o_ref, act1_ref, act2_ref, act3_ref):
    l1 = act1_ref.shape[0] - 2
    l2 = act2_ref.shape[0] - 2
    l3 = act3_ref.shape[0]
    l4 = o_ref.shape[0]

    # Zero scratch so the +/-1 padding rows of the stride-4 convs read zeros.
    act1_ref[...] = jnp.zeros(act1_ref.shape, jnp.float32)
    act2_ref[...] = jnp.zeros(act2_ref.shape, jnp.float32)

    # Layer 1: Conv1d(channels, num_df, 6, 4, 1) + LeakyReLU(0.2)
    y1 = _conv_tap_matmul(x_ref, w1_ref, l1, 4, bias=None, leaky=True)
    act1_ref[pl.ds(1, l1), :] = y1

    # Layer 2: Conv1d + BatchNorm(folded) + LeakyReLU
    y2 = _conv_tap_matmul(act1_ref, w2_ref, l2, 4, bias=b2_ref[...], leaky=True)
    act2_ref[pl.ds(1, l2), :] = y2

    # Layer 3: Conv1d + BatchNorm(folded) + LeakyReLU
    y3 = _conv_tap_matmul(act2_ref, w3_ref, l3, 4, bias=b3_ref[...], leaky=True)
    act3_ref[...] = y3

    # dis_layer: Conv1d(num_df*4, 1, 16, 1, 0) + Sigmoid
    y4 = _conv_tap_matmul(act3_ref, w4_ref, l4, 1, bias=None, leaky=False)
    o_ref[...] = 1.0 / (1.0 + jnp.exp(-y4))


# ----------------------------------------------------------------------------
# Wrapper: parameter prep (BN fold, weight layout) + pallas_call
# ----------------------------------------------------------------------------
def _fold_bn(gamma, beta, mean, var, eps=1e-5):
    scale = gamma / jnp.sqrt(var + eps)
    shift = beta - mean * scale
    return scale, shift


def _conv_out_len(l_in, k, stride, pad):
    return (l_in + 2 * pad - k) // stride + 1


def discriminator_forward(x, params):
    """x: (B, channels, L) float32 -> (B, 1, L_final) in (0, 1)."""
    B, c_in, L = x.shape
    w1, w2, w3, w4 = params["w1"], params["w2"], params["w3"], params["w4"]
    c1, c2, c3 = w1.shape[0], w2.shape[0], w3.shape[0]

    # Fold BatchNorm (inference mode) into conv weights + per-channel bias.
    # TODO(synk): training-mode BatchNorm (batch statistics) is not reproduced.
    s2, b2 = _fold_bn(params["bn2_gamma"], params["bn2_beta"],
                      params["bn2_mean"], params["bn2_var"])
    s3, b3 = _fold_bn(params["bn3_gamma"], params["bn3_beta"],
                      params["bn3_mean"], params["bn3_var"])

    # (C_out, C_in, K) -> (K, C_in, C_out), BN scale folded into C_out.
    w1t = jnp.transpose(w1, (2, 1, 0)).astype(jnp.float32)
    w2t = jnp.transpose(w2 * s2[:, None, None], (2, 1, 0)).astype(jnp.float32)
    w3t = jnp.transpose(w3 * s3[:, None, None], (2, 1, 0)).astype(jnp.float32)
    w4t = jnp.transpose(w4, (2, 1, 0)).astype(jnp.float32)
    b2v = b2.reshape(1, c2).astype(jnp.float32)
    b3v = b3.reshape(1, c3).astype(jnp.float32)

    # Input: pad L by 1 on each side (conv pad=1), put L on sublanes.
    xp = jnp.transpose(jnp.pad(x, ((0, 0), (0, 0), (1, 1))), (0, 2, 1))
    xp = xp.astype(jnp.float32)
    lp = L + 2

    l1 = _conv_out_len(L, 6, 4, 1)
    l2 = _conv_out_len(l1, 6, 4, 1)
    l3 = _conv_out_len(l2, 6, 4, 1)
    l4 = _conv_out_len(l3, 16, 1, 0)
    assert l4 >= 1, "input length too short for the final k=16 conv"

    out = pl.pallas_call(
        _discriminator_kernel,
        out_shape=jax.ShapeDtypeStruct((B, l4, 1), jnp.float32),
        grid_spec=pltpu.PrefetchScalarGridSpec(
            num_scalar_prefetch=0,
            grid=(B,),
            in_specs=[
                pl.BlockSpec((None, lp, c_in), lambda b: (b, 0, 0)),   # x (padded)
                pl.BlockSpec((6, c_in, c1), lambda b: (0, 0, 0)),      # w1
                pl.BlockSpec((6, c1, c2), lambda b: (0, 0, 0)),        # w2 (BN folded)
                pl.BlockSpec((1, c2), lambda b: (0, 0)),               # bias2
                pl.BlockSpec((6, c2, c3), lambda b: (0, 0, 0)),        # w3 (BN folded)
                pl.BlockSpec((1, c3), lambda b: (0, 0)),               # bias3
                pl.BlockSpec((16, c3, 1), lambda b: (0, 0, 0)),        # w4
            ],
            out_specs=pl.BlockSpec((None, l4, 1), lambda b: (b, 0, 0)),
            scratch_shapes=[
                pltpu.VMEM((l1 + 2, c1), jnp.float32),   # padded act1
                pltpu.VMEM((l2 + 2, c2), jnp.float32),   # padded act2
                pltpu.VMEM((l3, c3), jnp.float32),       # act3 (no pad, final conv p=0)
            ],
        ),
        compiler_params=pltpu.CompilerParams(
            dimension_semantics=("parallel",)),
    )(xp, w1t, w2t, b2v, w3t, b3v, w4t)

    return jnp.transpose(out, (0, 2, 1))                 # (B, 1, L_final)


# ----------------------------------------------------------------------------
# Parameters (PyTorch Conv1d layout, bias=False; BN running stats)
# ----------------------------------------------------------------------------
def init_params(key, num_df=16, channels=1):
    ks = jax.random.split(key, 12)
    c1, c2, c3 = num_df, num_df * 2, num_df * 4
    return {
        "w1": jax.random.normal(ks[0], (c1, channels, 6), jnp.float32) * 0.05,
        "w2": jax.random.normal(ks[1], (c2, c1, 6), jnp.float32) * 0.05,
        "w3": jax.random.normal(ks[2], (c3, c2, 6), jnp.float32) * 0.05,
        "w4": jax.random.normal(ks[3], (1, c3, 16), jnp.float32) * 0.05,
        # Non-trivial BatchNorm1d running stats so the fold is actually exercised.
        "bn2_gamma": 1.0 + 0.1 * jax.random.normal(ks[4], (c2,), jnp.float32),
        "bn2_beta": 0.1 * jax.random.normal(ks[5], (c2,), jnp.float32),
        "bn2_mean": 0.05 * jax.random.normal(ks[6], (c2,), jnp.float32),
        "bn2_var": jax.random.uniform(ks[7], (c2,), jnp.float32, 0.5, 1.5),
        "bn3_gamma": 1.0 + 0.1 * jax.random.normal(ks[8], (c3,), jnp.float32),
        "bn3_beta": 0.1 * jax.random.normal(ks[9], (c3,), jnp.float32),
        "bn3_mean": 0.05 * jax.random.normal(ks[10], (c3,), jnp.float32),
        "bn3_var": jax.random.uniform(ks[11], (c3,), jnp.float32, 0.5, 1.5),
    }


# ----------------------------------------------------------------------------
# Pure-JAX reference (for correctness check)
# ----------------------------------------------------------------------------
def _ref_conv1d(x, w, stride, pad):
    return jax.lax.conv_general_dilated(
        x, w, window_strides=(stride,), padding=[(pad, pad)],
        dimension_numbers=("NCH", "OIH", "NCH"),
        precision=jax.lax.Precision.HIGHEST)


def reference_forward(x, params):
    def bn(h, g, b, m, v, eps=1e-5):
        s = g / jnp.sqrt(v + eps)
        return h * s[None, :, None] + (b - m * s)[None, :, None]

    lrelu = lambda y: jnp.where(y > 0, y, 0.2 * y)
    h = lrelu(_ref_conv1d(x, params["w1"], 4, 1))
    h = lrelu(bn(_ref_conv1d(h, params["w2"], 4, 1),
                 params["bn2_gamma"], params["bn2_beta"],
                 params["bn2_mean"], params["bn2_var"]))
    h = lrelu(bn(_ref_conv1d(h, params["w3"], 4, 1),
                 params["bn3_gamma"], params["bn3_beta"],
                 params["bn3_mean"], params["bn3_var"]))
    return jax.nn.sigmoid(_ref_conv1d(h, params["w4"], 1, 0))


if __name__ == "__main__":
    key = jax.random.PRNGKey(0)
    pkey, xkey = jax.random.split(key)

    num_df, channels = 16, 1        # shrunk from num_df=128 for a small test
    B, L = 2, 1024                  # 1024 -> 256 -> 64 -> 16 -> (k=16 conv) -> 1

    params = init_params(pkey, num_df=num_df, channels=channels)
    x = jax.random.normal(xkey, (B, channels, L), jnp.float32)

    fwd = jax.jit(discriminator_forward)
    out = jax.block_until_ready(fwd(x, params))
    ref = jax.block_until_ready(reference_forward(x, params))

    assert out.shape == (B, 1, 1), out.shape
    assert bool(jnp.all((out > 0.0) & (out < 1.0)))
    max_err = float(jnp.max(jnp.abs(out - ref)))
    # Default (bf16-in / f32-acc) MXU precision in the kernel vs HIGHEST reference.
    assert max_err < 5e-3, f"max abs err {max_err}"
    print("KERNEL_OK")
</pallas_src>

<mosaic_0001>
module attributes {stable_mosaic.version = 11 : i64} {
  func.func @_discriminator_kernel(%arg0: i32, %arg1: memref<1x1026x1xf32, #tpu.memory_space<vmem>>, %arg2: memref<6x1x16xf32, #tpu.memory_space<vmem>>, %arg3: memref<6x16x32xf32, #tpu.memory_space<vmem>>, %arg4: memref<1x32xf32, #tpu.memory_space<vmem>>, %arg5: memref<6x32x64xf32, #tpu.memory_space<vmem>>, %arg6: memref<1x64xf32, #tpu.memory_space<vmem>>, %arg7: memref<16x64x1xf32, #tpu.memory_space<vmem>>, %arg8: memref<1x1x1xf32, #tpu.memory_space<vmem>>, %arg9: memref<258x16xf32, #tpu.memory_space<vmem>>, %arg10: memref<66x32xf32, #tpu.memory_space<vmem>>, %arg11: memref<16x64xf32, #tpu.memory_space<vmem>>) attributes {dimension_semantics = [#tpu.dimension_semantics<parallel>], iteration_bounds = array<i64: 2>, scalar_prefetch = 0 : i64, scratch_operands = 3 : i64, tpu.core_type = #tpu.core_type<tc>, window_params = [{transform_indices = @transform_0, window_bounds = array<i64: 1, 1026, 1>}, {pipeline_mode = #tpu.pipeline_mode<synchronous>, transform_indices = @transform_1, window_bounds = array<i64: 6, 1, 16>}, {pipeline_mode = #tpu.pipeline_mode<synchronous>, transform_indices = @transform_2, window_bounds = array<i64: 6, 16, 32>}, {pipeline_mode = #tpu.pipeline_mode<synchronous>, transform_indices = @transform_3, window_bounds = array<i64: 1, 32>}, {pipeline_mode = #tpu.pipeline_mode<synchronous>, transform_indices = @transform_4, window_bounds = array<i64: 6, 32, 64>}, {pipeline_mode = #tpu.pipeline_mode<synchronous>, transform_indices = @transform_5, window_bounds = array<i64: 1, 64>}, {pipeline_mode = #tpu.pipeline_mode<synchronous>, transform_indices = @transform_6, window_bounds = array<i64: 16, 64, 1>}, {transform_indices = @transform_7, window_bounds = array<i64: 1, 1, 1>}]} {
    %cst = arith.constant 0.000000e+00 : f32
    %0 = vector.broadcast %cst : f32 to vector<258x16xf32>
    %c0 = arith.constant 0 : index
    %c0_0 = arith.constant 0 : index
    %1 = vector.load %arg9[%c0, %c0_0] : memref<258x16xf32, #tpu.memory_space<vmem>>, vector<258x16xf32>
    tpu.vector_store %arg9[%c0, %c0_0], %0 {strides = array<i32>} : memref<258x16xf32, #tpu.memory_space<vmem>>, vector<258x16xf32>,
    %cst_1 = arith.constant 0.000000e+00 : f32
    %2 = vector.broadcast %cst_1 : f32 to vector<66x32xf32>
    %c0_2 = arith.constant 0 : index
    %c0_3 = arith.constant 0 : index
    %3 = vector.load %arg10[%c0_2, %c0_3] : memref<66x32xf32, #tpu.memory_space<vmem>>, vector<66x32xf32>
    tpu.vector_store %arg10[%c0_2, %c0_3], %2 {strides = array<i32>} : memref<66x32xf32, #tpu.memory_space<vmem>>, vector<66x32xf32>,
    %cst_4 = arith.constant 0.000000e+00 : f32
    %4 = vector.broadcast %cst_4 : f32 to vector<256x16xf32>
    %c0_5 = arith.constant 0 : index
    %c0_6 = arith.constant 0 : index
    %c0_7 = arith.constant 0 : index
    %5 = tpu.strided_load %arg1[%c0_5, %c0_6, %c0_7] {strides = array<i32: 1, 4, 1>} : memref<1x1026x1xf32, #tpu.memory_space<vmem>>, vector<1x256x1xf32>
    %6 = vector.shape_cast %5 : vector<1x256x1xf32> to vector<256x1xf32>
    %c0_8 = arith.constant 0 : index
    %c0_9 = arith.constant 0 : index
    %c0_10 = arith.constant 0 : index
    %7 = vector.load %arg2[%c0_8, %c0_9, %c0_10] : memref<6x1x16xf32, #tpu.memory_space<vmem>>, vector<1x1x16xf32>
    %8 = vector.shape_cast %7 : vector<1x1x16xf32> to vector<1x16xf32>
    %9 = vector.broadcast %6 : vector<256x1xf32> to vector<256x16xf32>
    %10 = vector.broadcast %8 : vector<1x16xf32> to vector<256x16xf32>
    %11 = arith.mulf %9, %10 : vector<256x16xf32>
    %12 = arith.addf %4, %11 : vector<256x16xf32>
    %c0_11 = arith.constant 0 : index
    %c1 = arith.constant 1 : index
    %c0_12 = arith.constant 0 : index
    %13 = tpu.strided_load %arg1[%c0_11, %c1, %c0_12] {strides = array<i32: 1, 4, 1>} : memref<1x1026x1xf32, #tpu.memory_space<vmem>>, vector<1x256x1xf32>
    %14 = vector.shape_cast %13 : vector<1x256x1xf32> to vector<256x1xf32>
    %c1_13 = arith.constant 1 : index
    %c0_14 = arith.constant 0 : index
    %c0_15 = arith.constant 0 : index
    %15 = vector.load %arg2[%c1_13, %c0_14, %c0_15] : memref<6x1x16xf32, #tpu.memory_space<vmem>>, vector<1x1x16xf32>
    %16 = vector.shape_cast %15 : vector<1x1x16xf32> to vector<1x16xf32>
    %17 = vector.broadcast %14 : vector<256x1xf32> to vector<256x16xf32>
    %18 = vector.broadcast %16 : vector<1x16xf32> to vector<256x16xf32>
    %19 = arith.mulf %17, %18 : vector<256x16xf32>
    %20 = arith.addf %12, %19 : vector<256x16xf32>
    %c0_16 = arith.constant 0 : index
    %c2 = arith.constant 2 : index
    %c0_17 = arith.constant 0 : index
    %21 = tpu.strided_load %arg1[%c0_16, %c2, %c0_17] {strides = array<i32: 1, 4, 1>} : memref<1x1026x1xf32, #tpu.memory_space<vmem>>, vector<1x256x1xf32>
    %22 = vector.shape_cast %21 : vector<1x256x1xf32> to vector<256x1xf32>
    %c2_18 = arith.constant 2 : index
    %c0_19 = arith.constant 0 : index
    %c0_20 = arith.constant 0 : index
    %23 = vector.load %arg2[%c2_18, %c0_19, %c0_20] : memref<6x1x16xf32, #tpu.memory_space<vmem>>, vector<1x1x16xf32>
    %24 = vector.shape_cast %23 : vector<1x1x16xf32> to vector<1x16xf32>
    %25 = vector.broadcast %22 : vector<256x1xf32> to vector<256x16xf32>
    %26 = vector.broadcast %24 : vector<1x16xf32> to vector<256x16xf32>
    %27 = arith.mulf %25, %26 : vector<256x16xf32>
    %28 = arith.addf %20, %27 : vector<256x16xf32>
    %c0_21 = arith.constant 0 : index
    %c3 = arith.constant 3 : index
    %c0_22 = arith.constant 0 : index
    %29 = tpu.strided_load %arg1[%c0_21, %c3, %c0_22] {strides = array<i32: 1, 4, 1>} : memref<1x1026x1xf32, #tpu.memory_space<vmem>>, vector<1x256x1xf32>
    %30 = vector.shape_cast %29 : vector<1x256x1xf32> to vector<256x1xf32>
    %c3_23 = arith.constant 3 : index
    %c0_24 = arith.constant 0 : index
    %c0_25 = arith.constant 0 : index
    %31 = vector.load %arg2[%c3_23, %c0_24, %c0_25] : memref<6x1x16xf32, #tpu.memory_space<vmem>>, vector<1x1x16xf32>
    %32 = vector.shape_cast %31 : vector<1x1x16xf32> to vector<1x16xf32>
    %33 = vector.broadcast %30 : vector<256x1xf32> to vector<256x16xf32>
    %34 = vector.broadcast %32 : vector<1x16xf32> to vector<256x16xf32>
    %35 = arith.mulf %33, %34 : vector<256x16xf32>
    %36 = arith.addf %28, %35 : vector<256x16xf32>
    %c0_26 = arith.constant 0 : index
    %c4 = arith.constant 4 : index
    %c0_27 = arith.constant 0 : index
    %37 = tpu.strided_load %arg1[%c0_26, %c4, %c0_27] {strides = array<i32: 1, 4, 1>} : memref<1x1026x1xf32, #tpu.memory_space<vmem>>, vector<1x256x1xf32>
    %38 = vector.shape_cast %37 : vector<1x256x1xf32> to vector<256x1xf32>
    %c4_28 = arith.constant 4 : index
    %c0_29 = arith.constant 0 : index
    %c0_30 = arith.constant 0 : index
    %39 = vector.load %arg2[%c4_28, %c0_29, %c0_30] : memref<6x1x16xf32, #tpu.memory_space<vmem>>, vector<1x1x16xf32>
    %40 = vector.shape_cast %39 : vector<1x1x16xf32> to vector<1x16xf32>
    %41 = vector.broadcast %38 : vector<256x1xf32> to vector<256x16xf32>
    %42 = vector.broadcast %40 : vector<1x16xf32> to vector<256x16xf32>
    %43 = arith.mulf %41, %42 : vector<256x16xf32>
    %44 = arith.addf %36, %43 : vector<256x16xf32>
    %c0_31 = arith.constant 0 : index
    %c5 = arith.constant 5 : index
    %c0_32 = arith.constant 0 : index
    %45 = tpu.strided_load %arg1[%c0_31, %c5, %c0_32] {strides = array<i32: 1, 4, 1>} : memref<1x1026x1xf32, #tpu.memory_space<vmem>>, vector<1x256x1xf32>
    %46 = vector.shape_cast %45 : vector<1x256x1xf32> to vector<256x1xf32>
    %c5_33 = arith.constant 5 : index
    %c0_34 = arith.constant 0 : index
    %c0_35 = arith.constant 0 : index
    %47 = vector.load %arg2[%c5_33, %c0_34, %c0_35] : memref<6x1x16xf32, #tpu.memory_space<vmem>>, vector<1x1x16xf32>
    %48 = vector.shape_cast %47 : vector<1x1x16xf32> to vector<1x16xf32>
    %49 = vector.broadcast %46 : vector<256x1xf32> to vector<256x16xf32>
    %50 = vector.broadcast %48 : vector<1x16xf32> to vector<256x16xf32>
    %51 = arith.mulf %49, %50 : vector<256x16xf32>
    %52 = arith.addf %44, %51 : vector<256x16xf32>
    %cst_36 = arith.constant 0.000000e+00 : f32
    %53 = vector.broadcast %cst_36 : f32 to vector<256x16xf32>
    %54 = arith.cmpf ogt, %52, %53 : vector<256x16xf32>
    %cst_37 = arith.constant 2.000000e-01 : f32
    %55 = vector.broadcast %cst_37 : f32 to vector<256x16xf32>
    %56 = arith.mulf %55, %52 : vector<256x16xf32>
    %57 = arith.select %54, %52, %56 : vector<256x16xi1>, vector<256x16xf32>
    %c1_38 = arith.constant 1 : index
    %c0_39 = arith.constant 0 : index
    %58 = vector.load %arg9[%c1_38, %c0_39] : memref<258x16xf32, #tpu.memory_space<vmem>>, vector<256x16xf32>
    tpu.vector_store %arg9[%c1_38, %c0_39], %57 {strides = array<i32>} : memref<258x16xf32, #tpu.memory_space<vmem>>, vector<256x16xf32>,
    %c0_40 = arith.constant 0 : index
    %c0_41 = arith.constant 0 : index
    %59 = vector.load %arg4[%c0_40, %c0_41] : memref<1x32xf32, #tpu.memory_space<vmem>>, vector<1x32xf32>
    %cst_42 = arith.constant 0.000000e+00 : f32
    %60 = vector.broadcast %cst_42 : f32 to vector<64x32xf32>
    %c0_43 = arith.constant 0 : index
    %c0_44 = arith.constant 0 : index
    %61 = tpu.strided_load %arg9[%c0_43, %c0_44] {strides = array<i32: 4, 1>} : memref<258x16xf32, #tpu.memory_space<vmem>>, vector<64x16xf32>
    %c0_45 = arith.constant 0 : index
    %c0_46 = arith.constant 0 : index
    %c0_47 = arith.constant 0 : index
    %62 = vector.load %arg3[%c0_45, %c0_46, %c0_47] : memref<6x16x32xf32, #tpu.memory_space<vmem>>, vector<1x16x32xf32>
    %63 = vector.shape_cast %62 : vector<1x16x32xf32> to vector<16x32xf32>
    %cst_48 = arith.constant dense<0.000000e+00> : vector<64x32xf32>
    %64 = tpu.matmul %61, %63, %cst_48 {dimension_numbers = #tpu.dot_dimension_numbers<[1], [0], [0], [1], [0, 0, 1, 1], [], []>} : vector<64x16xf32>, vector<16x32xf32>, vector<64x32xf32> -> vector<64x32xf32>
    %65 = arith.addf %60, %64 : vector<64x32xf32>
    %c1_49 = arith.constant 1 : index
    %c0_50 = arith.constant 0 : index
    %66 = tpu.strided_load %arg9[%c1_49, %c0_50] {strides = array<i32: 4, 1>} : memref<258x16xf32, #tpu.memory_space<vmem>>, vector<64x16xf32>
    %c1_51 = arith.constant 1 : index
    %c0_52 = arith.constant 0 : index
    %c0_53 = arith.constant 0 : index
    %67 = vector.load %arg3[%c1_51, %c0_52, %c0_53] : memref<6x16x32xf32, #tpu.memory_space<vmem>>, vector<1x16x32xf32>
    %68 = vector.shape_cast %67 : vector<1x16x32xf32> to vector<16x32xf32>
    %cst_54 = arith.constant dense<0.000000e+00> : vector<64x32xf32>
    %69 = tpu.matmul %66, %68, %cst_54 {dimension_numbers = #tpu.dot_dimension_numbers<[1], [0], [0], [1], [0, 0, 1, 1], [], []>} : vector<64x16xf32>, vector<16x32xf32>, vector<64x32xf32> -> vector<64x32xf32>
    %70 = arith.addf %65, %69 : vector<64x32xf32>
    %c2_55 = arith.constant 2 : index
    %c0_56 = arith.constant 0 : index
    %71 = tpu.strided_load %arg9[%c2_55, %c0_56] {strides = array<i32: 4, 1>} : memref<258x16xf32, #tpu.memory_space<vmem>>, vector<64x16xf32>
    %c2_57 = arith.constant 2 : index
    %c0_58 = arith.constant 0 : index
    %c0_59 = arith.constant 0 : index
    %72 = vector.load %arg3[%c2_57, %c0_58, %c0_59] : memref<6x16x32xf32, #tpu.memory_space<vmem>>, vector<1x16x32xf32>
    %73 = vector.shape_cast %72 : vector<1x16x32xf32> to vector<16x32xf32>
    %cst_60 = arith.constant dense<0.000000e+00> : vector<64x32xf32>
    %74 = tpu.matmul %71, %73, %cst_60 {dimension_numbers = #tpu.dot_dimension_numbers<[1], [0], [0], [1], [0, 0, 1, 1], [], []>} : vector<64x16xf32>, vector<16x32xf32>, vector<64x32xf32> -> vector<64x32xf32>
    %75 = arith.addf %70, %74 : vector<64x32xf32>
    %c3_61 = arith.constant 3 : index
    %c0_62 = arith.constant 0 : index
    %76 = tpu.strided_load %arg9[%c3_61, %c0_62] {strides = array<i32: 4, 1>} : memref<258x16xf32, #tpu.memory_space<vmem>>, vector<64x16xf32>
    %c3_63 = arith.constant 3 : index
    %c0_64 = arith.constant 0 : index
    %c0_65 = arith.constant 0 : index
    %77 = vector.load %arg3[%c3_63, %c0_64, %c0_65] : memref<6x16x32xf32, #tpu.memory_space<vmem>>, vector<1x16x32xf32>
    %78 = vector.shape_cast %77 : vector<1x16x32xf32> to vector<16x32xf32>
    %cst_66 = arith.constant dense<0.000000e+00> : vector<64x32xf32>
    %79 = tpu.matmul %76, %78, %cst_66 {dimension_numbers = #tpu.dot_dimension_numbers<[1], [0], [0], [1], [0, 0, 1, 1], [], []>} : vector<64x16xf32>, vector<16x32xf32>, vector<64x32xf32> -> vector<64x32xf32>
    %80 = arith.addf %75, %79 : vector<64x32xf32>
    %c4_67 = arith.constant 4 : index
    %c0_68 = arith.constant 0 : index
    %81 = tpu.strided_load %arg9[%c4_67, %c0_68] {strides = array<i32: 4, 1>} : memref<258x16xf32, #tpu.memory_space<vmem>>, vector<64x16xf32>
    %c4_69 = arith.constant 4 : index
    %c0_70 = arith.constant 0 : index
    %c0_71 = arith.constant 0 : index
    %82 = vector.load %arg3[%c4_69, %c0_70, %c0_71] : memref<6x16x32xf32, #tpu.memory_space<vmem>>, vector<1x16x32xf32>
    %83 = vector.shape_cast %82 : vector<1x16x32xf32> to vector<16x32xf32>
    %cst_72 = arith.constant dense<0.000000e+00> : vector<64x32xf32>
    %84 = tpu.matmul %81, %83, %cst_72 {dimension_numbers = #tpu.dot_dimension_numbers<[1], [0], [0], [1], [0, 0, 1, 1], [], []>} : vector<64x16xf32>, vector<16x32xf32>, vector<64x32xf32> -> vector<64x32xf32>
    %85 = arith.addf %80, %84 : vector<64x32xf32>
    %c5_73 = arith.constant 5 : index
    %c0_74 = arith.constant 0 : index
    %86 = tpu.strided_load %arg9[%c5_73, %c0_74] {strides = array<i32: 4, 1>} : memref<258x16xf32, #tpu.memory_space<vmem>>, vector<64x16xf32>
    %c5_75 = arith.constant 5 : index
    %c0_76 = arith.constant 0 : index
    %c0_77 = arith.constant 0 : index
    %87 = vector.load %arg3[%c5_75, %c0_76, %c0_77] : memref<6x16x32xf32, #tpu.memory_space<vmem>>, vector<1x16x32xf32>
    %88 = vector.shape_cast %87 : vector<1x16x32xf32> to vector<16x32xf32>
    %cst_78 = arith.constant dense<0.000000e+00> : vector<64x32xf32>
    %89 = tpu.matmul %86, %88, %cst_78 {dimension_numbers = #tpu.dot_dimension_numbers<[1], [0], [0], [1], [0, 0, 1, 1], [], []>} : vector<64x16xf32>, vector<16x32xf32>, vector<64x32xf32> -> vector<64x32xf32>
    %90 = arith.addf %85, %89 : vector<64x32xf32>
    %91 = vector.broadcast %59 : vector<1x32xf32> to vector<64x32xf32>
    %92 = arith.addf %90, %91 : vector<64x32xf32>
    %cst_79 = arith.constant 0.000000e+00 : f32
    %93 = vector.broadcast %cst_79 : f32 to vector<64x32xf32>
    %94 = arith.cmpf ogt, %92, %93 : vector<64x32xf32>
    %cst_80 = arith.constant 2.000000e-01 : f32
    %95 = vector.broadcast %cst_80 : f32 to vector<64x32xf32>
    %96 = arith.mulf %95, %92 : vector<64x32xf32>
    %97 = arith.select %94, %92, %96 : vector<64x32xi1>, vector<64x32xf32>
    %c1_81 = arith.constant 1 : index
    %c0_82 = arith.constant 0 : index
    %98 = vector.load %arg10[%c1_81, %c0_82] : memref<66x32xf32, #tpu.memory_space<vmem>>, vector<64x32xf32>
    tpu.vector_store %arg10[%c1_81, %c0_82], %97 {strides = array<i32>} : memref<66x32xf32, #tpu.memory_space<vmem>>, vector<64x32xf32>,
    %c0_83 = arith.constant 0 : index
    %c0_84 = arith.constant 0 : index
    %99 = vector.load %arg6[%c0_83, %c0_84] : memref<1x64xf32, #tpu.memory_space<vmem>>, vector<1x64xf32>
    %cst_85 = arith.constant 0.000000e+00 : f32
    %100 = vector.broadcast %cst_85 : f32 to vector<16x64xf32>
    %c0_86 = arith.constant 0 : index
    %c0_87 = arith.constant 0 : index
    %101 = tpu.strided_load %arg10[%c0_86, %c0_87] {strides = array<i32: 4, 1>} : memref<66x32xf32, #tpu.memory_space<vmem>>, vector<16x32xf32>
    %c0_88 = arith.constant 0 : index
    %c0_89 = arith.constant 0 : index
    %c0_90 = arith.constant 0 : index
    %102 = vector.load %arg5[%c0_88, %c0_89, %c0_90] : memref<6x32x64xf32, #tpu.memory_space<vmem>>, vector<1x32x64xf32>
    %103 = vector.shape_cast %102 : vector<1x32x64xf32> to vector<32x64xf32>
    %cst_91 = arith.constant dense<0.000000e+00> : vector<16x64xf32>
    %104 = tpu.matmul %101, %103, %cst_91 {dimension_numbers = #tpu.dot_dimension_numbers<[1], [0], [0], [1], [0, 0, 1, 1], [], []>} : vector<16x32xf32>, vector<32x64xf32>, vector<16x64xf32> -> vector<16x64xf32>
    %105 = arith.addf %100, %104 : vector<16x64xf32>
    %c1_92 = arith.constant 1 : index
    %c0_93 = arith.constant 0 : index
    %106 = tpu.strided_load %arg10[%c1_92, %c0_93] {strides = array<i32: 4, 1>} : memref<66x32xf32, #tpu.memory_space<vmem>>, vector<16x32xf32>
    %c1_94 = arith.constant 1 : index
    %c0_95 = arith.constant 0 : index
    %c0_96 = arith.constant 0 : index
    %107 = vector.load %arg5[%c1_94, %c0_95, %c0_96] : memref<6x32x64xf32, #tpu.memory_space<vmem>>, vector<1x32x64xf32>
    %108 = vector.shape_cast %107 : vector<1x32x64xf32> to vector<32x64xf32>
    %cst_97 = arith.constant dense<0.000000e+00> : vector<16x64xf32>
    %109 = tpu.matmul %106, %108, %cst_97 {dimension_numbers = #tpu.dot_dimension_numbers<[1], [0], [0], [1], [0, 0, 1, 1], [], []>} : vector<16x32xf32>, vector<32x64xf32>, vector<16x64xf32> -> vector<16x64xf32>
    %110 = arith.addf %105, %109 : vector<16x64xf32>
    %c2_98 = arith.constant 2 : index
    %c0_99 = arith.constant 0 : index
    %111 = tpu.strided_load %arg10[%c2_98, %c0_99] {strides = array<i32: 4, 1>} : memref<66x32xf32, #tpu.memory_space<vmem>>, vector<16x32xf32>
    %c2_100 = arith.constant 2 : index
    %c0_101 = arith.constant 0 : index
    %c0_102 = arith.constant 0 : index
    %112 = vector.load %arg5[%c2_100, %c0_101, %c0_102] : memref<6x32x64xf32, #tpu.memory_space<vmem>>, vector<1x32x64xf32>
    %113 = vector.shape_cast %112 : vector<1x32x64xf32> to vector<32x64xf32>
    %cst_103 = arith.constant dense<0.000000e+00> : vector<16x64xf32>
    %114 = tpu.matmul %111, %113, %cst_103 {dimension_numbers = #tpu.dot_dimension_numbers<[1], [0], [0], [1], [0, 0, 1, 1], [], []>} : vector<16x32xf32>, vector<32x64xf32>, vector<16x64xf32> -> vector<16x64xf32>
    %115 = arith.addf %110, %114 : vector<16x64xf32>
    %c3_104 = arith.constant 3 : index
    %c0_105 = arith.constant 0 : index
    %116 = tpu.strided_load %arg10[%c3_104, %c0_105] {strides = array<i32: 4, 1>} : memref<66x32xf32, #tpu.memory_space<vmem>>, vector<16x32xf32>
    %c3_106 = arith.constant 3 : index
    %c0_107 = arith.constant 0 : index
    %c0_108 = arith.constant 0 : index
    %117 = vector.load %arg5[%c3_106, %c0_107, %c0_108] : memref<6x32x64xf32, #tpu.memory_space<vmem>>, vector<1x32x64xf32>
    %118 = vector.shape_cast %117 : vector<1x32x64xf32> to vector<32x64xf32>
    %cst_109 = arith.constant dense<0.000000e+00> : vector<16x64xf32>
    %119 = tpu.matmul %116, %118, %cst_109 {dimension_numbers = #tpu.dot_dimension_numbers<[1], [0], [0], [1], [0, 0, 1, 1], [], []>} : vector<16x32xf32>, vector<32x64xf32>, vector<16x64xf32> -> vector<16x64xf32>
    %120 = arith.addf %115, %119 : vector<16x64xf32>
    %c4_110 = arith.constant 4 : index
    %c0_111 = arith.constant 0 : index
    %121 = tpu.strided_load %arg10[%c4_110, %c0_111] {strides = array<i32: 4, 1>} : memref<66x32xf32, #tpu.memory_space<vmem>>, vector<16x32xf32>
    %c4_112 = arith.constant 4 : index
    %c0_113 = arith.constant 0 : index
    %c0_114 = arith.constant 0 : index
    %122 = vector.load %arg5[%c4_112, %c0_113, %c0_114] : memref<6x32x64xf32, #tpu.memory_space<vmem>>, vector<1x32x64xf32>
    %123 = vector.shape_cast %122 : vector<1x32x64xf32> to vector<32x64xf32>
    %cst_115 = arith.constant dense<0.000000e+00> : vector<16x64xf32>
    %124 = tpu.matmul %121, %123, %cst_115 {dimension_numbers = #tpu.dot_dimension_numbers<[1], [0], [0], [1], [0, 0, 1, 1], [], []>} : vector<16x32xf32>, vector<32x64xf32>, vector<16x64xf32> -> vector<16x64xf32>
    %125 = arith.addf %120, %124 : vector<16x64xf32>
    %c5_116 = arith.constant 5 : index
    %c0_117 = arith.constant 0 : index
    %126 = tpu.strided_load %arg10[%c5_116, %c0_117] {strides = array<i32: 4, 1>} : memref<66x32xf32, #tpu.memory_space<vmem>>, vector<16x32xf32>
    %c5_118 = arith.constant 5 : index
    %c0_119 = arith.constant 0 : index
    %c0_120 = arith.constant 0 : index
    %127 = vector.load %arg5[%c5_118, %c0_119, %c0_120] : memref<6x32x64xf32, #tpu.memory_space<vmem>>, vector<1x32x64xf32>
    %128 = vector.shape_cast %127 : vector<1x32x64xf32> to vector<32x64xf32>
    %cst_121 = arith.constant dense<0.000000e+00> : vector<16x64xf32>
    %129 = tpu.matmul %126, %128, %cst_121 {dimension_numbers = #tpu.dot_dimension_numbers<[1], [0], [0], [1], [0, 0, 1, 1], [], []>} : vector<16x32xf32>, vector<32x64xf32>, vector<16x64xf32> -> vector<16x64xf32>
    %130 = arith.addf %125, %129 : vector<16x64xf32>
    %131 = vector.broadcast %99 : vector<1x64xf32> to vector<16x64xf32>
    %132 = arith.addf %130, %131 : vector<16x64xf32>
    %cst_122 = arith.constant 0.000000e+00 : f32
    %133 = vector.broadcast %cst_122 : f32 to vector<16x64xf32>
    %134 = arith.cmpf ogt, %132, %133 : vector<16x64xf32>
    %cst_123 = arith.constant 2.000000e-01 : f32
    %135 = vector.broadcast %cst_123 : f32 to vector<16x64xf32>
    %136 = arith.mulf %135, %132 : vector<16x64xf32>
    %137 = arith.select %134, %132, %136 : vector<16x64xi1>, vector<16x64xf32>
    %c0_124 = arith.constant 0 : index
    %c0_125 = arith.constant 0 : index
    %138 = vector.load %arg11[%c0_124, %c0_125] : memref<16x64xf32, #tpu.memory_space<vmem>>, vector<16x64xf32>
    tpu.vector_store %arg11[%c0_124, %c0_125], %137 {strides = array<i32>} : memref<16x64xf32, #tpu.memory_space<vmem>>, vector<16x64xf32>,
    %cst_126 = arith.constant 0.000000e+00 : f32
    %139 = vector.broadcast %cst_126 : f32 to vector<1x1xf32>
    %c0_127 = arith.constant 0 : index
    %c0_128 = arith.constant 0 : index
    %140 = vector.load %arg11[%c0_127, %c0_128] : memref<16x64xf32, #tpu.memory_space<vmem>>, vector<1x64xf32>
    %c0_129 = arith.constant 0 : index
    %c0_130 = arith.constant 0 : index
    %c0_131 = arith.constant 0 : index
    %141 = vector.load %arg7[%c0_129, %c0_130, %c0_131] : memref<16x64x1xf32, #tpu.memory_space<vmem>>, vector<1x64x1xf32>
    %142 = vector.shape_cast %141 : vector<1x64x1xf32> to vector<64x1xf32>
    %cst_132 = arith.constant dense<0.000000e+00> : vector<1x1xf32>
    %143 = tpu.matmul %140, %142, %cst_132 {dimension_numbers = #tpu.dot_dimension_numbers<[1], [0], [0], [1], [0, 0, 1, 1], [], []>} : vector<1x64xf32>, vector<64x1xf32>, vector<1x1xf32> -> vector<1x1xf32>
    %144 = arith.addf %139, %143 : vector<1x1xf32>
    %c1_133 = arith.constant 1 : index
    %c0_134 = arith.constant 0 : index
    %145 = vector.load %arg11[%c1_133, %c0_134] : memref<16x64xf32, #tpu.memory_space<vmem>>, vector<1x64xf32>
    %c1_135 = arith.constant 1 : index
    %c0_136 = arith.constant 0 : index
    %c0_137 = arith.constant 0 : index
    %146 = vector.load %arg7[%c1_135, %c0_136, %c0_137] : memref<16x64x1xf32, #tpu.memory_space<vmem>>, vector<1x64x1xf32>
    %147 = vector.shape_cast %146 : vector<1x64x1xf32> to vector<64x1xf32>
    %cst_138 = arith.constant dense<0.000000e+00> : vector<1x1xf32>
    %148 = tpu.matmul %145, %147, %cst_138 {dimension_numbers = #tpu.dot_dimension_numbers<[1], [0], [0], [1], [0, 0, 1, 1], [], []>} : vector<1x64xf32>, vector<64x1xf32>, vector<1x1xf32> -> vector<1x1xf32>
    %149 = arith.addf %144, %148 : vector<1x1xf32>
    %c2_139 = arith.constant 2 : index
    %c0_140 = arith.constant 0 : index
    %150 = vector.load %arg11[%c2_139, %c0_140] : memref<16x64xf32, #tpu.memory_space<vmem>>, vector<1x64xf32>
    %c2_141 = arith.constant 2 : index
    %c0_142 = arith.constant 0 : index
    %c0_143 = arith.constant 0 : index
    %151 = vector.load %arg7[%c2_141, %c0_142, %c0_143] : memref<16x64x1xf32, #tpu.memory_space<vmem>>, vector<1x64x1xf32>
    %152 = vector.shape_cast %151 : vector<1x64x1xf32> to vector<64x1xf32>
    %cst_144 = arith.constant dense<0.000000e+00> : vector<1x1xf32>
    %153 = tpu.matmul %150, %152, %cst_144 {dimension_numbers = #tpu.dot_dimension_numbers<[1], [0], [0], [1], [0, 0, 1, 1], [], []>} : vector<1x64xf32>, vector<64x1xf32>, vector<1x1xf32> -> vector<1x1xf32>
    %154 = arith.addf %149, %153 : vector<1x1xf32>
    %c3_145 = arith.constant 3 : index
    %c0_146 = arith.constant 0 : index
    %155 = vector.load %arg11[%c3_145, %c0_146] : memref<16x64xf32, #tpu.memory_space<vmem>>, vector<1x64xf32>
    %c3_147 = arith.constant 3 : index
    %c0_148 = arith.constant 0 : index
    %c0_149 = arith.constant 0 : index
    %156 = vector.load %arg7[%c3_147, %c0_148, %c0_149] : memref<16x64x1xf32, #tpu.memory_space<vmem>>, vector<1x64x1xf32>
    %157 = vector.shape_cast %156 : vector<1x64x1xf32> to vector<64x1xf32>
    %cst_150 = arith.constant dense<0.000000e+00> : vector<1x1xf32>
    %158 = tpu.matmul %155, %157, %cst_150 {dimension_numbers = #tpu.dot_dimension_numbers<[1], [0], [0], [1], [0, 0, 1, 1], [], []>} : vector<1x64xf32>, vector<64x1xf32>, vector<1x1xf32> -> vector<1x1xf32>
    %159 = arith.addf %154, %158 : vector<1x1xf32>
    %c4_151 = arith.constant 4 : index
    %c0_152 = arith.constant 0 : index
    %160 = vector.load %arg11[%c4_151, %c0_152] : memref<16x64xf32, #tpu.memory_space<vmem>>, vector<1x64xf32>
    %c4_153 = arith.constant 4 : index
    %c0_154 = arith.constant 0 : index
    %c0_155 = arith.constant 0 : index
    %161 = vector.load %arg7[%c4_153, %c0_154, %c0_155] : memref<16x64x1xf32, #tpu.memory_space<vmem>>, vector<1x64x1xf32>
    %162 = vector.shape_cast %161 : vector<1x64x1xf32> to vector<64x1xf32>
    %cst_156 = arith.constant dense<0.000000e+00> : vector<1x1xf32>
    %163 = tpu.matmul %160, %162, %cst_156 {dimension_numbers = #tpu.dot_dimension_numbers<[1], [0], [0], [1], [0, 0, 1, 1], [], []>} : vector<1x64xf32>, vector<64x1xf32>, vector<1x1xf32> -> vector<1x1xf32>
    %164 = arith.addf %159, %163 : vector<1x1xf32>
    %c5_157 = arith.constant 5 : index
    %c0_158 = arith.constant 0 : index
    %165 = vector.load %arg11[%c5_157, %c0_158] : memref<16x64xf32, #tpu.memory_space<vmem>>, vector<1x64xf32>
    %c5_159 = arith.constant 5 : index
    %c0_160 = arith.constant 0 : index
    %c0_161 = arith.constant 0 : index
    %166 = vector.load %arg7[%c5_159, %c0_160, %c0_161] : memref<16x64x1xf32, #tpu.memory_space<vmem>>, vector<1x64x1xf32>
    %167 = vector.shape_cast %166 : vector<1x64x1xf32> to vector<64x1xf32>
    %cst_162 = arith.constant dense<0.000000e+00> : vector<1x1xf32>
    %168 = tpu.matmul %165, %167, %cst_162 {dimension_numbers = #tpu.dot_dimension_numbers<[1], [0], [0], [1], [0, 0, 1, 1], [], []>} : vector<1x64xf32>, vector<64x1xf32>, vector<1x1xf32> -> vector<1x1xf32>
    %169 = arith.addf %164, %168 : vector<1x1xf32>
    %c6 = arith.constant 6 : index
    %c0_163 = arith.constant 0 : index
    %170 = vector.load %arg11[%c6, %c0_163] : memref<16x64xf32, #tpu.memory_space<vmem>>, vector<1x64xf32>
    %c6_164 = arith.constant 6 : index
    %c0_165 = arith.constant 0 : index
    %c0_166 = arith.constant 0 : index
    %171 = vector.load %arg7[%c6_164, %c0_165, %c0_166] : memref<16x64x1xf32, #tpu.memory_space<vmem>>, vector<1x64x1xf32>
    %172 = vector.shape_cast %171 : vector<1x64x1xf32> to vector<64x1xf32>
    %cst_167 = arith.constant dense<0.000000e+00> : vector<1x1xf32>
    %173 = tpu.matmul %170, %172, %cst_167 {dimension_numbers = #tpu.dot_dimension_numbers<[1], [0], [0], [1], [0, 0, 1, 1], [], []>} : vector<1x64xf32>, vector<64x1xf32>, vector<1x1xf32> -> vector<1x1xf32>
    %174 = arith.addf %169, %173 : vector<1x1xf32>
    %c7 = arith.constant 7 : index
    %c0_168 = arith.constant 0 : index
    %175 = vector.load %arg11[%c7, %c0_168] : memref<16x64xf32, #tpu.memory_space<vmem>>, vector<1x64xf32>
    %c7_169 = arith.constant 7 : index
    %c0_170 = arith.constant 0 : index
    %c0_171 = arith.constant 0 : index
    %176 = vector.load %arg7[%c7_169, %c0_170, %c0_171] : memref<16x64x1xf32, #tpu.memory_space<vmem>>, vector<1x64x1xf32>
    %177 = vector.shape_cast %176 : vector<1x64x1xf32> to vector<64x1xf32>
    %cst_172 = arith.constant dense<0.000000e+00> : vector<1x1xf32>
    %178 = tpu.matmul %175, %177, %cst_172 {dimension_numbers = #tpu.dot_dimension_numbers<[1], [0], [0], [1], [0, 0, 1, 1], [], []>} : vector<1x64xf32>, vector<64x1xf32>, vector<1x1xf32> -> vector<1x1xf32>
    %179 = arith.addf %174, %178 : vector<1x1xf32>
    %c8 = arith.constant 8 : index
    %c0_173 = arith.constant 0 : index
    %180 = vector.load %arg11[%c8, %c0_173] : memref<16x64xf32, #tpu.memory_space<vmem>>, vector<1x64xf32>
    %c8_174 = arith.constant 8 : index
    %c0_175 = arith.constant 0 : index
    %c0_176 = arith.constant 0 : index
    %181 = vector.load %arg7[%c8_174, %c0_175, %c0_176] : memref<16x64x1xf32, #tpu.memory_space<vmem>>, vector<1x64x1xf32>
    %182 = vector.shape_cast %181 : vector<1x64x1xf32> to vector<64x1xf32>
    %cst_177 = arith.constant dense<0.000000e+00> : vector<1x1xf32>
    %183 = tpu.matmul %180, %182, %cst_177 {dimension_numbers = #tpu.dot_dimension_numbers<[1], [0], [0], [1], [0, 0, 1, 1], [], []>} : vector<1x64xf32>, vector<64x1xf32>, vector<1x1xf32> -> vector<1x1xf32>
    %184 = arith.addf %179, %183 : vector<1x1xf32>
    %c9 = arith.constant 9 : index
    %c0_178 = arith.constant 0 : index
    %185 = vector.load %arg11[%c9, %c0_178] : memref<16x64xf32, #tpu.memory_space<vmem>>, vector<1x64xf32>
    %c9_179 = arith.constant 9 : index
    %c0_180 = arith.constant 0 : index
    %c0_181 = arith.constant 0 : index
    %186 = vector.load %arg7[%c9_179, %c0_180, %c0_181] : memref<16x64x1xf32, #tpu.memory_space<vmem>>, vector<1x64x1xf32>
    %187 = vector.shape_cast %186 : vector<1x64x1xf32> to vector<64x1xf32>
    %cst_182 = arith.constant dense<0.000000e+00> : vector<1x1xf32>
    %188 = tpu.matmul %185, %187, %cst_182 {dimension_numbers = #tpu.dot_dimension_numbers<[1], [0], [0], [1], [0, 0, 1, 1], [], []>} : vector<1x64xf32>, vector<64x1xf32>, vector<1x1xf32> -> vector<1x1xf32>
    %189 = arith.addf %184, %188 : vector<1x1xf32>
    %c10 = arith.constant 10 : index
    %c0_183 = arith.constant 0 : index
    %190 = vector.load %arg11[%c10, %c0_183] : memref<16x64xf32, #tpu.memory_space<vmem>>, vector<1x64xf32>
    %c10_184 = arith.constant 10 : index
    %c0_185 = arith.constant 0 : index
    %c0_186 = arith.constant 0 : index
    %191 = vector.load %arg7[%c10_184, %c0_185, %c0_186] : memref<16x64x1xf32, #tpu.memory_space<vmem>>, vector<1x64x1xf32>
    %192 = vector.shape_cast %191 : vector<1x64x1xf32> to vector<64x1xf32>
    %cst_187 = arith.constant dense<0.000000e+00> : vector<1x1xf32>
    %193 = tpu.matmul %190, %192, %cst_187 {dimension_numbers = #tpu.dot_dimension_numbers<[1], [0], [0], [1], [0, 0, 1, 1], [], []>} : vector<1x64xf32>, vector<64x1xf32>, vector<1x1xf32> -> vector<1x1xf32>
    %194 = arith.addf %189, %193 : vector<1x1xf32>
    %c11 = arith.constant 11 : index
    %c0_188 = arith.constant 0 : index
    %195 = vector.load %arg11[%c11, %c0_188] : memref<16x64xf32, #tpu.memory_space<vmem>>, vector<1x64xf32>
    %c11_189 = arith.constant 11 : index
    %c0_190 = arith.constant 0 : index
    %c0_191 = arith.constant 0 : index
    %196 = vector.load %arg7[%c11_189, %c0_190, %c0_191] : memref<16x64x1xf32, #tpu.memory_space<vmem>>, vector<1x64x1xf32>
    %197 = vector.shape_cast %196 : vector<1x64x1xf32> to vector<64x1xf32>
    %cst_192 = arith.constant dense<0.000000e+00> : vector<1x1xf32>
    %198 = tpu.matmul %195, %197, %cst_192 {dimension_numbers = #tpu.dot_dimension_numbers<[1], [0], [0], [1], [0, 0, 1, 1], [], []>} : vector<1x64xf32>, vector<64x1xf32>, vector<1x1xf32> -> vector<1x1xf32>
    %199 = arith.addf %194, %198 : vector<1x1xf32>
    %c12 = arith.constant 12 : index
    %c0_193 = arith.constant 0 : index
    %200 = vector.load %arg11[%c12, %c0_193] : memref<16x64xf32, #tpu.memory_space<vmem>>, vector<1x64xf32>
    %c12_194 = arith.constant 12 : index
    %c0_195 = arith.constant 0 : index
    %c0_196 = arith.constant 0 : index
    %201 = vector.load %arg7[%c12_194, %c0_195, %c0_196] : memref<16x64x1xf32, #tpu.memory_space<vmem>>, vector<1x64x1xf32>
    %202 = vector.shape_cast %201 : vector<1x64x1xf32> to vector<64x1xf32>
    %cst_197 = arith.constant dense<0.000000e+00> : vector<1x1xf32>
    %203 = tpu.matmul %200, %202, %cst_197 {dimension_numbers = #tpu.dot_dimension_numbers<[1], [0], [0], [1], [0, 0, 1, 1], [], []>} : vector<1x64xf32>, vector<64x1xf32>, vector<1x1xf32> -> vector<1x1xf32>
    %204 = arith.addf %199, %203 : vector<1x1xf32>
    %c13 = arith.constant 13 : index
    %c0_198 = arith.constant 0 : index
    %205 = vector.load %arg11[%c13, %c0_198] : memref<16x64xf32, #tpu.memory_space<vmem>>, vector<1x64xf32>
    %c13_199 = arith.constant 13 : index
    %c0_200 = arith.constant 0 : index
    %c0_201 = arith.constant 0 : index
    %206 = vector.load %arg7[%c13_199, %c0_200, %c0_201] : memref<16x64x1xf32, #tpu.memory_space<vmem>>, vector<1x64x1xf32>
    %207 = vector.shape_cast %206 : vector<1x64x1xf32> to vector<64x1xf32>
    %cst_202 = arith.constant dense<0.000000e+00> : vector<1x1xf32>
    %208 = tpu.matmul %205, %207, %cst_202 {dimension_numbers = #tpu.dot_dimension_numbers<[1], [0], [0], [1], [0, 0, 1, 1], [], []>} : vector<1x64xf32>, vector<64x1xf32>, vector<1x1xf32> -> vector<1x1xf32>
    %209 = arith.addf %204, %208 : vector<1x1xf32>
    %c14 = arith.constant 14 : index
    %c0_203 = arith.constant 0 : index
    %210 = vector.load %arg11[%c14, %c0_203] : memref<16x64xf32, #tpu.memory_space<vmem>>, vector<1x64xf32>
    %c14_204 = arith.constant 14 : index
    %c0_205 = arith.constant 0 : index
    %c0_206 = arith.constant 0 : index
    %211 = vector.load %arg7[%c14_204, %c0_205, %c0_206] : memref<16x64x1xf32, #tpu.memory_space<vmem>>, vector<1x64x1xf32>
    %212 = vector.shape_cast %211 : vector<1x64x1xf32> to vector<64x1xf32>
    %cst_207 = arith.constant dense<0.000000e+00> : vector<1x1xf32>
    %213 = tpu.matmul %210, %212, %cst_207 {dimension_numbers = #tpu.dot_dimension_numbers<[1], [0], [0], [1], [0, 0, 1, 1], [], []>} : vector<1x64xf32>, vector<64x1xf32>, vector<1x1xf32> -> vector<1x1xf32>
    %214 = arith.addf %209, %213 : vector<1x1xf32>
    %c15 = arith.constant 15 : index
    %c0_208 = arith.constant 0 : index
    %215 = vector.load %arg11[%c15, %c0_208] : memref<16x64xf32, #tpu.memory_space<vmem>>, vector<1x64xf32>
    %c15_209 = arith.constant 15 : index
    %c0_210 = arith.constant 0 : index
    %c0_211 = arith.constant 0 : index
    %216 = vector.load %arg7[%c15_209, %c0_210, %c0_211] : memref<16x64x1xf32, #tpu.memory_space<vmem>>, vector<1x64x1xf32>
    %217 = vector.shape_cast %216 : vector<1x64x1xf32> to vector<64x1xf32>
    %cst_212 = arith.constant dense<0.000000e+00> : vector<1x1xf32>
    %218 = tpu.matmul %215, %217, %cst_212 {dimension_numbers = #tpu.dot_dimension_numbers<[1], [0], [0], [1], [0, 0, 1, 1], [], []>} : vector<1x64xf32>, vector<64x1xf32>, vector<1x1xf32> -> vector<1x1xf32>
    %219 = arith.addf %214, %218 : vector<1x1xf32>
    %cst_213 = arith.constant 0.000000e+00 : f32
    %220 = vector.broadcast %cst_213 : f32 to vector<1x1xf32>
    %221 = arith.subf %220, %219 : vector<1x1xf32>
    %222 = math.exp %221 : vector<1x1xf32>
    %cst_214 = arith.constant 1.000000e+00 : f32
    %223 = vector.broadcast %cst_214 : f32 to vector<1x1xf32>
    %224 = arith.addf %223, %222 : vector<1x1xf32>
    %cst_215 = arith.constant 1.000000e+00 : f32
    %225 = vector.broadcast %cst_215 : f32 to vector<1x1xf32>
    %226 = arith.divf %225, %224 : vector<1x1xf32>
    %c0_216 = arith.constant 0 : index
    %c0_217 = arith.constant 0 : index
    %c0_218 = arith.constant 0 : index
    %227 = vector.load %arg8[%c0_216, %c0_217, %c0_218] : memref<1x1x1xf32, #tpu.memory_space<vmem>>, vector<1x1x1xf32>
    %228 = vector.shape_cast %227 : vector<1x1x1xf32> to vector<1x1xf32>
    %229 = vector.shape_cast %226 : vector<1x1xf32> to vector<1x1x1xf32>
    tpu.vector_store %arg8[%c0_216, %c0_217, %c0_218], %229 {strides = array<i32>} : memref<1x1x1xf32, #tpu.memory_space<vmem>>, vector<1x1x1xf32>,
    return
  }
  func.func @transform_0(%arg0: i32) -> (i32, i32, i32) {
    %c0_i32 = arith.constant 0 : i32
    %c0_i32_0 = arith.constant 0 : i32
    %c0_i32_1 = arith.constant 0 : i32
    return %arg0, %c0_i32, %c0_i32_0 : i32, i32, i32
  }
  func.func @transform_1(%arg0: i32) -> (i32, i32, i32) {
    %c0_i32 = arith.constant 0 : i32
    %c0_i32_0 = arith.constant 0 : i32
    %c0_i32_1 = arith.constant 0 : i32
    %c0_i32_2 = arith.constant 0 : i32
    return %c0_i32, %c0_i32_0, %c0_i32_1 : i32, i32, i32
  }
  func.func @transform_2(%arg0: i32) -> (i32, i32, i32) {
    %c0_i32 = arith.constant 0 : i32
    %c0_i32_0 = arith.constant 0 : i32
    %c0_i32_1 = arith.constant 0 : i32
    %c0_i32_2 = arith.constant 0 : i32
    return %c0_i32, %c0_i32_0, %c0_i32_1 : i32, i32, i32
  }
  func.func @transform_3(%arg0: i32) -> (i32, i32) {
    %c0_i32 = arith.constant 0 : i32
    %c0_i32_0 = arith.constant 0 : i32
    %c0_i32_1 = arith.constant 0 : i32
    return %c0_i32, %c0_i32_0 : i32, i32
  }
  func.func @transform_4(%arg0: i32) -> (i32, i32, i32) {
    %c0_i32 = arith.constant 0 : i32
    %c0_i32_0 = arith.constant 0 : i32
    %c0_i32_1 = arith.constant 0 : i32
    %c0_i32_2 = arith.constant 0 : i32
    return %c0_i32, %c0_i32_0, %c0_i32_1 : i32, i32, i32
  }
  func.func @transform_5(%arg0: i32) -> (i32, i32) {
    %c0_i32 = arith.constant 0 : i32
    %c0_i32_0 = arith.constant 0 : i32
    %c0_i32_1 = arith.constant 0 : i32
    return %c0_i32, %c0_i32_0 : i32, i32
  }
  func.func @transform_6(%arg0: i32) -> (i32, i32, i32) {
    %c0_i32 = arith.constant 0 : i32
    %c0_i32_0 = arith.constant 0 : i32
    %c0_i32_1 = arith.constant 0 : i32
    %c0_i32_2 = arith.constant 0 : i32
    return %c0_i32, %c0_i32_0, %c0_i32_1 : i32, i32, i32
  }
  func.func @transform_7(%arg0: i32) -> (i32, i32, i32) {
    %c0_i32 = arith.constant 0 : i32
    %c0_i32_0 = arith.constant 0 : i32
    %c0_i32_1 = arith.constant 0 : i32
    return %arg0, %c0_i32, %c0_i32_0 : i32, i32, i32
  }
}

</mosaic_0001>

<bundles_post_ra>
// kernel: discriminator_forward.1
= control target key start
LH: loop header
LB: loop body
LE: loop exit
PB: predicated region body
PF: predicated region fallthrough
CT: control target
= control target key end

     0   :  { %s6365_s24 = smov 0   ;;  %s8106_s0 = inlined_call_operand.vmem [shape: f32[2,1026,1], index: 0, kind: input, shape index: {}]   ;;  %s8107_s1 = inlined_call_operand.vmem [shape: f32[6,1,16], index: 1, kind: input, shape index: {}]   ;;  %s8108_s2 = inlined_call_operand.vmem [shape: f32[6,16,32], index: 2, kind: input, shape index: {}]   ;;  %s8109_s3 = inlined_call_operand.vmem [shape: f32[1,32], index: 3, kind: input, shape index: {}]   ;;  %s8110_s4 = inlined_call_operand.vmem [shape: f32[6,32,64], index: 4, kind: input, shape index: {}]   ;;  %s8111_s5 = inlined_call_operand.vmem [shape: f32[1,64], index: 5, kind: input, shape index: {}]   ;;  %s8112_s6 = inlined_call_operand.vmem [shape: f32[16,64,1], index: 6, kind: input, shape index: {}]   ;;  %s8113_s7 = inlined_call_operand.vmem [shape: f32[2,1,1], index: 7, kind: output, shape index: {}]  }
   0x1 LB: > { %s5148_s25 = sadd.s32 4294967295, %s6320_s24   ;;  %p5152_p0 = scmp.ge.s32.totalorder %s6320_s24, 1  ;;  %s6320_s24 = sphi %s6365_s24, %s17_s24  }
   0x2   : > { %p237_p1 = scmp.lt.s32.totalorder %s6320_s24, 3 }
   0x4   : > { %p238_p2 = pnand %p5152_p0, %p237_p1 }
   0x6   : > { %241 = sbr.rel (%p238_p2) target bundleno = 1371 (0x55b), region = 48 }
   0xb   : > { %p267_p3 = scmp.lt.s32.totalorder %s5148_s25, 1  ;;  %v6322_v0 = vmov 0   ;;  %vm275_vm0 = vcmask 130048   ;;  %vm308_vm11 = vcmask 123904  }
   0xc   : > { %6305 = vset.pattern.permute.xlu1 %v6322_v0  ;;  %6304 = vset.pattern.permute.xlu0 %v6322_v0 }
   0xd   : > { %s8182_s25 = smov (!%p267_p3, %s5148_s25), 1 }
   0xe   : > { %s6292_s26 = smul.u32 1032, %s8182_s25  ;;  %s274_s27 = scalar_lea.vmem %s8113_s7, %s8182_s25 }
  0x10   : > { %s6379_s29 = scalar_lea.vmem %s8106_s0, %s6292_s26 }
  0x11   : > { %v5155_v1 = vld [vmem:[%s6379_s29 + $0x40] ss:$4 sm:$0xff]  ;;  %v5187_v5 = vld [vmem:[%s6379_s29 + $0x21] ss:$4 sm:$0xff]  ;;  %v5221_v17 = vld [vmem:[%s6379_s29 + $0x22] ss:$4 sm:$0xff] }
  0x12   : > { %v321_v2 = vld [vmem:[%s6379_s29] ss:$4 sm:$0xff]  ;;  %397 = vperm.xlu1 %6305, %v5155_v1   ;;  %v5186_v6 = vld [vmem:[%s6379_s29 + $0x1] ss:$4 sm:$0xff]  ;;  %v5220_v18 = vld [vmem:[%s6379_s29 + $0x2] ss:$4 sm:$0xff] }
  0x13   : > { %387 = vperm.xlu0 %6304, %v321_v2   ;;  %v5156_v3 = vld [vmem:[%s6379_s29 + $0x60] ss:$4 sm:$0xff]  ;;  %v5189_v7 = vld [vmem:[%s6379_s29 + $0x61] ss:$4 sm:$0xff]  ;;  %v5223_v19 = vld [vmem:[%s6379_s29 + $0x62] ss:$4 sm:$0xff] }
  0x14   : > { %v5154_v4 = vld [vmem:[%s6379_s29 + $0x20] ss:$4 sm:$0xff]  ;;  %v5188_v8 = vld [vmem:[%s6379_s29 + $0x41] ss:$4 sm:$0xff]  ;;  %v5222_v20 = vld [vmem:[%s6379_s29 + $0x42] ss:$4 sm:$0xff] }
  0x15   : > { %v5158_v9 = vld [vmem:[%s6379_s29 + $0xa0] ss:$4 sm:$0xff]  ;;  %v5191_v13 = vld [vmem:[%s6379_s29 + $0xa1] ss:$4 sm:$0xff]  ;;  %v5225_v21 = vld [vmem:[%s6379_s29 + $0xa2] ss:$4 sm:$0xff] }
  0x16   : > { %402 = vperm.xlu1 %6305, %v5156_v3   ;;  %v5157_v10 = vld [vmem:[%s6379_s29 + $0x80] ss:$4 sm:$0xff]  ;;  %v5190_v14 = vld [vmem:[%s6379_s29 + $0x81] ss:$4 sm:$0xff]  ;;  %v5224_v22 = vld [vmem:[%s6379_s29 + $0x82] ss:$4 sm:$0xff] }
  0x17   : > { %392 = vperm.xlu0 %6304, %v5154_v4   ;;  %v5160_v11 = vld [vmem:[%s6379_s29 + $0xe0] ss:$4 sm:$0xff]  ;;  %v5193_v15 = vld [vmem:[%s6379_s29 + $0xe1] ss:$4 sm:$0xff]  ;;  %v5227_v23 = vld [vmem:[%s6379_s29 + $0xe2] ss:$4 sm:$0xff] }
  0x18   : > { %v5159_v12 = vld [vmem:[%s6379_s29 + $0xc0] ss:$4 sm:$0xff]  ;;  %v5192_v16 = vld [vmem:[%s6379_s29 + $0xc1] ss:$4 sm:$0xff]  ;;  %v5226_v24 = vld [vmem:[%s6379_s29 + $0xc2] ss:$4 sm:$0xff] }
  0x19   : > { %v5162_v25 = vld [vmem:[%s6379_s29 + $0x120] ss:$4 sm:$0xff]  ;;  %v5195_v29 = vld [vmem:[%s6379_s29 + $0x121] ss:$4 sm:$0xff]  ;;  %v5255_v33 = vld [vmem:[%s6379_s29 + $0x23] ss:$4 sm:$0xff] }
  0x1a   : > { %688 = vperm.xlu1 %6305, %v5187_v5   ;;  %v5161_v26 = vld [vmem:[%s6379_s29 + $0x100] ss:$4 sm:$0xff]  ;;  %v5194_v30 = vld [vmem:[%s6379_s29 + $0x101] ss:$4 sm:$0xff]  ;;  %v5254_v34 = vld [vmem:[%s6379_s29 + $0x3] ss:$4 sm:$0xff] }
  0x1b   : > { %683 = vperm.xlu0 %6304, %v5186_v6   ;;  %v5164_v27 = vld [vmem:[%s6379_s29 + $0x160] ss:$4 sm:$0xff]  ;;  %v5197_v31 = vld [vmem:[%s6379_s29 + $0x161] ss:$4 sm:$0xff]  ;;  %v5257_v35 = vld [vmem:[%s6379_s29 + $0x63] ss:$4 sm:$0xff] }
  0x1c   : > { %v5163_v28 = vld [vmem:[%s6379_s29 + $0x140] ss:$4 sm:$0xff]  ;;  %v5196_v32 = vld [vmem:[%s6379_s29 + $0x141] ss:$4 sm:$0xff]  ;;  %v5256_v36 = vld [vmem:[%s6379_s29 + $0x43] ss:$4 sm:$0xff] }
  0x1d   : > { %v5166_v37 = vld [vmem:[%s6379_s29 + $0x1a0] ss:$4 sm:$0xff]  ;;  %v5199_v41 = vld [vmem:[%s6379_s29 + $0x1a1] ss:$4 sm:$0xff]  ;;  %v5259_v45 = vld [vmem:[%s6379_s29 + $0xa3] ss:$4 sm:$0xff] }
  0x1e   : > { %698 = vperm.xlu1 %6305, %v5189_v7   ;;  %v5165_v38 = vld [vmem:[%s6379_s29 + $0x180] ss:$4 sm:$0xff]  ;;  %v5198_v42 = vld [vmem:[%s6379_s29 + $0x181] ss:$4 sm:$0xff]  ;;  %v5258_v46 = vld [vmem:[%s6379_s29 + $0x83] ss:$4 sm:$0xff] }
  0x1f   : > { %693 = vperm.xlu0 %6304, %v5188_v8   ;;  %v5168_v39 = vld [vmem:[%s6379_s29 + $0x1e0] ss:$4 sm:$0xff]  ;;  %v5201_v43 = vld [vmem:[%s6379_s29 + $0x1e1] ss:$4 sm:$0xff]  ;;  %v5261_v47 = vld [vmem:[%s6379_s29 + $0xe3] ss:$4 sm:$0xff] }
  0x20   : > { %v5167_v40 = vld [vmem:[%s6379_s29 + $0x1c0] ss:$4 sm:$0xff]  ;;  %v5200_v44 = vld [vmem:[%s6379_s29 + $0x1c1] ss:$4 sm:$0xff]  ;;  %v5260_v48 = vld [vmem:[%s6379_s29 + $0xc3] ss:$4 sm:$0xff] }
  0x21   : > { %v5229_v49 = vld [vmem:[%s6379_s29 + $0x122] ss:$4 sm:$0xff]  ;;  %v5289_v53 = vld [vmem:[%s6379_s29 + $0x24] ss:$4 sm:$0xff] }
  0x22   : > { %412 = vperm.xlu1 %6305, %v5158_v9   ;;  %v5228_v50 = vld [vmem:[%s6379_s29 + $0x102] ss:$4 sm:$0xff]  ;;  %v5288_v54 = vld [vmem:[%s6379_s29 + $0x4] ss:$4 sm:$0xff] }
  0x23   : > { %407 = vperm.xlu0 %6304, %v5157_v10   ;;  %v5231_v51 = vld [vmem:[%s6379_s29 + $0x162] ss:$4 sm:$0xff]  ;;  %v5291_v55 = vld [vmem:[%s6379_s29 + $0x64] ss:$4 sm:$0xff] }
  0x24   : > { %v5230_v52 = vld [vmem:[%s6379_s29 + $0x142] ss:$4 sm:$0xff]  ;;  %v5290_v56 = vld [vmem:[%s6379_s29 + $0x44] ss:$4 sm:$0xff] }
  0x25   : > { %v5233_v57 = vld [vmem:[%s6379_s29 + $0x1a2] ss:$4 sm:$0xff]  ;;  %v5293_v61 = vld [vmem:[%s6379_s29 + $0xa4] ss:$4 sm:$0xff] }
  0x26   : > { %422 = vperm.xlu1 %6305, %v5160_v11   ;;  %v5232_v58 = vld [vmem:[%s6379_s29 + $0x182] ss:$4 sm:$0xff]  ;;  %v5292_v62 = vld [vmem:[%s6379_s29 + $0x84] ss:$4 sm:$0xff]  ;;  %v5203_v11 = vld [vmem:[%s6379_s29 + $0x221] ss:$4 sm:$0xff] }
  0x27   : > { %417 = vperm.xlu0 %6304, %v5159_v12   ;;  %v5235_v59 = vld [vmem:[%s6379_s29 + $0x1e2] ss:$4 sm:$0xff]  ;;  %v5295_v63 = vld [vmem:[%s6379_s29 + $0xe4] ss:$4 sm:$0xff]  ;;  %v5202_v12 = vld [vmem:[%s6379_s29 + $0x201] ss:$4 sm:$0xff] }
  0x28   : > { %v5234_v60 = vld [vmem:[%s6379_s29 + $0x1c2] ss:$4 sm:$0xff]  ;;  %v5294_v0 = vld [vmem:[%s6379_s29 + $0xc4] ss:$4 sm:$0xff] }
  0x29   : > { %v5170_v3 = vld [vmem:[%s6379_s29 + $0x220] ss:$4 sm:$0xff] }
  0x2a   : > { %708 = vperm.xlu1 %6305, %v5191_v13   ;;  %v5169_v4 = vld [vmem:[%s6379_s29 + $0x200] ss:$4 sm:$0xff] }
  0x2b   : > { %703 = vperm.xlu0 %6304, %v5190_v14   ;;  %v5172_v7 = vld [vmem:[%s6379_s29 + $0x260] ss:$4 sm:$0xff] }
  0x2c   : > { %v5171_v8 = vld [vmem:[%s6379_s29 + $0x240] ss:$4 sm:$0xff] }
  0x2e   : > { %718 = vperm.xlu1 %6305, %v5193_v15   ;;  %v5205_v15 = vld [vmem:[%s6379_s29 + $0x261] ss:$4 sm:$0xff] }
  0x2f   : > { %713 = vperm.xlu0 %6304, %v5192_v16   ;;  %v5204_v16 = vld [vmem:[%s6379_s29 + $0x241] ss:$4 sm:$0xff] }
  0x32   : > { %984 = vperm.xlu1 %6305, %v5221_v17  }
  0x33   : > { %979 = vperm.xlu0 %6304, %v5220_v18  }
  0x36   : > { %994 = vperm.xlu1 %6305, %v5223_v19   ;;  %v5263_v19 = vld [vmem:[%s6379_s29 + $0x123] ss:$4 sm:$0xff] }
  0x37   : > { %989 = vperm.xlu0 %6304, %v5222_v20   ;;  %v5262_v20 = vld [vmem:[%s6379_s29 + $0x103] ss:$4 sm:$0xff] }
  0x3a   : > { %1004 = vperm.xlu1 %6305, %v5225_v21  }
  0x3b   : > { %999 = vperm.xlu0 %6304, %v5224_v22  }
  0x3e   : > { %1014 = vperm.xlu1 %6305, %v5227_v23   ;;  %v5265_v23 = vld [vmem:[%s6379_s29 + $0x163] ss:$4 sm:$0xff] }
  0x3f   : > { %1009 = vperm.xlu0 %6304, %v5226_v24   ;;  %v5264_v24 = vld [vmem:[%s6379_s29 + $0x143] ss:$4 sm:$0xff] }
  0x42   : > { %432 = vperm.xlu1 %6305, %v5162_v25  }
  0x43   : > { %427 = vperm.xlu0 %6304, %v5161_v26  }
  0x46   : > { %442 = vperm.xlu1 %6305, %v5164_v27   ;;  %v8114_v27 = vmov 0.0  }
  0x47   : > { %437 = vperm.xlu0 %6304, %v5163_v28   ;;  %277 = vst.msk [vmem:[#allocation2 + $0x8] sm:$0xff] %vm275_vm0, %v8114_v27  ;;  %278 = vst.msk [vmem:[#allocation2 + $0x10] sm:$0xff] %vm275_vm0, %v8114_v27  ;;  %v5323_v28 = vld [vmem:[%s6379_s29 + $0x25] ss:$4 sm:$0xff] }
  0x48   : > { %276 = vst.msk [vmem:[#allocation2] sm:$0xff] %vm275_vm0, %v8114_v27  ;;  %279 = vst.msk [vmem:[#allocation2 + $0x18] sm:$0xff] %vm275_vm0, %v8114_v27 }
  0x49   : > { %280 = vst.msk [vmem:[#allocation2 + $0x20] sm:$0xff] %vm275_vm0, %v8114_v27  ;;  %281 = vst.msk [vmem:[#allocation2 + $0x28] sm:$0xff] %vm275_vm0, %v8114_v27 }
  0x4a   : > { %728 = vperm.xlu1 %6305, %v5195_v29   ;;  %282 = vst.msk [vmem:[#allocation2 + $0x30] sm:$0xff] %vm275_vm0, %v8114_v27  ;;  %283 = vst.msk [vmem:[#allocation2 + $0x38] sm:$0xff] %vm275_vm0, %v8114_v27  ;;  %v5322_v29 = vld [vmem:[%s6379_s29 + $0x5] ss:$4 sm:$0xff] }
  0x4b   : > { %723 = vperm.xlu0 %6304, %v5194_v30   ;;  %284 = vst.msk [vmem:[#allocation2 + $0x40] sm:$0xff] %vm275_vm0, %v8114_v27  ;;  %285 = vst.msk [vmem:[#allocation2 + $0x48] sm:$0xff] %vm275_vm0, %v8114_v27 }
  0x4c   : > { %286 = vst.msk [vmem:[#allocation2 + $0x50] sm:$0xff] %vm275_vm0, %v8114_v27  ;;  %287 = vst.msk [vmem:[#allocation2 + $0x58] sm:$0xff] %vm275_vm0, %v8114_v27 }
  0x4d   : > { %288 = vst.msk [vmem:[#allocation2 + $0x60] sm:$0xff] %vm275_vm0, %v8114_v27  ;;  %289 = vst.msk [vmem:[#allocation2 + $0x68] sm:$0xff] %vm275_vm0, %v8114_v27 }
  0x4e   : > { %738 = vperm.xlu1 %6305, %v5197_v31   ;;  %290 = vst.msk [vmem:[#allocation2 + $0x70] sm:$0xff] %vm275_vm0, %v8114_v27  ;;  %291 = vst.msk [vmem:[#allocation2 + $0x78] sm:$0xff] %vm275_vm0, %v8114_v27 }
  0x4f   : > { %733 = vperm.xlu0 %6304, %v5196_v32   ;;  %292 = vst.msk [vmem:[#allocation2 + $0x80] sm:$0xff] %vm275_vm0, %v8114_v27  ;;  %293 = vst.msk [vmem:[#allocation2 + $0x88] sm:$0xff] %vm275_vm0, %v8114_v27  ;;  %v5325_v32 = vld [vmem:[%s6379_s29 + $0x65] ss:$4 sm:$0xff] }
  0x50   : > { %294 = vst.msk [vmem:[#allocation2 + $0x90] sm:$0xff] %vm275_vm0, %v8114_v27  ;;  %295 = vst.msk [vmem:[#allocation2 + $0x98] sm:$0xff] %vm275_vm0, %v8114_v27 }
  0x51   : > { %296 = vst.msk [vmem:[#allocation2 + $0xa0] sm:$0xff] %vm275_vm0, %v8114_v27  ;;  %297 = vst.msk [vmem:[#allocation2 + $0xa8] sm:$0xff] %vm275_vm0, %v8114_v27 }
  0x52   : > { %1280 = vperm.xlu1 %6305, %v5255_v33   ;;  %298 = vst.msk [vmem:[#allocation2 + $0xb0] sm:$0xff] %vm275_vm0, %v8114_v27  ;;  %299 = vst.msk [vmem:[#allocation2 + $0xb8] sm:$0xff] %vm275_vm0, %v8114_v27  ;;  %v5324_v33 = vld [vmem:[%s6379_s29 + $0x45] ss:$4 sm:$0xff] }
  0x53   : > { %1275 = vperm.xlu0 %6304, %v5254_v34   ;;  %300 = vst.msk [vmem:[#allocation2 + $0xc0] sm:$0xff] %vm275_vm0, %v8114_v27  ;;  %301 = vst.msk [vmem:[#allocation2 + $0xc8] sm:$0xff] %vm275_vm0, %v8114_v27 }
  0x54   : > { %302 = vst.msk [vmem:[#allocation2 + $0xd0] sm:$0xff] %vm275_vm0, %v8114_v27  ;;  %303 = vst.msk [vmem:[#allocation2 + $0xd8] sm:$0xff] %vm275_vm0, %v8114_v27 }
  0x55   : > { %304 = vst.msk [vmem:[#allocation2 + $0xe0] sm:$0xff] %vm275_vm0, %v8114_v27  ;;  %305 = vst.msk [vmem:[#allocation2 + $0xe8] sm:$0xff] %vm275_vm0, %v8114_v27 }
  0x56   : > { %1290 = vperm.xlu1 %6305, %v5257_v35   ;;  %306 = vst.msk [vmem:[#allocation2 + $0xf0] sm:$0xff] %vm275_vm0, %v8114_v27  ;;  %307 = vst.msk [vmem:[#allocation2 + $0xf8] sm:$0xff] %vm275_vm0, %v8114_v27 }
  0x57   : > { %1285 = vperm.xlu0 %6304, %v5256_v36   ;;  %v5174_v36 = vld [vmem:[%s6379_s29 + $0x2a0] ss:$4 sm:$0xff] }
  0x5a   : > { %452 = vperm.xlu1 %6305, %v5166_v37   ;;  %v5173_v37 = vld [vmem:[%s6379_s29 + $0x280] ss:$4 sm:$0xff] }
  0x5b   : > { %447 = vperm.xlu0 %6304, %v5165_v38  }
  0x5e   : > { %462 = vperm.xlu1 %6305, %v5168_v39  }
  0x5f   : > { %457 = vperm.xlu0 %6304, %v5167_v40   ;;  %v5176_v40 = vld [vmem:[%s6379_s29 + $0x2e0] ss:$4 sm:$0xff] }
  0x62   : > { %748 = vperm.xlu1 %6305, %v5199_v41   ;;  %v5175_v41 = vld [vmem:[%s6379_s29 + $0x2c0] ss:$4 sm:$0xff] }
  0x63   : > { %743 = vperm.xlu0 %6304, %v5198_v42  }
  0x66   : > { %758 = vperm.xlu1 %6305, %v5201_v43  }
  0x67   : > { %753 = vperm.xlu0 %6304, %v5200_v44   ;;  %v5207_v44 = vld [vmem:[%s6379_s29 + $0x2a1] ss:$4 sm:$0xff] }
  0x6a   : > { %1300 = vperm.xlu1 %6305, %v5259_v45   ;;  %v5206_v45 = vld [vmem:[%s6379_s29 + $0x281] ss:$4 sm:$0xff] }
  0x6b   : > { %1295 = vperm.xlu0 %6304, %v5258_v46  }
  0x6e   : > { %1310 = vperm.xlu1 %6305, %v5261_v47  }
  0x6f   : > { %1305 = vperm.xlu0 %6304, %v5260_v48   ;;  %v5209_v48 = vld [vmem:[%s6379_s29 + $0x2e1] ss:$4 sm:$0xff] }
  0x72   : > { %1024 = vperm.xlu1 %6305, %v5229_v49   ;;  %v5208_v49 = vld [vmem:[%s6379_s29 + $0x2c1] ss:$4 sm:$0xff] }
  0x73   : > { %1019 = vperm.xlu0 %6304, %v5228_v50  }
  0x76   : > { %1034 = vperm.xlu1 %6305, %v5231_v51  }
  0x77   : > { %1029 = vperm.xlu0 %6304, %v5230_v52   ;;  %v5267_v52 = vld [vmem:[%s6379_s29 + $0x1a3] ss:$4 sm:$0xff] }
  0x7a   : > { %1576 = vperm.xlu1 %6305, %v5289_v53   ;;  %v5266_v53 = vld [vmem:[%s6379_s29 + $0x183] ss:$4 sm:$0xff] }
  0x7b   : > { %1571 = vperm.xlu0 %6304, %v5288_v54  }
  0x7e   : > { %1586 = vperm.xlu1 %6305, %v5291_v55  }
  0x7f   : > { %1581 = vperm.xlu0 %6304, %v5290_v56   ;;  %v5269_v56 = vld [vmem:[%s6379_s29 + $0x1e3] ss:$4 sm:$0xff] }
  0x82   : > { %1044 = vperm.xlu1 %6305, %v5233_v57   ;;  %v5268_v57 = vld [vmem:[%s6379_s29 + $0x1c3] ss:$4 sm:$0xff] }
  0x83   : > { %1039 = vperm.xlu0 %6304, %v5232_v58  }
  0x86   : > { %1054 = vperm.xlu1 %6305, %v5235_v59  }
  0x87   : > { %1049 = vperm.xlu0 %6304, %v5234_v60   ;;  %v5327_v60 = vld [vmem:[%s6379_s29 + $0xa5] ss:$4 sm:$0xff] }
  0x8a   : > { %1596 = vperm.xlu1 %6305, %v5293_v61   ;;  %v5326_v61 = vld [vmem:[%s6379_s29 + $0x85] ss:$4 sm:$0xff] }
  0x8b   : > { %1591 = vperm.xlu0 %6304, %v5292_v62  }
  0x8d   : > { %v6445_v1 = vpop.permute.xlu1 %397 }
  0x8e   : > { %v6447_v2 = vpop.permute.xlu0 %387  ;;  %1606 = vperm.xlu1 %6305, %v5295_v63  }
  0x8f   : > { %1601 = vperm.xlu0 %6304, %v5294_v0   ;;  %v5329_v0 = vld [vmem:[%s6379_s29 + $0xe5] ss:$4 sm:$0xff] }
  0x91   : > { %v6451_v5 = vpop.permute.xlu1 %402 }
  0x92   : > { %v6453_v6 = vpop.permute.xlu0 %392  ;;  %472 = vperm.xlu1 %6305, %v5170_v3   ;;  %v5328_v3 = vld [vmem:[%s6379_s29 + $0xc5] ss:$4 sm:$0xff] }
  0x93   : > { %467 = vperm.xlu0 %6304, %v5169_v4  }
  0x95   : > { %v6457_v9 = vpop.permute.xlu1 %688 }
  0x96   : > { %v6459_v10 = vpop.permute.xlu0 %683  ;;  %482 = vperm.xlu1 %6305, %v5172_v7  }
  0x97   : > { %477 = vperm.xlu0 %6304, %v5171_v8   ;;  %v5237_v8 = vld [vmem:[%s6379_s29 + $0x222] ss:$4 sm:$0xff] }
  0x99   : > { %v6463_v13 = vpop.permute.xlu1 %698 }
  0x9a   : > { %v6465_v14 = vpop.permute.xlu0 %693  ;;  %768 = vperm.xlu1 %6305, %v5203_v11   ;;  %v5236_v11 = vld [vmem:[%s6379_s29 + $0x202] ss:$4 sm:$0xff] }
  0x9b   : > { %763 = vperm.xlu0 %6304, %v5202_v12  }
  0x9d   : > { %v6469_v17 = vpop.permute.xlu1 %412 }
  0x9e   : > { %v6471_v18 = vpop.permute.xlu0 %407  ;;  %778 = vperm.xlu1 %6305, %v5205_v15  }
  0x9f   : > { %773 = vperm.xlu0 %6304, %v5204_v16   ;;  %v5239_v16 = vld [vmem:[%s6379_s29 + $0x262] ss:$4 sm:$0xff] }
  0xa1   : > { %v6475_v21 = vpop.permute.xlu1 %422 }
  0xa2   : > { %v6477_v22 = vpop.permute.xlu0 %417  ;;  %1320 = vperm.xlu1 %6305, %v5263_v19   ;;  %v5238_v19 = vld [vmem:[%s6379_s29 + $0x242] ss:$4 sm:$0xff] }
  0xa3   : > { %1315 = vperm.xlu0 %6304, %v5262_v20   ;;  %v5357_v20 = vld [vmem:[%s8108_s2 + $0x18] sm:$0xff] }
  0xa4   : > { %5826 = vmatprep.subr.mxu0 %v5357_v20 }
  0xa5   : > { %v6481_v25 = vpop.permute.xlu1 %708  ;;  %5827 = vmatpush3.msra.mxu0 %v5357_v20  ;;  %v5302_v20 = vld [vmem:[%s6379_s29 + $0x1c4] ss:$4 sm:$0xff] }
  0xa6   : > { %v6483_v26 = vpop.permute.xlu0 %703  ;;  %1330 = vperm.xlu1 %6305, %v5265_v23   ;;  %v2240_v23 = vld [vmem:[%s8108_s2 + $0x8] sm:$0xff] }
  0xa7   : > { %1325 = vperm.xlu0 %6304, %v5264_v24   ;;  %5842 = vmatprep.subr.mxu1 %v2240_v23 }
  0xa8   : > { %5843 = vmatpush3.msra.mxu1 %v2240_v23 }
  0xa9   : > { %v6551_v30 = vpop.permute.xlu1 %718 }
  0xaa   : > { %v6553_v31 = vpop.permute.xlu0 %713  ;;  %1872 = vperm.xlu1 %6305, %v5323_v28  }
  0xab   : > { %1867 = vperm.xlu0 %6304, %v5322_v29   ;;  %v5297_v29 = vld [vmem:[%s6379_s29 + $0x124] ss:$4 sm:$0xff] }
  0xad   : > { %v6557_v34 = vpop.permute.xlu1 %984 }
  0xae   : > { %v6559_v35 = vpop.permute.xlu0 %979  ;;  %1882 = vperm.xlu1 %6305, %v5325_v32   ;;  %v5296_v32 = vld [vmem:[%s6379_s29 + $0x104] ss:$4 sm:$0xff] }
  0xaf   : > { %1877 = vperm.xlu0 %6304, %v5324_v33   ;;  %v5356_v33 = vld [vmem:[%s8108_s2 + $0x10] sm:$0xff] }
  0xb0   : > { %5828 = vmatprep.subr.mxu0 %v5356_v33 }
  0xb1   : > { %v6563_v38 = vpop.permute.xlu1 %994  ;;  %5829 = vmatpush3.msra.mxu0 %v5356_v33  ;;  %v5177_v33 = vld [vmem:[%s6379_s29 + $0x300] ss:$4 sm:$0xff] }
  0xb2   : > { %v6565_v39 = vpop.permute.xlu0 %989  ;;  %492 = vperm.xlu1 %6305, %v5174_v36   ;;  %v2239_v36 = vld [vmem:[%s8108_s2] sm:$0xff] }
  0xb3   : > { %487 = vperm.xlu0 %6304, %v5173_v37   ;;  %5844 = vmatprep.subr.mxu1 %v2239_v36 }
  0xb4   : > { %5845 = vmatpush3.msra.mxu1 %v2239_v36 }
  0xb5   : > { %v6569_v42 = vpop.permute.xlu1 %1004 }
  0xb6   : > { %v6571_v43 = vpop.permute.xlu0 %999  ;;  %502 = vperm.xlu1 %6305, %v5176_v40  }
  0xb7   : > { %497 = vperm.xlu0 %6304, %v5175_v41   ;;  %v5299_v41 = vld [vmem:[%s6379_s29 + $0x164] ss:$4 sm:$0xff] }
  0xb9   : > { %v6575_v46 = vpop.permute.xlu1 %1014 }
  0xba   : > { %v6577_v47 = vpop.permute.xlu0 %1009  ;;  %788 = vperm.xlu1 %6305, %v5207_v44   ;;  %v5298_v44 = vld [vmem:[%s6379_s29 + $0x144] ss:$4 sm:$0xff] }
  0xbb   : > { %783 = vperm.xlu0 %6304, %v5206_v45  }
  0xbd   : > { %v6581_v50 = vpop.permute.xlu1 %432 }
  0xbe   : > { %v6583_v51 = vpop.permute.xlu0 %427  ;;  %798 = vperm.xlu1 %6305, %v5209_v48  }
  0xbf   : > { %793 = vperm.xlu0 %6304, %v5208_v49   ;;  %v5241_v49 = vld [vmem:[%s6379_s29 + $0x2a2] ss:$4 sm:$0xff] }
  0xc1   : > { %v6587_v54 = vpop.permute.xlu1 %442 }
  0xc2   : > { %v6589_v55 = vpop.permute.xlu0 %437  ;;  %1340 = vperm.xlu1 %6305, %v5267_v52   ;;  %v5240_v52 = vld [vmem:[%s6379_s29 + $0x282] ss:$4 sm:$0xff] }
  0xc3   : > { %1335 = vperm.xlu0 %6304, %v5266_v53  }
  0xc5   : > { %v6593_v58 = vpop.permute.xlu1 %728 }
  0xc6   : > { %v6595_v59 = vpop.permute.xlu0 %723  ;;  %1350 = vperm.xlu1 %6305, %v5269_v56  }
  0xc7   : > { %1345 = vperm.xlu0 %6304, %v5268_v57   ;;  %v5243_v57 = vld [vmem:[%s6379_s29 + $0x2e2] ss:$4 sm:$0xff] }
  0xc9   : > { %v6599_v62 = vpop.permute.xlu1 %738 }
  0xca   : > { %v6601_v63 = vpop.permute.xlu0 %733  ;;  %1892 = vperm.xlu1 %6305, %v5327_v60   ;;  %v5242_v60 = vld [vmem:[%s6379_s29 + $0x2c2] ss:$4 sm:$0xff] }
  0xcb   : > { %1887 = vperm.xlu0 %6304, %v5326_v61  }
  0xcd   : > { %v6605_v4 = vpop.permute.xlu1 %1280 }
  0xce   : > { %v6607_v7 = vpop.permute.xlu0 %1275  ;;  %1902 = vperm.xlu1 %6305, %v5329_v0  }
  0xcf   : > { %1897 = vperm.xlu0 %6304, %v5328_v3   ;;  %v5301_v3 = vld [vmem:[%s6379_s29 + $0x1a4] ss:$4 sm:$0xff] }
  0xd1   : > { %v6611_v12 = vpop.permute.xlu1 %1290 }
  0xd2   : > { %v6613_v15 = vpop.permute.xlu0 %1285  ;;  %1064 = vperm.xlu1 %6305, %v5237_v8   ;;  %v5300_v8 = vld [vmem:[%s6379_s29 + $0x184] ss:$4 sm:$0xff] }
  0xd3   : > { %1059 = vperm.xlu0 %6304, %v5236_v11  }
  0xd5   : > { %v6623_v24 = vpop.permute.xlu1 %452 }
  0xd6   : > { %8116 = vst [vmem:[#allocation5_spill] sm:$0xff] %v6623_v24  ;;  %v6625_v28 = vpop.permute.xlu0 %447  ;;  %1074 = vperm.xlu1 %6305, %v5239_v16  }
  0xd7   : > { %8117 = vst [vmem:[#allocation6_spill] sm:$0xff] %v6625_v28  ;;  %1069 = vperm.xlu0 %6304, %v5238_v19   ;;  %v5303_v19 = vld [vmem:[%s6379_s29 + $0x1e4] ss:$4 sm:$0xff] }
  0xd9   : > { %v6635_v37 = vpop.permute.xlu1 %462 }
  0xda   : > { %8118 = vst [vmem:[#allocation7_spill] sm:$0xff] %v6635_v37  ;;  %v6637_v40 = vpop.permute.xlu0 %457  ;;  %1616 = vperm.xlu1 %6305, %v5297_v29  }
  0xdb   : > { %8119 = vst [vmem:[#allocation8_spill] sm:$0xff] %v6637_v40  ;;  %1611 = vperm.xlu0 %6304, %v5296_v32   ;;  %v5178_v32 = vld [vmem:[%s6379_s29 + $0x320] ss:$4 sm:$0xff] }
  0xdd   : > { %v6641_v45 = vpop.permute.xlu1 %748 }
  0xde   : > { %8120 = vst [vmem:[#allocation9_spill] sm:$0xff] %v6641_v45  ;;  %v6643_v48 = vpop.permute.xlu0 %743  ;;  %1626 = vperm.xlu1 %6305, %v5299_v41  }
  0xdf   : > { %8121 = vst [vmem:[#allocation10_spill] sm:$0xff] %v6643_v48  ;;  %1621 = vperm.xlu0 %6304, %v5298_v44   ;;  %v5180_v44 = vld [vmem:[%s6379_s29 + $0x360] ss:$4 sm:$0xff] }
  0xe1   : > { %v6647_v53 = vpop.permute.xlu1 %758 }
  0xe2   : > { %8122 = vst [vmem:[#allocation11_spill] sm:$0xff] %v6647_v53  ;;  %v6649_v56 = vpop.permute.xlu0 %753  ;;  %1084 = vperm.xlu1 %6305, %v5241_v49   ;;  %v5179_v49 = vld [vmem:[%s6379_s29 + $0x340] ss:$4 sm:$0xff] }
  0xe3   : > { %8123 = vst [vmem:[#allocation12_spill] sm:$0xff] %v6649_v56  ;;  %1079 = vperm.xlu0 %6304, %v5240_v52  }
  0xe5   : > { %v6653_v61 = vpop.permute.xlu1 %1300 }
  0xe6   : > { %v6655_v0 = vpop.permute.xlu0 %1295  ;;  %1094 = vperm.xlu1 %6305, %v5243_v57  }
  0xe7   : > { %1089 = vperm.xlu0 %6304, %v5242_v60   ;;  %v5211_v60 = vld [vmem:[%s6379_s29 + $0x321] ss:$4 sm:$0xff] }
  0xe9   : > { %v6659_v11 = vpop.permute.xlu1 %1310 }
  0xea   : > { %v6661_v16 = vpop.permute.xlu0 %1305  ;;  %1636 = vperm.xlu1 %6305, %v5301_v3   ;;  %v5210_v3 = vld [vmem:[%s6379_s29 + $0x301] ss:$4 sm:$0xff] }
  0xeb   : > { %1631 = vperm.xlu0 %6304, %v5300_v8  }
  0xed   : > { %v6665_v23 = vpop.permute.xlu1 %1024 }
  0xee   : > { %v6667_v29 = vpop.permute.xlu0 %1019  ;;  %1646 = vperm.xlu1 %6305, %v5303_v19  }
  0xef   : > { %8124 = vst [vmem:[#allocation13_spill] sm:$0xff] %v6667_v29  ;;  %1641 = vperm.xlu0 %6304, %v5302_v20   ;;  %v5213_v20 = vld [vmem:[%s6379_s29 + $0x361] ss:$4 sm:$0xff] }
  0xf1   : > { %v6671_v36 = vpop.permute.xlu1 %1034 }
  0xf2   : > { %8125 = vst [vmem:[#allocation14_spill] sm:$0xff] %v6671_v36  ;;  %v6673_v41 = vpop.permute.xlu0 %1029  ;;  %512 = vperm.xlu1 %6305, %v5178_v32   ;;  %v5212_v32 = vld [vmem:[%s6379_s29 + $0x341] ss:$4 sm:$0xff] }
  0xf3   : > { %8126 = vst [vmem:[#allocation15_spill] sm:$0xff] %v6673_v41  ;;  %507 = vperm.xlu0 %6304, %v5177_v33   ;;  %v6734_v41 = vld [vmem:[%s8107_s1 + $0x1] ss:$0 sm:$0xff] }
  0xf5   : > { %v6677_v52 = vpop.permute.xlu1 %1576 }
  0xf6   : > { %v6679_v57 = vpop.permute.xlu0 %1571  ;;  %522 = vperm.xlu1 %6305, %v5180_v44   ;;  %v5271_v44 = vld [vmem:[%s6379_s29 + $0x223] ss:$4 sm:$0xff] }
  0xf7   : > { %517 = vperm.xlu0 %6304, %v5179_v49   ;;  %v5270_v49 = vld [vmem:[%s6379_s29 + $0x203] ss:$4 sm:$0xff] }
  0xf9   : > { %v6683_v8 = vpop.permute.xlu1 %1586 }
  0xfa   : > { %v6685_v19 = vpop.permute.xlu0 %1581  ;;  %808 = vperm.xlu1 %6305, %v5211_v60   ;;  %v5273_v60 = vld [vmem:[%s6379_s29 + $0x263] ss:$4 sm:$0xff] }
  0xfb   : > { %803 = vperm.xlu0 %6304, %v5210_v3   ;;  %v5272_v3 = vld [vmem:[%s6379_s29 + $0x243] ss:$4 sm:$0xff] }
  0xfd   : > { %v6689_v33 = vpop.permute.xlu1 %1044 }
  0xfe   : > { %8127 = vst [vmem:[#allocation16_spill] sm:$0xff] %v6689_v33  ;;  %v6691_v27 = vpop.permute.xlu0 %1039  ;;  %818 = vperm.xlu1 %6305, %v5213_v20   ;;  %v5331_v20 = vld [vmem:[%s6379_s29 + $0x125] ss:$4 sm:$0xff] }
  0xff   : > { %8128 = vst [vmem:[#allocation17_spill] sm:$0xff] %v6691_v27  ;;  %813 = vperm.xlu0 %6304, %v5212_v32   ;;  %v5330_v32 = vld [vmem:[%s6379_s29 + $0x105] ss:$4 sm:$0xff] }
 0x101   : > { %v6695_v40 = vpop.permute.xlu1 %1054 }
 0x102   : > { %8129 = vst [vmem:[#allocation18_spill] sm:$0xff] %v6695_v40  ;;  %v6697_v37 = vpop.permute.xlu0 %1049  ;;  %1360 = vperm.xlu1 %6305, %v5271_v44   ;;  %v5333_v44 = vld [vmem:[%s6379_s29 + $0x165] ss:$4 sm:$0xff] }
 0x103   : > { %8130 = vst [vmem:[#allocation19_spill] sm:$0xff] %v6697_v37  ;;  %1355 = vperm.xlu0 %6304, %v5270_v49   ;;  %v5332_v49 = vld [vmem:[%s6379_s29 + $0x145] ss:$4 sm:$0xff] }
 0x105   : > { %v6701_v56 = vpop.permute.xlu1 %1596 }
 0x106   : > { %v6703_v53 = vpop.permute.xlu0 %1591  ;;  %1370 = vperm.xlu1 %6305, %v5273_v60   ;;  %v5182_v60 = vld [vmem:[%s6379_s29 + $0x3a0] ss:$4 sm:$0xff] }
 0x107   : > { %1365 = vperm.xlu0 %6304, %v5272_v3   ;;  %v5181_v3 = vld [vmem:[%s6379_s29 + $0x380] ss:$4 sm:$0xff] }
 0x109   : > { %v6707_v27 = vpop.permute.xlu1 %1606 }
 0x10a   : > { %v6709_v40 = vpop.permute.xlu0 %1601  ;;  %1912 = vperm.xlu1 %6305, %v5331_v20   ;;  %v5184_v20 = vld [vmem:[%s6379_s29 + $0x3e0] ss:$4 sm:$0xff] }
 0x10b   : > { %1907 = vperm.xlu0 %6304, %v5330_v32   ;;  %v5183_v32 = vld [vmem:[%s6379_s29 + $0x3c0] ss:$4 sm:$0xff] }
 0x10d   : > { %v6713_v37 = vpop.permute.xlu1 %472 }
 0x10e   : > { %8131 = vst [vmem:[#allocation20_spill] sm:$0xff] %v6713_v37  ;;  %v6715_v33 = vpop.permute.xlu0 %467  ;;  %1922 = vperm.xlu1 %6305, %v5333_v44   ;;  %v5215_v44 = vld [vmem:[%s6379_s29 + $0x3a1] ss:$4 sm:$0xff]  ;;  %v6776_v37 = vld [vmem:[%s8107_s1 + $0x4] ss:$0 sm:$0xff] }
 0x10f   : > { %8132 = vst [vmem:[#allocation21_spill] sm:$0xff] %v6715_v33  ;;  %1917 = vperm.xlu0 %6304, %v5332_v49   ;;  %v5214_v49 = vld [vmem:[%s6379_s29 + $0x381] ss:$4 sm:$0xff] }
 0x111   : > { %v6719_v28 = vpop.permute.xlu1 %482 }
 0x112   : > { %8133 = vst [vmem:[#allocation22_spill] sm:$0xff] %v6719_v28  ;;  %v6721_v24 = vpop.permute.xlu0 %477  ;;  %532 = vperm.xlu1 %6305, %v5182_v60   ;;  %v5216_v28 = vld [vmem:[%s6379_s29 + $0x3c1] ss:$4 sm:$0xff] }
 0x113   : > { %8134 = vst [vmem:[#allocation23_spill] sm:$0xff] %v6721_v24  ;;  %527 = vperm.xlu0 %6304, %v5181_v3   ;;  %v6743_v3 = vld [vmem:[%s8107_s1 + $0x2] ss:$0 sm:$0xff]  ;;  %v5217_v24 = vld [vmem:[%s6379_s29 + $0x3e1] ss:$4 sm:$0xff] }
 0x115   : > { %v6725_v48 = vpop.permute.xlu1 %768 }
 0x116   : > { %8135 = vst [vmem:[#allocation24_spill] sm:$0xff] %v6725_v48  ;;  %v6727_v45 = vpop.permute.xlu0 %763  ;;  %542 = vperm.xlu1 %6305, %v5184_v20   ;;  %v6748_v20 = vld [vmem:[%s8107_s1] ss:$0 sm:$0xff]  ;;  %v849_v48 = vmul.f32 %v6734_v41, %v6465_v14 }
 0x117   : > { %8136 = vst [vmem:[#allocation25_spill] sm:$0xff] %v6727_v45  ;;  %537 = vperm.xlu0 %6304, %v5183_v32   ;;  %v848_v32 = vmul.f32 %v6734_v41, %v6457_v9  ;;  %v551_v33 = vmul.f32 %v6748_v20, %v6447_v2  ;;  %v5274_v45 = vld [vmem:[%s6379_s29 + $0x283] ss:$4 sm:$0xff]  ;;  %v850_v2 = vmul.f32 %v6734_v41, %v6463_v13 }
 0x118   : > { %v553_v14 = vmul.f32 %v6748_v20, %v6445_v1 }
 0x119   : > { %v6736_v36 = vpop.permute.xlu1 %778 }
 0x11a   : > { %8137 = vst [vmem:[#allocation26_spill] sm:$0xff] %v6736_v36  ;;  %v6738_v60 = vpop.permute.xlu0 %773  ;;  %828 = vperm.xlu1 %6305, %v5215_v44   ;;  %v6759_v44 = vld [vmem:[%s8107_s1 + $0x3] ss:$0 sm:$0xff]  ;;  %v1144_v36 = vmul.f32 %v6743_v3, %v6557_v34 }
 0x11b   : > { %8138 = vst [vmem:[#allocation27_spill] sm:$0xff] %v6738_v60  ;;  %823 = vperm.xlu0 %6304, %v5214_v49   ;;  %v847_v60 = vmul.f32 %v6734_v41, %v6459_v10  ;;  %v552_v49 = vmul.f32 %v6748_v20, %v6453_v6  ;;  %v1143_v10 = vmul.f32 %v6743_v3, %v6559_v35 }
 0x11c   : > { %v1440_v34 = vmul.f32 %v6759_v44, %v6605_v4  ;;  %v1439_v35 = vmul.f32 %v6759_v44, %v6607_v7  ;;  %v1735_v7 = vmul.f32 %v6776_v37, %v6679_v57  ;;  %v1442_v1 = vmul.f32 %v6759_v44, %v6611_v12 }
 0x11d   : > { %v6765_v29 = vpop.permute.xlu1 %1320  ;;  %v880_v6 = vadd.f32 %v848_v32, %v552_v49  ;;  %v5277_v49 = vld [vmem:[%s6379_s29 + $0x2e3] ss:$4 sm:$0xff]  ;;  %v1737_v12 = vmul.f32 %v6776_v37, %v6685_v19 }
 0x11e   : > { %8139 = vst [vmem:[#allocation28_spill] sm:$0xff] %v6765_v29  ;;  %v6767_v9 = vpop.permute.xlu0 %1315  ;;  %838 = vperm.xlu1 %6305, %v5217_v24   ;;  %v5275_v29 = vld [vmem:[%s6379_s29 + $0x2a3] ss:$4 sm:$0xff] }
 0x11f   : > { %8140 = vst [vmem:[#allocation29_spill] sm:$0xff] %v6767_v9  ;;  %833 = vperm.xlu0 %6304, %v5216_v28   ;;  %v879_v9 = vadd.f32 %v847_v60, %v551_v33  ;;  %v1176_v24 = vadd.f32 %v1144_v36, %v880_v6  ;;  %v1736_v28 = vmul.f32 %v6776_v37, %v6677_v52 }
 0x120   : > { %v554_v33 = vmul.f32 %v6748_v20, %v6451_v5  ;;  %v1146_v36 = vmul.f32 %v6743_v3, %v6563_v38  ;;  %v1145_v52 = vmul.f32 %v6743_v3, %v6565_v39  ;;  %v6807_v5 = vld [vmem:[%s8107_s1 + $0x5] ss:$0 sm:$0xff]  ;;  %v1441_v38 = vmul.f32 %v6759_v44, %v6613_v15 }
 0x121   : > { %v6790_v32 = vpop.permute.xlu1 %1330  ;;  %v1175_v13 = vadd.f32 %v1143_v10, %v879_v9  ;;  %v1472_v60 = vadd.f32 %v1440_v34, %v1176_v24  ;;  %v5276_v9 = vld [vmem:[%s6379_s29 + $0x2c3] ss:$4 sm:$0xff]  ;;  %v5334_v15 = vld [vmem:[%s6379_s29 + $0x185] ss:$4 sm:$0xff] }
 0x122   : > { %v6792_v4 = vpop.permute.xlu0 %1325  ;;  %1380 = vperm.xlu1 %6305, %v5275_v29   ;;  %v882_v57 = vadd.f32 %v850_v2, %v554_v33  ;;  %v5335_v33 = vld [vmem:[%s6379_s29 + $0x1a5] ss:$4 sm:$0xff] }
 0x123   : > { %8141 = vst [vmem:[#allocation30_spill] sm:$0xff] %v6792_v4  ;;  %1375 = vperm.xlu0 %6304, %v5274_v45   ;;  %v1471_v29 = vadd.f32 %v1439_v35, %v1175_v13  ;;  %v881_v45 = vadd.f32 %v849_v48, %v553_v14  ;;  %v1768_v39 = vadd.f32 %v1736_v28, %v1472_v60 }
 0x124   : > { %v1178_v2 = vadd.f32 %v1146_v36, %v882_v57  ;;  %v1738_v48 = vmul.f32 %v6776_v37, %v6683_v8  ;;  %v5336_v57 = vld [vmem:[%s6379_s29 + $0x1c5] ss:$4 sm:$0xff] }
 0x125   : > { %v1873_v10 = vpop.permute.xlu1 %1872  ;;  %v1767_v34 = vadd.f32 %v1735_v7, %v1471_v29  ;;  %v1177_v35 = vadd.f32 %v1145_v52, %v881_v45 }
 0x126   : > { %v1868_v6 = vpop.permute.xlu0 %1867  ;;  %v2032_v24 = vmul.f32 %v6807_v5, %v1873_v10  ;;  %1390 = vperm.xlu1 %6305, %v5277_v49   ;;  %v1474_v7 = vadd.f32 %v1442_v1, %v1178_v2 }
 0x127   : > { %v2031_v4 = vmul.f32 %v6807_v5, %v1868_v6  ;;  %1385 = vperm.xlu0 %6304, %v5276_v9   ;;  %v1473_v14 = vadd.f32 %v1441_v38, %v1177_v35 }
 0x128   : > { %v2064_v28 = vadd.f32 %v2032_v24, %v1768_v39  ;;  %v1770_v8 = vadd.f32 %v1738_v48, %v1474_v7  ;;  %v5244_v24 = vld [vmem:[%s6379_s29 + $0x302] ss:$4 sm:$0xff] }
 0x129   : > { %v2063_v13 = vadd.f32 %v2031_v4, %v1767_v34  ;;  %v1883_v60 = vpop.permute.xlu1 %1882  ;;  %v1769_v52 = vadd.f32 %v1737_v12, %v1473_v14  ;;  %v5337_v4 = vld [vmem:[%s6379_s29 + $0x1e5] ss:$4 sm:$0xff]  ;;  %v5245_v34 = vld [vmem:[%s6379_s29 + $0x322] ss:$4 sm:$0xff] }
 0x12a   : > { %v1878_v29 = vpop.permute.xlu0 %1877  ;;  %vm2096_vm1 = vcmp.gt.f32.partialorder %v2064_v28, 0.0  ;;  %v2128_v49 = vmul.f32 0.2, %v2064_v28  ;;  %1932 = vperm.xlu1 %6305, %v5335_v33   ;;  %v2034_v19 = vmul.f32 %v6807_v5, %v1883_v60  ;;  %v5305_v60 = vld [vmem:[%s6379_s29 + $0x224] ss:$4 sm:$0xff] }
 0x12b   : > { %vm2095_vm2 = vcmp.gt.f32.partialorder %v2063_v13, 0.0  ;;  %v2127_v36 = vmul.f32 0.2, %v2063_v13  ;;  %1927 = vperm.xlu0 %6304, %v5334_v15   ;;  %v2033_v9 = vmul.f32 %v6807_v5, %v1878_v29  ;;  %v5304_v29 = vld [vmem:[%s6379_s29 + $0x204] ss:$4 sm:$0xff] }
 0x12c   : > { %v2160_v45 = vsel %vm2096_vm1, %v2064_v28, %v2128_v49  ;;  %v2066_v38 = vadd.f32 %v2034_v19, %v1770_v8  ;;  %v5247_v28 = vld [vmem:[%s6379_s29 + $0x362] ss:$4 sm:$0xff]  ;;  %v852_v19 = vmul.f32 %v6734_v41, %v6481_v25  ;;  %v1148_v25 = vmul.f32 %v6743_v3, %v6569_v42 }
 0x12d   : > { %v2159_v1 = vsel %vm2095_vm2, %v2063_v13, %v2127_v36  ;;  %2192 = vst.msk [vmem:[#allocation2 + $0x9] sm:$0xff] %vm275_vm0, %v2160_v45  ;;  %v2065_v39 = vadd.f32 %v2033_v9, %v1769_v52  ;;  %v6829_v10 = vpop.permute.xlu1 %492  ;;  %v5246_v13 = vld [vmem:[%s6379_s29 + $0x342] ss:$4 sm:$0xff]  ;;  %v851_v9 = vmul.f32 %v6734_v41, %v6483_v26  ;;  %v1147_v26 = vmul.f32 %v6743_v3, %v6571_v43 }
 0x12e   : > { %2191 = vst.msk [vmem:[#allocation2 + $0x1] sm:$0xff] %vm275_vm0, %v2159_v1  ;;  %v6831_v6 = vpop.permute.xlu0 %487  ;;  %1942 = vperm.xlu1 %6305, %v5337_v4   ;;  %vm2098_vm3 = vcmp.gt.f32.partialorder %v2066_v38, 0.0  ;;  %v2130_v2 = vmul.f32 0.2, %v2066_v38  ;;  %v5307_v4 = vld [vmem:[%s6379_s29 + $0x264] ss:$4 sm:$0xff]  ;;  %v558_v42 = vmul.f32 %v6748_v20, %v6475_v21  ;;  %v557_v43 = vmul.f32 %v6748_v20, %v6477_v22 }
 0x12f   : > { %1937 = vperm.xlu0 %6304, %v5336_v57   ;;  %vm2097_vm4 = vcmp.gt.f32.partialorder %v2065_v39, 0.0  ;;  %v2129_v35 = vmul.f32 0.2, %v2065_v39  ;;  %v5306_v57 = vld [vmem:[%s6379_s29 + $0x244] ss:$4 sm:$0xff]  ;;  %v1740_v21 = vmul.f32 %v6776_v37, %v6701_v56  ;;  %v1739_v22 = vmul.f32 %v6776_v37, %v6703_v53 }
 0x130   : > { %v2162_v48 = vsel %vm2098_vm3, %v2066_v38, %v2130_v2  ;;  %v556_v38 = vmul.f32 %v6748_v20, %v6469_v17  ;;  %v1443_v17 = vmul.f32 %v6759_v44, %v6655_v0  ;;  %v1445_v56 = vmul.f32 %v6759_v44, %v6661_v16 }
 0x131   : > { %v2161_v12 = vsel %vm2097_vm4, %v2065_v39, %v2129_v35  ;;  %v6835_v33 = vpop.permute.xlu1 %502  ;;  %2194 = vst.msk [vmem:[#allocation2 + $0x19] sm:$0xff] %vm275_vm0, %v2162_v48  ;;  %v555_v39 = vmul.f32 %v6748_v20, %v6471_v18  ;;  %v1444_v35 = vmul.f32 %v6759_v44, %v6653_v61  ;;  %v5249_v18 = vld [vmem:[%s6379_s29 + $0x3a2] ss:$4 sm:$0xff]  ;;  %v1742_v53 = vmul.f32 %v6776_v37, %v6707_v27 }
 0x132   : > { %v6837_v15 = vpop.permute.xlu0 %497  ;;  %2193 = vst.msk [vmem:[#allocation2 + $0x11] sm:$0xff] %vm275_vm0, %v2161_v12  ;;  %1104 = vperm.xlu1 %6305, %v5245_v34   ;;  %v854_v34 = vmul.f32 %v6734_v41, %v6551_v30  ;;  %v5248_v48 = vld [vmem:[%s6379_s29 + $0x382] ss:$4 sm:$0xff]  ;;  %v853_v30 = vmul.f32 %v6734_v41, %v6553_v31  ;;  %v1150_v12 = vmul.f32 %v6743_v3, %v6575_v46 }
 0x133   : > { %1099 = vperm.xlu0 %6304, %v5244_v24   ;;  %v884_v24 = vadd.f32 %v852_v19, %v556_v38  ;;  %v883_v2 = vadd.f32 %v851_v9, %v555_v39  ;;  %v1149_v31 = vmul.f32 %v6743_v3, %v6577_v47  ;;  %v5250_v19 = vld [vmem:[%s6379_s29 + $0x3c2] ss:$4 sm:$0xff] }
 0x134   : > { %v885_v9 = vadd.f32 %v853_v30, %v557_v43 }
 0x135   : > { %v6843_v7 = vpop.permute.xlu1 %788  ;;  %v1180_v0 = vadd.f32 %v1148_v25, %v884_v24  ;;  %v1741_v24 = vmul.f32 %v6776_v37, %v6709_v40 }
 0x136   : > { %v6845_v14 = vpop.permute.xlu0 %783  ;;  %1114 = vperm.xlu1 %6305, %v5247_v28  }
 0x137   : > { %1109 = vperm.xlu0 %6304, %v5246_v13   ;;  %v1179_v13 = vadd.f32 %v1147_v26, %v883_v2  ;;  %v1476_v46 = vadd.f32 %v1444_v35, %v1180_v0  ;;  %v1181_v26 = vadd.f32 %v1149_v31, %v885_v9  ;;  %v5309_v35 = vld [vmem:[%s6379_s29 + $0x2a4] ss:$4 sm:$0xff]  ;;  %v5279_v9 = vld [vmem:[%s6379_s29 + $0x323] ss:$4 sm:$0xff] }
 0x139   : > { %v6849_v49 = vpop.permute.xlu1 %798  ;;  %v2242_v36 = vld [vmem:[#allocation2 + $0x1] ss:$4 sm:$0xff]  ;;  %v2224_v8 = vld [vmem:[#allocation2] ss:$4 sm:$0xff]  ;;  %v1772_v38 = vadd.f32 %v1740_v21, %v1476_v46  ;;  %v1477_v27 = vadd.f32 %v1445_v56, %v1181_v26 }
 0x13a   : > { %v6851_v52 = vpop.permute.xlu0 %793  ;;  %5830 = vmatprep.mubr.msk.f32.mxu0 %vm275_vm0, %v2242_v36  ;;  %5846 = vmatprep.mubr.msk.f32.mxu1 %vm275_vm0, %v2224_v8  ;;  %v1475_v36 = vadd.f32 %v1443_v17, %v1179_v13  ;;  %v5251_v8 = vld [vmem:[%s6379_s29 + $0x3e2] ss:$4 sm:$0xff]  ;;  %v5308_v17 = vld [vmem:[%s6379_s29 + $0x284] ss:$4 sm:$0xff]  ;;  %v5339_v26 = vld [vmem:[%s6379_s29 + $0x225] ss:$4 sm:$0xff] }
 0x13b   : > { %1656 = vperm.xlu1 %6305, %v5305_v60   ;;  %1651 = vperm.xlu0 %6304, %v5304_v29   ;;  %v886_v60 = vadd.f32 %v854_v34, %v558_v42  ;;  %v1446_v29 = vmul.f32 %v6759_v44, %v6659_v11 }
 0x13c   : > { %v1771_v11 = vadd.f32 %v1739_v22, %v1475_v36  ;;  %v5311_v22 = vld [vmem:[%s6379_s29 + $0x2e4] ss:$4 sm:$0xff] }
 0x13d   : > { %v6861_v45 = vpop.permute.xlu1 %1340 }
 0x13e   : > { %v6863_v1 = vpop.permute.xlu0 %1335 }
 0x13f   : > { %1666 = vperm.xlu1 %6305, %v5307_v4   ;;  %1661 = vperm.xlu0 %6304, %v5306_v57   ;;  %v1182_v4 = vadd.f32 %v1150_v12, %v886_v60  ;;  %v1773_v12 = vadd.f32 %v1741_v24, %v1477_v27  ;;  %v5310_v60 = vld [vmem:[%s6379_s29 + $0x2c4] ss:$4 sm:$0xff]  ;;  %v5340_v27 = vld [vmem:[%s6379_s29 + $0x245] ss:$4 sm:$0xff] }
 0x141   : > { %v6889_v61 = vpop.permute.xlu1 %1350  ;;  %v1478_v34 = vadd.f32 %v1446_v29, %v1182_v4  ;;  %v5278_v4 = vld [vmem:[%s6379_s29 + $0x303] ss:$4 sm:$0xff] }
 0x142   : > { %v6891_v28 = vpop.permute.xlu0 %1345 }
 0x143   : > { %8142 = vst [vmem:[#allocation31_spill] sm:$0xff] %v6891_v28  ;;  %1124 = vperm.xlu1 %6305, %v5249_v18   ;;  %1119 = vperm.xlu0 %6304, %v5248_v48   ;;  %v1774_v18 = vadd.f32 %v1742_v53, %v1478_v34  ;;  %v5338_v34 = vld [vmem:[%s6379_s29 + $0x205] ss:$4 sm:$0xff] }
 0x145   : > { %v1893_v47 = vpop.permute.xlu1 %1892 }
 0x146   : > { %v1888_v57 = vpop.permute.xlu0 %1887  ;;  %v2036_v39 = vmul.f32 %v6807_v5, %v1893_v47 }
 0x147   : > { %v2035_v25 = vmul.f32 %v6807_v5, %v1888_v57  ;;  %1134 = vperm.xlu1 %6305, %v5251_v8   ;;  %1129 = vperm.xlu0 %6304, %v5250_v19  }
 0x148   : > { %v2068_v16 = vadd.f32 %v2036_v39, %v1772_v38  ;;  %v5281_v38 = vld [vmem:[%s6379_s29 + $0x363] ss:$4 sm:$0xff] }
 0x149   : > { %v2067_v2 = vadd.f32 %v2035_v25, %v1771_v11  ;;  %v1903_v48 = vpop.permute.xlu1 %1902  ;;  %v5280_v11 = vld [vmem:[%s6379_s29 + $0x343] ss:$4 sm:$0xff] }
 0x14a   : > { %v1898_v42 = vpop.permute.xlu0 %1897  ;;  %vm2100_vm5 = vcmp.gt.f32.partialorder %v2068_v16, 0.0  ;;  %v2132_v43 = vmul.f32 0.2, %v2068_v16  ;;  %v2038_v0 = vmul.f32 %v6807_v5, %v1903_v48 }
 0x14b   : > { %vm2099_vm6 = vcmp.gt.f32.partialorder %v2067_v2, 0.0  ;;  %v2131_v30 = vmul.f32 0.2, %v2067_v2  ;;  %v2037_v40 = vmul.f32 %v6807_v5, %v1898_v42  ;;  %1676 = vperm.xlu1 %6305, %v5309_v35   ;;  %1671 = vperm.xlu0 %6304, %v5308_v17   ;;  %v5341_v17 = vld [vmem:[%s6379_s29 + $0x265] ss:$4 sm:$0xff] }
 0x14c   : > { %v2164_v13 = vsel %vm2100_vm5, %v2068_v16, %v2132_v43  ;;  %v2070_v31 = vadd.f32 %v2038_v0, %v1774_v18  ;;  %v5283_v42 = vld [vmem:[%s6379_s29 + $0x3a3] ss:$4 sm:$0xff] }
 0x14d   : > { %v2163_v21 = vsel %vm2099_vm6, %v2067_v2, %v2131_v30  ;;  %2196 = vst.msk [vmem:[#allocation2 + $0x29] sm:$0xff] %vm275_vm0, %v2164_v13  ;;  %v2069_v29 = vadd.f32 %v2037_v40, %v1773_v12  ;;  %v6919_v46 = vpop.permute.xlu1 %1064  ;;  %v5282_v43 = vld [vmem:[%s6379_s29 + $0x383] ss:$4 sm:$0xff] }
 0x14e   : > { %2195 = vst.msk [vmem:[#allocation2 + $0x21] sm:$0xff] %vm275_vm0, %v2163_v21  ;;  %v6921_v36 = vpop.permute.xlu0 %1059  ;;  %vm2102_vm7 = vcmp.gt.f32.partialorder %v2070_v31, 0.0  ;;  %v2134_v8 = vmul.f32 0.2, %v2070_v31  ;;  %v5285_v0 = vld [vmem:[%s6379_s29 + $0x3e3] ss:$4 sm:$0xff] }
 0x14f   : > { %vm2101_vm8 = vcmp.gt.f32.partialorder %v2069_v29, 0.0  ;;  %v2133_v19 = vmul.f32 0.2, %v2069_v29  ;;  %1686 = vperm.xlu1 %6305, %v5311_v22   ;;  %1681 = vperm.xlu0 %6304, %v5310_v60   ;;  %v5284_v40 = vld [vmem:[%s6379_s29 + $0x3c3] ss:$4 sm:$0xff] }
 0x150   : > { %v2166_v56 = vsel %vm2102_vm7, %v2070_v31, %v2134_v8  ;;  %v5343_v22 = vld [vmem:[%s6379_s29 + $0x2a5] ss:$4 sm:$0xff] }
 0x151   : > { %v2165_v53 = vsel %vm2101_vm8, %v2069_v29, %v2133_v19  ;;  %v6925_v47 = vpop.permute.xlu1 %1074  ;;  %2198 = vst.msk [vmem:[#allocation2 + $0x39] sm:$0xff] %vm275_vm0, %v2166_v56  ;;  %v5342_v60 = vld [vmem:[%s6379_s29 + $0x285] ss:$4 sm:$0xff]  ;;  %v5313_v56 = vld [vmem:[%s6379_s29 + $0x324] ss:$4 sm:$0xff] }
 0x152   : > { %v6927_v57 = vpop.permute.xlu0 %1069  ;;  %2197 = vst.msk [vmem:[#allocation2 + $0x31] sm:$0xff] %vm275_vm0, %v2165_v53  ;;  %v5345_v8 = vld [vmem:[%s6379_s29 + $0x2e5] ss:$4 sm:$0xff]  ;;  %v5312_v53 = vld [vmem:[%s6379_s29 + $0x304] ss:$4 sm:$0xff] }
 0x153   : > { %1400 = vperm.xlu1 %6305, %v5279_v9   ;;  %1395 = vperm.xlu0 %6304, %v5278_v4   ;;  %v5344_v19 = vld [vmem:[%s6379_s29 + $0x2c5] ss:$4 sm:$0xff] }
 0x155   : > { %v6933_v39 = vpop.permute.xlu1 %1616 }
 0x156   : > { %v6935_v25 = vpop.permute.xlu0 %1611 }
 0x157   : > { %1410 = vperm.xlu1 %6305, %v5281_v38   ;;  %1405 = vperm.xlu0 %6304, %v5280_v11   ;;  %v856_v38 = vmul.f32 %v6734_v41, %v6593_v58  ;;  %v855_v11 = vmul.f32 %v6734_v41, %v6595_v59  ;;  %v6989_v58 = vmul.f32 %v6748_v20, %v6589_v55 }
 0x158   : > { %v7001_v55 = vmul.f32 %v6734_v41, %v6601_v63 }
 0x159   : > { %v6939_v24 = vpop.permute.xlu1 %1626  ;;  %v2244_v16 = vld [vmem:[#allocation2 + $0x21] ss:$4 sm:$0xff]  ;;  %v2226_v2 = vld [vmem:[#allocation2 + $0x20] ss:$4 sm:$0xff] }
 0x15a   : > { %v6941_v35 = vpop.permute.xlu0 %1621  ;;  %5831 = vmatmul.mubr.msk.f32.vlgmr.msra.gmra.mxu0 %vm275_vm0, %v2244_v16  ;;  %5847 = vmatmul.mubr.msk.f32.vlgmr.msra.gmra.mxu1 %vm275_vm0, %v2226_v2  ;;  %v560_v16 = vmul.f32 %v6748_v20, %v6581_v50  ;;  %v559_v2 = vmul.f32 %v6748_v20, %v6583_v51 }
 0x15b   : > { %1952 = vperm.xlu1 %6305, %v5339_v26   ;;  %1947 = vperm.xlu0 %6304, %v5338_v34  }
 0x15c   : > { %v888_v59 = vadd.f32 %v856_v38, %v560_v16  ;;  %v8149_v16 = vld [vmem:[#allocation20_spill] sm:$0xff] }
 0x15d   : > { %v6947_v18 = vpop.permute.xlu1 %1084  ;;  %v568_v63 = vmul.f32 %v6748_v20, %v8149_v16  ;;  %v8152_v16 = vld [vmem:[#allocation26_spill] sm:$0xff] }
 0x15e   : > { %v6949_v48 = vpop.permute.xlu0 %1079 }
 0x15f   : > { %1962 = vperm.xlu1 %6305, %v5341_v17   ;;  %1957 = vperm.xlu0 %6304, %v5340_v27   ;;  %v5315_v17 = vld [vmem:[%s6379_s29 + $0x364] ss:$4 sm:$0xff] }
 0x160   : > { %v5314_v27 = vld [vmem:[%s6379_s29 + $0x344] ss:$4 sm:$0xff] }
 0x161   : > { %v6953_v30 = vpop.permute.xlu1 %1094 }
 0x162   : > { %v6955_v12 = vpop.permute.xlu0 %1089 }
 0x163   : > { %1420 = vperm.xlu1 %6305, %v5283_v42   ;;  %1415 = vperm.xlu0 %6304, %v5282_v43   ;;  %v6985_v42 = vmul.f32 %v6748_v20, %v6587_v54  ;;  %v887_v43 = vadd.f32 %v855_v11, %v559_v2  ;;  %v6997_v54 = vmul.f32 %v6734_v41, %v6599_v62  ;;  %v5317_v62 = vld [vmem:[%s6379_s29 + $0x3a4] ss:$4 sm:$0xff] }
 0x164   : > { %v5316_v11 = vld [vmem:[%s6379_s29 + $0x384] ss:$4 sm:$0xff] }
 0x165   : > { %v6959_v13 = vpop.permute.xlu1 %1636  ;;  %v8150_v2 = vld [vmem:[#allocation21_spill] sm:$0xff] }
 0x166   : > { %v6961_v21 = vpop.permute.xlu0 %1631 }
 0x167   : > { %1430 = vperm.xlu1 %6305, %v5285_v0   ;;  %1425 = vperm.xlu0 %6304, %v5284_v40  }
 0x169   : > { %v6965_v31 = vpop.permute.xlu1 %1646 }
 0x16a   : > { %8143 = vst [vmem:[#allocation32_spill] sm:$0xff] %v6965_v31  ;;  %v6967_v29 = vpop.permute.xlu0 %1641 }
 0x16b   : > { %8144 = vst [vmem:[#allocation33_spill] sm:$0xff] %v6967_v29  ;;  %1972 = vperm.xlu1 %6305, %v5343_v22   ;;  %1967 = vperm.xlu0 %6304, %v5342_v60   ;;  %v5318_v29 = vld [vmem:[%s6379_s29 + $0x3c4] ss:$4 sm:$0xff] }
 0x16d   : > { %v513_v9 = vpop.permute.xlu1 %512 }
 0x16e   : > { %v508_v4 = vpop.permute.xlu0 %507  ;;  %v576_v51 = vmul.f32 %v6748_v20, %v513_v9 }
 0x16f   : > { %1982 = vperm.xlu1 %6305, %v5345_v8   ;;  %1977 = vperm.xlu0 %6304, %v5344_v19   ;;  %v575_v40 = vmul.f32 %v6748_v20, %v508_v4  ;;  %v1152_v8 = vmul.f32 %v6743_v3, %v6665_v23  ;;  %v8145_v19 = vld [vmem:[#allocation24_spill] sm:$0xff]  ;;  %v8146_v4 = vld [vmem:[#allocation25_spill] sm:$0xff]  ;;  %v567_v23 = vmul.f32 %v6748_v20, %v8150_v2  ;;  %v8153_v2 = vld [vmem:[#allocation27_spill] sm:$0xff] }
 0x170   : > { %v864_v9 = vmul.f32 %v6734_v41, %v8145_v19  ;;  %v8151_v19 = vld [vmem:[#allocation13_spill] sm:$0xff] }
 0x171   : > { %v523_v26 = vpop.permute.xlu1 %522 }
 0x172   : > { %v518_v34 = vpop.permute.xlu0 %517 }
 0x173   : > { %1696 = vperm.xlu1 %6305, %v5313_v56   ;;  %1691 = vperm.xlu0 %6304, %v5312_v53   ;;  %v863_v56 = vmul.f32 %v6734_v41, %v8146_v4  ;;  %v1151_v4 = vmul.f32 %v6743_v3, %v8151_v19  ;;  %v8156_v19 = vld [vmem:[#allocation23_spill] sm:$0xff] }
 0x174   : > { %v569_v28 = vmul.f32 %v6748_v20, %v8156_v19 }
 0x175   : > { %v809_v0 = vpop.permute.xlu1 %808 }
 0x176   : > { %v804_v50 = vpop.permute.xlu0 %803  ;;  %v872_v22 = vmul.f32 %v6734_v41, %v809_v0 }
 0x177   : > { %v871_v60 = vmul.f32 %v6734_v41, %v804_v50  ;;  %1706 = vperm.xlu1 %6305, %v5315_v17   ;;  %1701 = vperm.xlu0 %6304, %v5314_v27   ;;  %v1160_v17 = vmul.f32 %v6743_v3, %v6919_v46  ;;  %v1159_v27 = vmul.f32 %v6743_v3, %v6921_v36 }
 0x178   : > { %v7009_v53 = vadd.f32 %v872_v22, %v576_v51  ;;  %v578_v51 = vmul.f32 %v6748_v20, %v523_v26  ;;  %v866_v46 = vmul.f32 %v6734_v41, %v8152_v16  ;;  %v865_v36 = vmul.f32 %v6734_v41, %v8153_v2  ;;  %v8157_v2 = vld [vmem:[#allocation28_spill] sm:$0xff] }
 0x179   : > { %v7011_v38 = vadd.f32 %v871_v60, %v575_v40  ;;  %v819_v0 = vpop.permute.xlu1 %818  ;;  %v577_v40 = vmul.f32 %v6748_v20, %v518_v34  ;;  %v1162_v16 = vmul.f32 %v6743_v3, %v6925_v47  ;;  %v1448_v47 = vmul.f32 %v6759_v44, %v8157_v2 }
 0x17a   : > { %8147 = vst [vmem:[#allocation24_spill] sm:$0xff] %v7009_v53  ;;  %v814_v50 = vpop.permute.xlu0 %813  ;;  %v874_v22 = vmul.f32 %v6734_v41, %v819_v0  ;;  %v895_v53 = vadd.f32 %v863_v56, %v567_v23  ;;  %v5319_v0 = vld [vmem:[%s6379_s29 + $0x3e4] ss:$4 sm:$0xff] }
 0x17b   : > { %8148 = vst [vmem:[#allocation25_spill] sm:$0xff] %v7011_v38  ;;  %v873_v60 = vmul.f32 %v6734_v41, %v814_v50  ;;  %1716 = vperm.xlu1 %6305, %v5317_v62   ;;  %1711 = vperm.xlu0 %6304, %v5316_v11   ;;  %v896_v38 = vadd.f32 %v864_v9, %v568_v63  ;;  %v8155_v50 = vld [vmem:[#allocation22_spill] sm:$0xff] }
 0x17c   : > { %v7033_v26 = vadd.f32 %v874_v22, %v578_v51  ;;  %v570_v31 = vmul.f32 %v6748_v20, %v8155_v50  ;;  %v1161_v62 = vmul.f32 %v6743_v3, %v6927_v57  ;;  %v1191_v63 = vadd.f32 %v1159_v27, %v895_v53  ;;  %v8158_v50 = vld [vmem:[#allocation29_spill] sm:$0xff]  ;;  %v8159_v27 = vld [vmem:[#allocation14_spill] sm:$0xff] }
 0x17d   : > { %v7035_v34 = vadd.f32 %v873_v60, %v577_v40  ;;  %v1361_v9 = vpop.permute.xlu1 %1360  ;;  %v1192_v11 = vadd.f32 %v1160_v17, %v896_v38  ;;  %v1184_v40 = vadd.f32 %v1152_v8, %v888_v59  ;;  %v897_v60 = vadd.f32 %v865_v36, %v569_v28  ;;  %v5347_v53 = vld [vmem:[%s6379_s29 + $0x325] ss:$4 sm:$0xff] }
 0x17e   : > { %v1356_v56 = vpop.permute.xlu0 %1355  ;;  %v1456_v23 = vmul.f32 %v6759_v44, %v1361_v9  ;;  %v898_v22 = vadd.f32 %v866_v46, %v570_v31  ;;  %v1447_v57 = vmul.f32 %v6759_v44, %v8158_v50  ;;  %v5346_v38 = vld [vmem:[%s6379_s29 + $0x305] ss:$4 sm:$0xff]  ;;  %v1183_v17 = vadd.f32 %v1151_v4, %v887_v43 }
 0x17f   : > { %8154 = vst [vmem:[#allocation20_spill] sm:$0xff] %v7035_v34  ;;  %v1455_v51 = vmul.f32 %v6759_v44, %v1356_v56  ;;  %1726 = vperm.xlu1 %6305, %v5319_v0   ;;  %1721 = vperm.xlu0 %6304, %v5318_v29   ;;  %v1154_v59 = vmul.f32 %v6743_v3, %v8159_v27  ;;  %v8160_v4 = vld [vmem:[#allocation15_spill] sm:$0xff] }
 0x180   : > { %v7053_v19 = vadd.f32 %v1456_v23, %v1192_v11  ;;  %v1194_v31 = vadd.f32 %v1162_v16, %v898_v22  ;;  %v1193_v28 = vadd.f32 %v1161_v62, %v897_v60  ;;  %v1744_v46 = vmul.f32 %v6776_v37, %v6933_v39  ;;  %v5348_v23 = vld [vmem:[%s6379_s29 + $0x345] ss:$4 sm:$0xff] }
 0x181   : > { %v7055_v34 = vadd.f32 %v1455_v51, %v1191_v63  ;;  %v1371_v29 = vpop.permute.xlu1 %1370  ;;  %v1743_v36 = vmul.f32 %v6776_v37, %v6935_v25  ;;  %v890_v43 = vadd.f32 %v6997_v54, %v6985_v42  ;;  %v1153_v16 = vmul.f32 %v6743_v3, %v8160_v4  ;;  %v5349_v63 = vld [vmem:[%s6379_s29 + $0x365] ss:$4 sm:$0xff] }
 0x182   : > { %v1366_v8 = vpop.permute.xlu0 %1365  ;;  %v1458_v0 = vmul.f32 %v6759_v44, %v1371_v29  ;;  %v1450_v62 = vmul.f32 %v6759_v44, %v6790_v32  ;;  %v1480_v56 = vadd.f32 %v1448_v47, %v1184_v40  ;;  %v1479_v39 = vadd.f32 %v1447_v57, %v1183_v17  ;;  %v8161_v54 = vld [vmem:[#allocation30_spill] sm:$0xff] }
 0x183   : > { %v1457_v9 = vmul.f32 %v6759_v44, %v1366_v8  ;;  %1992 = vperm.xlu1 %6305, %v5347_v53   ;;  %1987 = vperm.xlu0 %6304, %v5346_v38   ;;  %v889_v51 = vadd.f32 %v7001_v55, %v6989_v58  ;;  %v1186_v42 = vadd.f32 %v1154_v59, %v890_v43  ;;  %v5351_v27 = vld [vmem:[%s6379_s29 + $0x3a5] ss:$4 sm:$0xff] }
 0x184   : > { %v7073_v11 = vadd.f32 %v1458_v0, %v1194_v31  ;;  %v1449_v22 = vmul.f32 %v6759_v44, %v8161_v54  ;;  %v1746_v32 = vmul.f32 %v6776_v37, %v6939_v24  ;;  %v1776_v2 = vadd.f32 %v1744_v46, %v1480_v56  ;;  %v5350_v59 = vld [vmem:[%s6379_s29 + $0x385] ss:$4 sm:$0xff] }
 0x185   : > { %v7075_v25 = vadd.f32 %v1457_v9, %v1193_v28  ;;  %v1913_v40 = vpop.permute.xlu1 %1912  ;;  %v1775_v47 = vadd.f32 %v1743_v36, %v1479_v39  ;;  %v1185_v53 = vadd.f32 %v1153_v16, %v889_v51  ;;  %v1482_v38 = vadd.f32 %v1450_v62, %v1186_v42  ;;  %v5353_v4 = vld [vmem:[%s6379_s29 + $0x3e5] ss:$4 sm:$0xff] }
 0x186   : > { %v1908_v60 = vpop.permute.xlu0 %1907  ;;  %v2040_v50 = vmul.f32 %v6807_v5, %v1913_v40  ;;  %v1745_v58 = vmul.f32 %v6776_v37, %v6941_v35  ;;  %v5352_v16 = vld [vmem:[%s6379_s29 + $0x3c5] ss:$4 sm:$0xff]  ;;  %v8162_v42 = vmov 0.0  }
 0x187   : > { %v2039_v57 = vmul.f32 %v6807_v5, %v1908_v60  ;;  %2002 = vperm.xlu1 %6305, %v5349_v63   ;;  %1997 = vperm.xlu0 %6304, %v5348_v23   ;;  %v1481_v24 = vadd.f32 %v1449_v22, %v1185_v53  ;;  %v1778_v31 = vadd.f32 %v1746_v32, %v1482_v38  ;;  %v8163_v60 = vld [vmem:[#allocation9_spill] sm:$0xff]  ;;  %v5385_v53 = vld [vmem:[%s8108_s2 + $0x38] sm:$0xff] }
 0x188   : > { %v2072_v55 = vadd.f32 %v2040_v50, %v1776_v2  ;;  %309 = vst.msk [vmem:[#allocation2 + $0x100] sm:$0x3] %vm308_vm11, %v8162_v42  ;;  %v860_v2 = vmul.f32 %v6734_v41, %v8163_v60  ;;  %v5374_v38 = vld [vmem:[%s8108_s2 + $0x20] sm:$0xff]  ;;  %5874 = vmatprep.subr.mxu1 %v5385_v53  ;;  %v870_v60 = vmul.f32 %v6734_v41, %v6849_v49 }
 0x189   : > { %v2071_v17 = vadd.f32 %v2039_v57, %v1775_v47  ;;  %v1923_v28 = vpop.permute.xlu1 %1922  ;;  %v1777_v36 = vadd.f32 %v1745_v58, %v1481_v24  ;;  %v8164_v47 = vld [vmem:[#allocation10_spill] sm:$0xff]  ;;  %v5384_v58 = vld [vmem:[%s8108_s2 + $0x30] sm:$0xff]  ;;  %5875 = vmatpush3.msra.mxu1 %v5385_v53  ;;  %v574_v53 = vmul.f32 %v6748_v20, %v6835_v33  ;;  %v1165_v49 = vmul.f32 %v6743_v3, %v6955_v12 }
 0x18a   : > { %v1918_v29 = vpop.permute.xlu0 %1917  ;;  %vm2104_vm9 = vcmp.gt.f32.partialorder %v2072_v55, 0.0  ;;  %v2136_v8 = vmul.f32 0.2, %v2072_v55  ;;  %v2042_v0 = vmul.f32 %v6807_v5, %v1923_v28  ;;  %v859_v50 = vmul.f32 %v6734_v41, %v8164_v47  ;;  %v5375_v57 = vld [vmem:[%s8108_s2 + $0x28] sm:$0xff]  ;;  %5876 = vmatprep.subr.mxu1 %v5384_v58 }
 0x18b   : > { %vm2103_vm10 = vcmp.gt.f32.partialorder %v2071_v17, 0.0  ;;  %v2135_v46 = vmul.f32 0.2, %v2071_v17  ;;  %v2041_v35 = vmul.f32 %v6807_v5, %v1918_v29  ;;  %2012 = vperm.xlu1 %6305, %v5351_v27   ;;  %2007 = vperm.xlu0 %6304, %v5350_v59   ;;  %v8166_v27 = vld [vmem:[#allocation6_spill] sm:$0xff] }
 0x18c   : > { %v2168_v9 = vsel %vm2104_vm9, %v2072_v55, %v2136_v8  ;;  %v2074_v62 = vadd.f32 %v2042_v0, %v1778_v31  ;;  %5858 = vmatprep.subr.mxu0 %v5375_v57  ;;  %v8165_v55 = vld [vmem:[#allocation5_spill] sm:$0xff]  ;;  %v563_v59 = vmul.f32 %v6748_v20, %v8166_v27  ;;  %5877 = vmatpush3.msra.mxu1 %v5384_v58 }
 0x18d   : > { %v2167_v43 = vsel %vm2103_vm10, %v2071_v17, %v2135_v46  ;;  %2200 = vst.msk [vmem:[#allocation2 + $0x49] sm:$0xff] %vm275_vm0, %v2168_v9  ;;  %v2073_v56 = vadd.f32 %v2041_v35, %v1777_v36  ;;  %v533_v39 = vpop.permute.xlu1 %532  ;;  %v564_v17 = vmul.f32 %v6748_v20, %v8165_v55  ;;  %5859 = vmatpush3.msra.mxu0 %v5375_v57 }
 0x18e   : > { %2199 = vst.msk [vmem:[#allocation2 + $0x41] sm:$0xff] %vm275_vm0, %v2167_v43  ;;  %v528_v63 = vpop.permute.xlu0 %527  ;;  %vm2106_vm12 = vcmp.gt.f32.partialorder %v2074_v62, 0.0  ;;  %v2138_v23 = vmul.f32 0.2, %v2074_v62  ;;  %v580_v24 = vmul.f32 %v6748_v20, %v533_v39  ;;  %5860 = vmatprep.subr.mxu0 %v5374_v38  ;;  %v891_v0 = vadd.f32 %v859_v50, %v563_v59 }
 0x18f   : > { %vm2105_vm13 = vcmp.gt.f32.partialorder %v2073_v56, 0.0  ;;  %v2137_v51 = vmul.f32 0.2, %v2073_v56  ;;  %2022 = vperm.xlu1 %6305, %v5353_v4   ;;  %2017 = vperm.xlu0 %6304, %v5352_v16   ;;  %v579_v29 = vmul.f32 %v6748_v20, %v528_v63  ;;  %v892_v36 = vadd.f32 %v860_v2, %v564_v17  ;;  %v7169_v17 = vld [vmem:[%s8108_s2 + $0x48] sm:$0xff] }
 0x190   : > { %v2170_v54 = vsel %vm2106_vm12, %v2074_v62, %v2138_v23  ;;  %v572_v35 = vmul.f32 %v6748_v20, %v6829_v10  ;;  %5861 = vmatpush3.msra.mxu0 %v5374_v38  ;;  %v868_v9 = vmul.f32 %v6734_v41, %v6843_v7  ;;  %v867_v43 = vmul.f32 %v6734_v41, %v6845_v14 }
 0x191   : > { %v2169_v22 = vsel %vm2105_vm13, %v2073_v56, %v2137_v51  ;;  %v543_v32 = vpop.permute.xlu1 %542  ;;  %2202 = vst.msk [vmem:[#allocation2 + $0x59] sm:$0xff] %vm275_vm0, %v2170_v54  ;;  %v571_v62 = vmul.f32 %v6748_v20, %v6831_v6  ;;  %v1164_v56 = vmul.f32 %v6743_v3, %v6947_v18  ;;  %v1163_v10 = vmul.f32 %v6743_v3, %v6949_v48  ;;  %v8167_v18 = vld [vmem:[#allocation16_spill] sm:$0xff]  ;;  %v8168_v48 = vld [vmem:[#allocation17_spill] sm:$0xff] }
 0x192   : > { %v538_v40 = vpop.permute.xlu0 %537  ;;  %2201 = vst.msk [vmem:[#allocation2 + $0x51] sm:$0xff] %vm275_vm0, %v2169_v22  ;;  %v582_v39 = vmul.f32 %v6748_v20, %v543_v32  ;;  %v1156_v22 = vmul.f32 %v6743_v3, %v8167_v18  ;;  %v1155_v32 = vmul.f32 %v6743_v3, %v8168_v48  ;;  %v900_v2 = vadd.f32 %v868_v9, %v572_v35  ;;  %v8174_v18 = vld [vmem:[#allocation19_spill] sm:$0xff] }
 0x193   : > { %v581_v14 = vmul.f32 %v6748_v20, %v538_v40  ;;  %v869_v40 = vmul.f32 %v6734_v41, %v6851_v52  ;;  %v899_v47 = vadd.f32 %v867_v43, %v571_v62  ;;  %v573_v38 = vmul.f32 %v6748_v20, %v6837_v15  ;;  %5890 = vmatprep.subr.mxu0 %v7169_v17  ;;  %v8169_v15 = vld [vmem:[#allocation11_spill] sm:$0xff] }
 0x194   : > { %v1166_v58 = vmul.f32 %v6743_v3, %v6953_v30  ;;  %v1196_v27 = vadd.f32 %v1164_v56, %v900_v2  ;;  %v862_v30 = vmul.f32 %v6734_v41, %v8169_v15  ;;  %v1188_v43 = vadd.f32 %v1156_v22, %v892_v36 }
 0x195   : > { %v829_v31 = vpop.permute.xlu1 %828  ;;  %v1195_v59 = vadd.f32 %v1163_v10, %v899_v47  ;;  %v1187_v62 = vadd.f32 %v1155_v32, %v891_v0  ;;  %v8171_v0 = vld [vmem:[#allocation7_spill] sm:$0xff]  ;;  %v1454_v2 = vmul.f32 %v6759_v44, %v6889_v61 }
 0x196   : > { %v824_v28 = vpop.permute.xlu0 %823  ;;  %v876_v8 = vmul.f32 %v6734_v41, %v829_v31  ;;  %v8170_v31 = vld [vmem:[#allocation12_spill] sm:$0xff]  ;;  %v8175_v47 = vld [vmem:[#allocation31_spill] sm:$0xff] }
 0x197   : > { %v875_v46 = vmul.f32 %v6734_v41, %v824_v28  ;;  %v861_v12 = vmul.f32 %v6734_v41, %v8170_v31  ;;  %v902_v28 = vadd.f32 %v870_v60, %v574_v53 }
 0x198   : > { %v7130_v4 = vadd.f32 %v876_v8, %v580_v24  ;;  %v1452_v8 = vmul.f32 %v6759_v44, %v6861_v45  ;;  %v1748_v45 = vmul.f32 %v6776_v37, %v6959_v13  ;;  %v1157_v13 = vmul.f32 %v6743_v3, %v8174_v18 }
 0x199   : > { %v7132_v16 = vadd.f32 %v875_v46, %v579_v29  ;;  %v839_v63 = vpop.permute.xlu1 %838  ;;  %v2246_v7 = vld [vmem:[#allocation2 + $0x41] ss:$4 sm:$0xff]  ;;  %v2228_v23 = vld [vmem:[#allocation2 + $0x40] ss:$4 sm:$0xff]  ;;  %v901_v29 = vadd.f32 %v869_v40, %v573_v38  ;;  %v1451_v46 = vmul.f32 %v6759_v44, %v6863_v1  ;;  %v1198_v56 = vadd.f32 %v1166_v58, %v902_v28 }
 0x19a   : > { %v834_v51 = vpop.permute.xlu0 %833  ;;  %v878_v54 = vmul.f32 %v6734_v41, %v839_v63  ;;  %5833 = vmatprep.mubr.msk.f32.mxu0 %vm275_vm0, %v2246_v7  ;;  %5849 = vmatprep.mubr.msk.f32.mxu1 %vm275_vm0, %v2228_v23  ;;  %v1747_v1 = vmul.f32 %v6776_v37, %v6961_v21  ;;  %v566_v23 = vmul.f32 %v6748_v20, %v8171_v0 }
 0x19b   : > { %v877_v6 = vmul.f32 %v6734_v41, %v834_v51  ;;  %v1197_v10 = vadd.f32 %v1165_v49, %v901_v29  ;;  %v7189_v41 = vld [vmem:[%s8108_s2 + $0x58] sm:$0xff]  ;;  %v1484_v22 = vadd.f32 %v1452_v8, %v1188_v43  ;;  %v1483_v21 = vadd.f32 %v1451_v46, %v1187_v62 }
 0x19c   : > { %v7154_v50 = vadd.f32 %v878_v54, %v582_v39  ;;  %5906 = vmatprep.subr.mxu1 %v7189_v41  ;;  %v8172_v51 = vld [vmem:[#allocation8_spill] sm:$0xff]  ;;  %v8173_v54 = vld [vmem:[#allocation18_spill] sm:$0xff]  ;;  %v894_v60 = vadd.f32 %v862_v30, %v566_v23 }
 0x19d   : > { %v7156_v57 = vadd.f32 %v877_v6, %v581_v14  ;;  %v1381_v55 = vpop.permute.xlu1 %1380  ;;  %v565_v14 = vmul.f32 %v6748_v20, %v8172_v51  ;;  %v1158_v6 = vmul.f32 %v6743_v3, %v8173_v54  ;;  %v1453_v20 = vmul.f32 %v6759_v44, %v8175_v47  ;;  %v8178_v51 = vld [vmem:[#allocation24_spill] sm:$0xff]  ;;  %v8179_v54 = vld [vmem:[#allocation25_spill] sm:$0xff] }
 0x19e   : > { %v1376_v52 = vpop.permute.xlu0 %1375  ;;  %v1460_v33 = vmul.f32 %v6759_v44, %v1381_v55  ;;  %v1780_v58 = vadd.f32 %v1748_v45, %v1484_v22  ;;  %v1779_v49 = vadd.f32 %v1747_v1, %v1483_v21  ;;  %v8180_v47 = vld [vmem:[#allocation20_spill] sm:$0xff] }
 0x19f   : > { %v1459_v24 = vmul.f32 %v6759_v44, %v1376_v52  ;;  %v893_v40 = vadd.f32 %v861_v12, %v565_v14  ;;  %v1190_v52 = vadd.f32 %v1158_v6, %v894_v60 }
 0x1a0   : > { %v7182_v35 = vadd.f32 %v1460_v33, %v1196_v27 }
 0x1a1   : > { %v7184_v9 = vadd.f32 %v1459_v24, %v1195_v59  ;;  %v1391_v39 = vpop.permute.xlu1 %1390  ;;  %v1189_v27 = vadd.f32 %v1157_v13, %v893_v40  ;;  %v8176_v59 = vld [vmem:[#allocation32_spill] sm:$0xff]  ;;  %v8177_v24 = vld [vmem:[#allocation33_spill] sm:$0xff]  ;;  %v1486_v31 = vadd.f32 %v1454_v2, %v1190_v52 }
 0x1a2   : > { %v1386_v63 = vpop.permute.xlu0 %1385  ;;  %v1462_v7 = vmul.f32 %v6759_v44, %v1391_v39  ;;  %v1750_v33 = vmul.f32 %v6776_v37, %v8176_v59  ;;  %v1749_v15 = vmul.f32 %v6776_v37, %v8177_v24 }
 0x1a3   : > { %v1461_v36 = vmul.f32 %v6759_v44, %v1386_v63  ;;  %v1485_v44 = vadd.f32 %v1453_v20, %v1189_v27 }
 0x1a4   : > { %v7206_v48 = vadd.f32 %v1462_v7, %v1198_v56  ;;  %v1782_v46 = vadd.f32 %v1750_v33, %v1486_v31  ;;  %v6310_v7 = vld [vmem:[%s8107_s1 + $0x2] ss:$0 sm:$0xff] }
 0x1a5   : > { %v7208_v32 = vadd.f32 %v1461_v36, %v1197_v10  ;;  %v1933_v53 = vpop.permute.xlu1 %1932  ;;  %v1781_v43 = vadd.f32 %v1749_v15, %v1485_v44 }
 0x1a6   : > { %v1928_v38 = vpop.permute.xlu0 %1927  ;;  %v2044_v3 = vmul.f32 %v6807_v5, %v1933_v53 }
 0x1a7   : > { %v2043_v55 = vmul.f32 %v6807_v5, %v1928_v38 }
 0x1a8   : > { %v2076_v61 = vadd.f32 %v2044_v3, %v1780_v58 }
 0x1a9   : > { %v2075_v30 = vadd.f32 %v2043_v55, %v1779_v49  ;;  %v1943_v12 = vpop.permute.xlu1 %1942 }
 0x1aa   : > { %v1938_v28 = vpop.permute.xlu0 %1937  ;;  %vm2108_vm14 = vcmp.gt.f32.partialorder %v2076_v61, 0.0  ;;  %v2140_v29 = vmul.f32 0.2, %v2076_v61  ;;  %v2046_v62 = vmul.f32 %v6807_v5, %v1943_v12 }
 0x1ab   : > { %vm2107_vm15 = vcmp.gt.f32.partialorder %v2075_v30, 0.0  ;;  %v2139_v8 = vmul.f32 0.2, %v2075_v30  ;;  %v2045_v56 = vmul.f32 %v6807_v5, %v1938_v28 }
 0x1ac   : > { %v2172_v10 = vsel %vm2108_vm14, %v2076_v61, %v2140_v29  ;;  %v2078_v37 = vadd.f32 %v2046_v62, %v1782_v46 }
 0x1ad   : > { %v2171_v39 = vsel %vm2107_vm15, %v2075_v30, %v2139_v8  ;;  %2204 = vst.msk [vmem:[#allocation2 + $0x69] sm:$0xff] %vm275_vm0, %v2172_v10  ;;  %v2077_v63 = vadd.f32 %v2045_v56, %v1781_v43  ;;  %v1105_v45 = vpop.permute.xlu1 %1104 }
 0x1ae   : > { %2203 = vst.msk [vmem:[#allocation2 + $0x61] sm:$0xff] %vm275_vm0, %v2171_v39  ;;  %v1100_v1 = vpop.permute.xlu0 %1099  ;;  %v1168_v36 = vmul.f32 %v6310_v7, %v1105_v45  ;;  %vm2110_vm1 = vcmp.gt.f32.partialorder %v2078_v37, 0.0  ;;  %v2142_v23 = vmul.f32 0.2, %v2078_v37  ;;  %v7275_v45 = vld [vmem:[%s8107_s1 + $0x5] ss:$0 sm:$0xff] }
 0x1af   : > { %v1167_v0 = vmul.f32 %v6310_v7, %v1100_v1  ;;  %vm2109_vm2 = vcmp.gt.f32.partialorder %v2077_v63, 0.0  ;;  %v2141_v5 = vmul.f32 0.2, %v2077_v63 }
 0x1b0   : > { %v7228_v14 = vadd.f32 %v1168_v36, %v8178_v51  ;;  %v2174_v18 = vsel %vm2110_vm1, %v2078_v37, %v2142_v23 }
 0x1b1   : > { %v7231_v6 = vadd.f32 %v1167_v0, %v8179_v54  ;;  %v2173_v13 = vsel %vm2109_vm2, %v2077_v63, %v2141_v5  ;;  %v1115_v22 = vpop.permute.xlu1 %1114  ;;  %2206 = vst.msk [vmem:[#allocation2 + $0x79] sm:$0xff] %vm275_vm0, %v2174_v18 }
 0x1b2   : > { %v1110_v21 = vpop.permute.xlu0 %1109  ;;  %2205 = vst.msk [vmem:[#allocation2 + $0x71] sm:$0xff] %vm275_vm0, %v2173_v13  ;;  %v1170_v60 = vmul.f32 %v6310_v7, %v1115_v22 }
 0x1b3   : > { %v1169_v40 = vmul.f32 %v6310_v7, %v1110_v21 }
 0x1b4   : > { %v7236_v2 = vadd.f32 %v1170_v60, %v7033_v26 }
 0x1b5   : > { %v7239_v20 = vadd.f32 %v1169_v40, %v8180_v47 }
 0x1b6   : > { %v1657_v53 = vpop.permute.xlu1 %1656  ;;  %v1652_v38 = vpop.permute.xlu0 %1651 }
 0x1b9   : > { %v2248_v58 = vld [vmem:[#allocation2 + $0x61] ss:$4 sm:$0xff]  ;;  %v2230_v49 = vld [vmem:[#allocation2 + $0x60] ss:$4 sm:$0xff] }
 0x1ba   : > { %v1667_v3 = vpop.permute.xlu1 %1666  ;;  %5834 = vmatmul.mubr.msk.f32.gmra.mxu0 %vm275_vm0, %v2248_v58  ;;  %5850 = vmatmul.mubr.msk.f32.gmra.mxu1 %vm275_vm0, %v2230_v49  ;;  %v1662_v55 = vpop.permute.xlu0 %1661 }
 0x1be   : > { %v1125_v52 = vpop.permute.xlu1 %1124  ;;  %v1120_v27 = vpop.permute.xlu0 %1119 }
 0x1bf   : > { %v1172_v59 = vmul.f32 %v6310_v7, %v1125_v52  ;;  %v1171_v33 = vmul.f32 %v6310_v7, %v1120_v27 }
 0x1c1   : > { %v7244_v26 = vadd.f32 %v1172_v59, %v7130_v4  ;;  %v7247_v24 = vadd.f32 %v1171_v33, %v7132_v16 }
 0x1c2   : > { %v1135_v15 = vpop.permute.xlu1 %1134  ;;  %v1130_v61 = vpop.permute.xlu0 %1129 }
 0x1c3   : > { %v1174_v30 = vmul.f32 %v6310_v7, %v1135_v15  ;;  %v1173_v31 = vmul.f32 %v6310_v7, %v1130_v61 }
 0x1c5   : > { %v7250_v44 = vadd.f32 %v1174_v30, %v7154_v50  ;;  %v7253_v12 = vadd.f32 %v1173_v31, %v7156_v57  ;;  %v7266_v50 = vld [vmem:[%s8107_s1 + $0x4] ss:$0 sm:$0xff] }
 0x1c6   : > { %v1677_v28 = vpop.permute.xlu1 %1676  ;;  %v1672_v29 = vpop.permute.xlu0 %1671  ;;  %v1752_v57 = vmul.f32 %v7266_v50, %v1657_v53  ;;  %v1751_v56 = vmul.f32 %v7266_v50, %v1652_v38  ;;  %v1754_v36 = vmul.f32 %v7266_v50, %v1667_v3  ;;  %v1753_v0 = vmul.f32 %v7266_v50, %v1662_v55 }
 0x1c7   : > { %v1756_v27 = vmul.f32 %v7266_v50, %v1677_v28  ;;  %v1755_v59 = vmul.f32 %v7266_v50, %v1672_v29 }
 0x1c8   : > { %v1784_v37 = vadd.f32 %v1752_v57, %v7053_v19  ;;  %v1783_v63 = vadd.f32 %v1751_v56, %v7055_v34  ;;  %v1786_v18 = vadd.f32 %v1754_v36, %v7073_v11  ;;  %v1785_v13 = vadd.f32 %v1753_v0, %v7075_v25 }
 0x1c9   : > { %v1788_v61 = vadd.f32 %v1756_v27, %v7182_v35  ;;  %v1787_v30 = vadd.f32 %v1755_v59, %v7184_v9 }
 0x1ca   : > { %v1687_v8 = vpop.permute.xlu1 %1686  ;;  %v1682_v46 = vpop.permute.xlu0 %1681 }
 0x1cb   : > { %v1758_v56 = vmul.f32 %v7266_v50, %v1687_v8  ;;  %v1757_v28 = vmul.f32 %v7266_v50, %v1682_v46 }
 0x1cd   : > { %v1790_v9 = vadd.f32 %v1758_v56, %v7206_v48  ;;  %v1789_v8 = vadd.f32 %v1757_v28, %v7208_v32 }
 0x1ce   : > { %v7255_v43 = vpop.permute.xlu1 %1400  ;;  %v7257_v4 = vpop.permute.xlu0 %1395 }
 0x1d2   : > { %v7259_v16 = vpop.permute.xlu1 %1410  ;;  %v7261_v62 = vpop.permute.xlu0 %1405 }
 0x1d6   : > { %v1953_v10 = vpop.permute.xlu1 %1952  ;;  %v1948_v39 = vpop.permute.xlu0 %1947 }
 0x1d7   : > { %v2048_v1 = vmul.f32 %v7275_v45, %v1953_v10  ;;  %v2047_v7 = vmul.f32 %v7275_v45, %v1948_v39 }
 0x1d9   : > { %v2080_v23 = vadd.f32 %v2048_v1, %v1784_v37  ;;  %v2079_v5 = vadd.f32 %v2047_v7, %v1783_v63 }
 0x1da   : > { %v1963_v51 = vpop.permute.xlu1 %1962  ;;  %v1958_v54 = vpop.permute.xlu0 %1957 }
 0x1db   : > { %vm2112_vm3 = vcmp.gt.f32.partialorder %v2080_v23, 0.0  ;;  %v2144_v19 = vmul.f32 0.2, %v2080_v23  ;;  %vm2111_vm4 = vcmp.gt.f32.partialorder %v2079_v5, 0.0  ;;  %v2143_v34 = vmul.f32 0.2, %v2079_v5 }
 0x1dc   : > { %v2050_v22 = vmul.f32 %v7275_v45, %v1963_v51  ;;  %v2049_v21 = vmul.f32 %v7275_v45, %v1958_v54 }
 0x1dd   : > { %v2176_v60 = vsel %vm2112_vm3, %v2080_v23, %v2144_v19  ;;  %v2175_v40 = vsel %vm2111_vm4, %v2079_v5, %v2143_v34  ;;  %vm310_vm4 = vcmask 261120  }
 0x1de   : > { %2208 = vst.msk [vmem:[#allocation2 + $0x89] sm:$0xff] %vm275_vm0, %v2176_v60  ;;  %2207 = vst.msk [vmem:[#allocation2 + $0x81] sm:$0xff] %vm275_vm0, %v2175_v40  ;;  %v2082_v47 = vadd.f32 %v2050_v22, %v1786_v18  ;;  %v2081_v53 = vadd.f32 %v2049_v21, %v1785_v13  ;;  %v7287_v38 = vpop.permute.xlu1 %1420  ;;  %v7289_v58 = vpop.permute.xlu0 %1415  ;;  %v6313_v40 = vld [vmem:[%s8107_s1 + $0x3] ss:$0 sm:$0xff] }
 0x1df   : > { %312 = vst.msk [vmem:[#allocation3 + $0x8] sm:$0xff] %vm310_vm4, %v8162_v42  ;;  %313 = vst.msk [vmem:[#allocation3 + $0x10] sm:$0xff] %vm310_vm4, %v8162_v42 }
 0x1e0   : > { %vm2114_vm5 = vcmp.gt.f32.partialorder %v2082_v47, 0.0  ;;  %v2146_v11 = vmul.f32 0.2, %v2082_v47  ;;  %vm2113_vm6 = vcmp.gt.f32.partialorder %v2081_v53, 0.0  ;;  %v2145_v25 = vmul.f32 0.2, %v2081_v53 }
 0x1e1   : > { %311 = vst.msk [vmem:[#allocation3] sm:$0xff] %vm310_vm4, %v8162_v42  ;;  %314 = vst.msk [vmem:[#allocation3 + $0x18] sm:$0xff] %vm310_vm4, %v8162_v42 }
 0x1e2   : > { %v2178_v49 = vsel %vm2114_vm5, %v2082_v47, %v2146_v11  ;;  %v2177_v3 = vsel %vm2113_vm6, %v2081_v53, %v2145_v25  ;;  %v7291_v55 = vpop.permute.xlu1 %1430  ;;  %v7293_v52 = vpop.permute.xlu0 %1425  ;;  %v1464_v47 = vmul.f32 %v6313_v40, %v7255_v43  ;;  %v1463_v53 = vmul.f32 %v6313_v40, %v7257_v4  ;;  %315 = vst.msk [vmem:[#allocation3 + $0x20] sm:$0xff] %vm310_vm4, %v8162_v42 }
 0x1e3   : > { %2210 = vst.msk [vmem:[#allocation2 + $0x99] sm:$0xff] %vm275_vm0, %v2178_v49  ;;  %2209 = vst.msk [vmem:[#allocation2 + $0x91] sm:$0xff] %vm275_vm0, %v2177_v3  ;;  %v1466_v43 = vmul.f32 %v6313_v40, %v7259_v16  ;;  %v1465_v4 = vmul.f32 %v6313_v40, %v7261_v62 }
 0x1e4   : > { %316 = vst.msk [vmem:[#allocation3 + $0x28] sm:$0xff] %vm310_vm4, %v8162_v42  ;;  %317 = vst.msk [vmem:[#allocation3 + $0x30] sm:$0xff] %vm310_vm4, %v8162_v42 }
 0x1e5   : > { %v1498_v16 = vadd.f32 %v1466_v43, %v7236_v2  ;;  %v1497_v62 = vadd.f32 %v1465_v4, %v7239_v20  ;;  %318 = vst.msk [vmem:[#allocation3 + $0x38] sm:$0xff] %vm310_vm4, %v8162_v42 }
 0x1e6   : > { %v1973_v33 = vpop.permute.xlu1 %1972  ;;  %v1968_v15 = vpop.permute.xlu0 %1967 }
 0x1e7   : > { %v2052_v31 = vmul.f32 %v7275_v45, %v1973_v33  ;;  %v2051_v57 = vmul.f32 %v7275_v45, %v1968_v15  ;;  %v1496_v33 = vadd.f32 %v1464_v47, %v7228_v14  ;;  %v1495_v15 = vadd.f32 %v1463_v53, %v7231_v6 }
 0x1e9   : > { %v2084_v10 = vadd.f32 %v2052_v31, %v1788_v61  ;;  %v2083_v29 = vadd.f32 %v2051_v57, %v1787_v30  ;;  %v1468_v61 = vmul.f32 %v6313_v40, %v7287_v38  ;;  %v1467_v30 = vmul.f32 %v6313_v40, %v7289_v58 }
 0x1ea   : > { %v1983_v39 = vpop.permute.xlu1 %1982  ;;  %v2250_v37 = vld [vmem:[#allocation2 + $0x81] ss:$4 sm:$0xff]  ;;  %v2232_v63 = vld [vmem:[#allocation2 + $0x80] ss:$4 sm:$0xff]  ;;  %v1978_v1 = vpop.permute.xlu0 %1977 }
 0x1eb   : > { %vm2116_vm7 = vcmp.gt.f32.partialorder %v2084_v10, 0.0  ;;  %v2148_v7 = vmul.f32 0.2, %v2084_v10  ;;  %vm2115_vm8 = vcmp.gt.f32.partialorder %v2083_v29, 0.0  ;;  %v2147_v35 = vmul.f32 0.2, %v2083_v29  ;;  %5836 = vmatprep.mubr.msk.f32.mxu0 %vm275_vm0, %v2250_v37  ;;  %5852 = vmatprep.mubr.msk.f32.mxu1 %vm275_vm0, %v2232_v63 }
 0x1ec   : > { %v2054_v46 = vmul.f32 %v7275_v45, %v1983_v39  ;;  %v2053_v36 = vmul.f32 %v7275_v45, %v1978_v1  ;;  %v1500_v58 = vadd.f32 %v1468_v61, %v7244_v26  ;;  %v1499_v37 = vadd.f32 %v1467_v30, %v7247_v24 }
 0x1ed   : > { %v2180_v0 = vsel %vm2116_vm7, %v2084_v10, %v2148_v7  ;;  %v2179_v23 = vsel %vm2115_vm8, %v2083_v29, %v2147_v35  ;;  %v1470_v26 = vmul.f32 %v6313_v40, %v7291_v55  ;;  %v1469_v24 = vmul.f32 %v6313_v40, %v7293_v52 }
 0x1ee   : > { %2212 = vst.msk [vmem:[#allocation2 + $0xa9] sm:$0xff] %vm275_vm0, %v2180_v0  ;;  %2211 = vst.msk [vmem:[#allocation2 + $0xa1] sm:$0xff] %vm275_vm0, %v2179_v23  ;;  %v2086_v5 = vadd.f32 %v2054_v46, %v1790_v9  ;;  %v2085_v51 = vadd.f32 %v2053_v36, %v1789_v8  ;;  %v1697_v54 = vpop.permute.xlu1 %1696  ;;  %v1692_v19 = vpop.permute.xlu0 %1691 }
 0x1ef   : > { %v1760_v27 = vmul.f32 %v7266_v50, %v1697_v54  ;;  %v1759_v59 = vmul.f32 %v7266_v50, %v1692_v19  ;;  %v1502_v40 = vadd.f32 %v1470_v26, %v7250_v44  ;;  %v1501_v47 = vadd.f32 %v1469_v24, %v7253_v12  ;;  %v2989_v26 = vld [vmem:[#allocation2 + $0x25] ss:$4 sm:$0xff]  ;;  %v2835_v24 = vld [vmem:[#allocation2 + $0x44] ss:$4 sm:$0xff] }
 0x1f0   : > { %vm2118_vm9 = vcmp.gt.f32.partialorder %v2086_v5, 0.0  ;;  %v2150_v34 = vmul.f32 0.2, %v2086_v5  ;;  %vm2117_vm10 = vcmp.gt.f32.partialorder %v2085_v51, 0.0  ;;  %v2149_v48 = vmul.f32 0.2, %v2085_v51 }
 0x1f1   : > { %v1792_v56 = vadd.f32 %v1760_v27, %v1496_v33  ;;  %v1791_v28 = vadd.f32 %v1759_v59, %v1495_v15 }
 0x1f2   : > { %v2182_v18 = vsel %vm2118_vm9, %v2086_v5, %v2150_v34  ;;  %v2181_v32 = vsel %vm2117_vm10, %v2085_v51, %v2149_v48  ;;  %v1707_v13 = vpop.permute.xlu1 %1706  ;;  %v1702_v22 = vpop.permute.xlu0 %1701 }
 0x1f3   : > { %2214 = vst.msk [vmem:[#allocation2 + $0xb9] sm:$0xff] %vm275_vm0, %v2182_v18  ;;  %2213 = vst.msk [vmem:[#allocation2 + $0xb1] sm:$0xff] %vm275_vm0, %v2181_v32  ;;  %v1762_v14 = vmul.f32 %v7266_v50, %v1707_v13  ;;  %v1761_v6 = vmul.f32 %v7266_v50, %v1702_v22 }
 0x1f5   : > { %v1794_v46 = vadd.f32 %v1762_v14, %v1498_v16  ;;  %v1793_v2 = vadd.f32 %v1761_v6, %v1497_v62  ;;  %v2675_v14 = vld [vmem:[#allocation2 + $0x3] ss:$4 sm:$0xff]  ;;  %v2521_v6 = vld [vmem:[#allocation2 + $0x22] ss:$4 sm:$0xff] }
 0x1f6   : > { %v1717_v21 = vpop.permute.xlu1 %1716  ;;  %v1712_v60 = vpop.permute.xlu0 %1711  ;;  %v2677_v16 = vld [vmem:[#allocation2 + $0x23] ss:$4 sm:$0xff]  ;;  %v2523_v62 = vld [vmem:[#allocation2 + $0x42] ss:$4 sm:$0xff] }
 0x1f7   : > { %v1764_v63 = vmul.f32 %v7266_v50, %v1717_v21  ;;  %v1763_v1 = vmul.f32 %v7266_v50, %v1712_v60 }
 0x1f9   : > { %v1796_v5 = vadd.f32 %v1764_v63, %v1500_v58  ;;  %v1795_v51 = vadd.f32 %v1763_v1, %v1499_v37  ;;  %v2679_v58 = vld [vmem:[#allocation2 + $0x43] ss:$4 sm:$0xff]  ;;  %v2525_v37 = vld [vmem:[#allocation2 + $0x62] ss:$4 sm:$0xff] }
 0x1fa   : > { %v1727_v11 = vpop.permute.xlu1 %1726  ;;  %v2252_v25 = vld [vmem:[#allocation2 + $0xa1] ss:$4 sm:$0xff]  ;;  %v2234_v49 = vld [vmem:[#allocation2 + $0xa0] ss:$4 sm:$0xff]  ;;  %v1722_v3 = vpop.permute.xlu0 %1721  ;;  %v2681_v63 = vld [vmem:[#allocation2 + $0x63] ss:$4 sm:$0xff] }
 0x1fb   : > { %5837 = vmatmul.mubr.msk.f32.gmra.mxu0 %vm275_vm0, %v2252_v25  ;;  %5853 = vmatmul.mubr.msk.f32.gmra.mxu1 %vm275_vm0, %v2234_v49  ;;  %v1766_v18 = vmul.f32 %v7266_v50, %v1727_v11  ;;  %v1765_v32 = vmul.f32 %v7266_v50, %v1722_v3  ;;  %v2527_v1 = vld [vmem:[#allocation2 + $0x82] ss:$4 sm:$0xff] }
 0x1fd   : > { %v1798_v27 = vadd.f32 %v1766_v18, %v1502_v40  ;;  %v1797_v59 = vadd.f32 %v1765_v32, %v1501_v47  ;;  %v3193_v40 = vld [vmem:[%s8110_s4 + $0x8] sm:$0xff]  ;;  %v5415_v47 = vld [vmem:[%s8110_s4 + $0x20] sm:$0xff] }
 0x1fe   : > { %v1993_v31 = vpop.permute.xlu1 %1992  ;;  %v1988_v57 = vpop.permute.xlu0 %1987 }
 0x1ff   : > { %v2056_v10 = vmul.f32 %v7275_v45, %v1993_v31  ;;  %v2055_v29 = vmul.f32 %v7275_v45, %v1988_v57 }
 0x201   : > { %v2088_v39 = vadd.f32 %v2056_v10, %v1792_v56  ;;  %v2087_v38 = vadd.f32 %v2055_v29, %v1791_v28  ;;  %v2519_v29 = vld [vmem:[#allocation2 + $0x2] ss:$4 sm:$0xff] }
 0x202   : > { %v2003_v7 = vpop.permute.xlu1 %2002  ;;  %v1998_v35 = vpop.permute.xlu0 %1997 }
 0x203   : > { %vm2120_vm11 = vcmp.gt.f32.partialorder %v2088_v39, 0.0  ;;  %v2152_v9 = vmul.f32 0.2, %v2088_v39  ;;  %vm2119_vm12 = vcmp.gt.f32.partialorder %v2087_v38, 0.0  ;;  %v2151_v8 = vmul.f32 0.2, %v2087_v38 }
 0x204   : > { %v2058_v20 = vmul.f32 %v7275_v45, %v2003_v7  ;;  %v2057_v36 = vmul.f32 %v7275_v45, %v1998_v35  ;;  %v2683_v7 = vld [vmem:[#allocation2 + $0x83] ss:$4 sm:$0xff] }
 0x205   : > { %v2184_v0 = vsel %vm2120_vm11, %v2088_v39, %v2152_v9  ;;  %v2183_v23 = vsel %vm2119_vm12, %v2087_v38, %v2151_v8  ;;  %v5394_v39 = vld [vmem:[%s8108_s2 + $0x40] sm:$0xff]  ;;  %v5404_v38 = vld [vmem:[%s8108_s2 + $0x50] sm:$0xff] }
 0x206   : > { %2216 = vst.msk [vmem:[#allocation2 + $0xc9] sm:$0xff] %vm275_vm0, %v2184_v0  ;;  %2215 = vst.msk [vmem:[#allocation2 + $0xc1] sm:$0xff] %vm275_vm0, %v2183_v23  ;;  %v2090_v54 = vadd.f32 %v2058_v20, %v1794_v46  ;;  %v2089_v19 = vadd.f32 %v2057_v36, %v1793_v2  ;;  %v2013_v34 = vpop.permute.xlu1 %2012  ;;  %v2008_v48 = vpop.permute.xlu0 %2007  ;;  %v2685_v35 = vld [vmem:[#allocation2 + $0xa3] ss:$4 sm:$0xff]  ;;  %v2831_v2 = vld [vmem:[#allocation2 + $0x4] ss:$4 sm:$0xff] }
 0x207   : > { %v2060_v55 = vmul.f32 %v7275_v45, %v2013_v34  ;;  %v2059_v52 = vmul.f32 %v7275_v45, %v2008_v48  ;;  %v2987_v20 = vld [vmem:[#allocation2 + $0x5] ss:$4 sm:$0xff]  ;;  %v2833_v36 = vld [vmem:[#allocation2 + $0x24] ss:$4 sm:$0xff] }
 0x208   : > { %vm2122_vm13 = vcmp.gt.f32.partialorder %v2090_v54, 0.0  ;;  %v2154_v13 = vmul.f32 0.2, %v2090_v54  ;;  %vm2121_vm14 = vcmp.gt.f32.partialorder %v2089_v19, 0.0  ;;  %v2153_v22 = vmul.f32 0.2, %v2089_v19 }
 0x209   : > { %v2092_v21 = vadd.f32 %v2060_v55, %v1796_v5  ;;  %v2091_v60 = vadd.f32 %v2059_v52, %v1795_v51  ;;  %v2991_v0 = vld [vmem:[#allocation2 + $0x45] ss:$4 sm:$0xff]  ;;  %v2837_v23 = vld [vmem:[#allocation2 + $0x64] ss:$4 sm:$0xff] }
 0x20a   : > { %v2186_v53 = vsel %vm2122_vm13, %v2090_v54, %v2154_v13  ;;  %v2185_v25 = vsel %vm2121_vm14, %v2089_v19, %v2153_v22  ;;  %v2023_v49 = vpop.permute.xlu1 %2022  ;;  %v2018_v11 = vpop.permute.xlu0 %2017  ;;  %v2993_v5 = vld [vmem:[#allocation2 + $0x65] ss:$4 sm:$0xff]  ;;  %v2839_v51 = vld [vmem:[#allocation2 + $0x84] ss:$4 sm:$0xff]  ;;  %vm6324_vm13 = vmmov 0  }
 0x20b   : > { %2218 = vst.msk [vmem:[#allocation2 + $0xd9] sm:$0xff] %vm275_vm0, %v2186_v53  ;;  %2217 = vst.msk [vmem:[#allocation2 + $0xd1] sm:$0xff] %vm275_vm0, %v2185_v25  ;;  %vm2124_vm15 = vcmp.gt.f32.partialorder %v2092_v21, 0.0  ;;  %v2156_v50 = vmul.f32 0.2, %v2092_v21  ;;  %vm2123_vm1 = vcmp.gt.f32.partialorder %v2091_v60, 0.0  ;;  %v2062_v33 = vmul.f32 %v7275_v45, %v2023_v49 }
 0x20c   : > { %v2155_v3 = vmul.f32 0.2, %v2091_v60  ;;  %v2061_v44 = vmul.f32 %v7275_v45, %v2018_v11  ;;  %v2995_v54 = vld [vmem:[#allocation2 + $0x85] ss:$4 sm:$0xff]  ;;  %v2841_v19 = vld [vmem:[#allocation2 + $0xa4] ss:$4 sm:$0xff] }
 0x20d   : > { %v2188_v15 = vsel %vm2124_vm15, %v2092_v21, %v2156_v50  ;;  %v2094_v43 = vadd.f32 %v2062_v33, %v1798_v27  ;;  %v2997_v34 = vld [vmem:[#allocation2 + $0xa5] ss:$4 sm:$0xff]  ;;  %vm3749_vm15 = vcmask 523264  }
 0x20e   : > { %v2187_v12 = vsel %vm2123_vm1, %v2091_v60, %v2155_v3  ;;  %2220 = vst.msk [vmem:[#allocation2 + $0xe9] sm:$0xff] %vm275_vm0, %v2188_v15  ;;  %v2093_v4 = vadd.f32 %v2061_v44, %v1797_v59  ;;  %v5418_v52 = vld [vmem:[%s8110_s4 + $0x38] sm:$0xff]  ;;  %v5417_v22 = vld [vmem:[%s8110_s4 + $0x30] sm:$0xff]  ;;  %v5416_v60 = vld [vmem:[%s8110_s4 + $0x28] sm:$0xff] }
 0x20f   : > { %2219 = vst.msk [vmem:[#allocation2 + $0xe1] sm:$0xff] %vm275_vm0, %v2187_v12  ;;  %vm2126_vm2 = vcmp.gt.f32.partialorder %v2094_v43, 0.0  ;;  %v2158_v61 = vmul.f32 0.2, %v2094_v43  ;;  %v3195_v13 = vld [vmem:[%s8110_s4 + $0x18] sm:$0xff]  ;;  %v3194_v21 = vld [vmem:[%s8110_s4 + $0x10] sm:$0xff] }
 0x210   : > { %vm2125_vm3 = vcmp.gt.f32.partialorder %v2093_v4, 0.0  ;;  %v2157_v30 = vmul.f32 0.2, %v2093_v4  ;;  %v3192_v53 = vld [vmem:[%s8110_s4] sm:$0xff]  ;;  %v7448_v25 = vld [vmem:[%s8110_s4 + $0x58] sm:$0xff] }
 0x211   : > { %v2190_v31 = vsel %vm2126_vm2, %v2094_v43, %v2158_v61  ;;  %v7453_v49 = vld [vmem:[%s8110_s4 + $0x78] sm:$0xff]  ;;  %vm5099_vm2 = vcmask 0  }
 0x212   : > { %v2189_v57 = vsel %vm2125_vm3, %v2093_v4, %v2157_v30  ;;  %v2254_v56 = vld [vmem:[#allocation2 + $0xc1] ss:$4 sm:$0xff]  ;;  %v2236_v28 = vld [vmem:[#allocation2 + $0xc0] ss:$4 sm:$0xff]  ;;  %2222 = vst.msk [vmem:[#allocation2 + $0xf9] sm:$0xff] %vm275_vm0, %v2190_v31 }
 0x213   : > { %2221 = vst.msk [vmem:[#allocation2 + $0xf1] sm:$0xff] %vm275_vm0, %v2189_v57  ;;  %5839 = vmatprep.mubr.msk.f32.mxu0 %vm275_vm0, %v2254_v56  ;;  %5855 = vmatprep.mubr.msk.f32.mxu1 %vm275_vm0, %v2236_v28  ;;  %v2687_v9 = vld [vmem:[#allocation2 + $0xc3] ss:$4 sm:$0xff]  ;;  %v2843_v48 = vld [vmem:[#allocation2 + $0xc4] ss:$4 sm:$0xff] }
 0x216   : > { %v2999_v18 = vld [vmem:[#allocation2 + $0xc5] ss:$4 sm:$0xff] }
 0x21a   : > { %v2256_v45 = vld [vmem:[#allocation2 + $0xe1] ss:$4 sm:$0xff]  ;;  %v2238_v10 = vld [vmem:[#allocation2 + $0xe0] ss:$4 sm:$0xff]  ;;  %v2533_v8 = vld [vmem:[#allocation2 + $0xe2] ss:$4 sm:$0xff]  ;;  %v5832_v11 = vpop.f32.mrf.mxu0  ;;  %v5848_v50 = vpop.f32.mrf.mxu1 }
 0x21b   : > { %5840 = vmatmul.mubr.msk.f32.gmra.mxu0 %vm275_vm0, %v2256_v45  ;;  %5856 = vmatmul.mubr.msk.f32.gmra.mxu1 %vm275_vm0, %v2238_v10  ;;  %v2689_v46 = vld [vmem:[#allocation2 + $0xe3] ss:$4 sm:$0xff]  ;;  %v2845_v32 = vld [vmem:[#allocation2 + $0xe4] ss:$4 sm:$0xff]  ;;  %v3001_v55 = vld [vmem:[#allocation2 + $0xe5] ss:$4 sm:$0xff] }
 0x21c   : > { %5862 = vmatprep.mubr.msk.f32.mxu0 %vm275_vm0, %v2519_v29  ;;  %5878 = vmatprep.mubr.msk.f32.mxu1 %vm275_vm0, %v2675_v14  ;;  %v2350_v3 = vpop.f32.mrf.mxu0  ;;  %v2479_v27 = vpop.f32.mrf.mxu1 }
 0x21f   : > { %5863 = vmatmul.mubr.msk.f32.vlgmr.msra.gmra.mxu0 %vm275_vm0, %v2521_v6  ;;  %5879 = vmatmul.mubr.msk.f32.vlgmr.msra.gmra.mxu1 %vm275_vm0, %v2677_v16 }
 0x220   : > { %5891 = vmatpush3.msra.mxu0 %v7169_v17  ;;  %5865 = vmatprep.mubr.msk.f32.mxu0 %vm275_vm0, %v2523_v62  ;;  %v2529_v17 = vld [vmem:[#allocation2 + $0xa2] ss:$4 sm:$0xff] }
 0x221   : > { %5881 = vmatprep.mubr.msk.f32.mxu1 %vm275_vm0, %v2679_v58  ;;  %5907 = vmatpush3.msra.mxu1 %v7189_v41  ;;  %v2531_v41 = vld [vmem:[#allocation2 + $0xc2] ss:$4 sm:$0xff]  ;;  %v2485_v58 = vadd.f32 %v5848_v50, %v5832_v11 }
 0x222   : > { %5892 = vmatprep.subr.mxu0 %v5394_v39  ;;  %5908 = vmatprep.subr.mxu1 %v5404_v38 }
 0x223   : > { %5866 = vmatmul.mubr.msk.f32.gmra.mxu0 %vm275_vm0, %v2525_v37  ;;  %5882 = vmatmul.mubr.msk.f32.gmra.mxu1 %vm275_vm0, %v2681_v63 }
 0x224   : > { %5868 = vmatprep.mubr.msk.f32.mxu0 %vm275_vm0, %v2527_v1  ;;  %5884 = vmatprep.mubr.msk.f32.mxu1 %vm275_vm0, %v2683_v7  ;;  %v2480_v1 = vadd.f32 %v2479_v27, %v2350_v3 }
 0x225   : > { %5893 = vmatpush3.msra.mxu0 %v5394_v39  ;;  %5909 = vmatpush3.msra.mxu1 %v5404_v38 }
 0x226   : > { %5922 = vmatprep.subr.mxu0 %v5418_v52  ;;  %5933 = vmatprep.subr.mxu1 %v3195_v13 }
 0x227   : > { %5869 = vmatmul.mubr.msk.f32.gmra.mxu0 %vm275_vm0, %v2529_v17  ;;  %5885 = vmatmul.mubr.msk.f32.gmra.mxu1 %vm275_vm0, %v2685_v35 }
 0x228   : > { %5871 = vmatprep.mubr.msk.f32.mxu0 %vm275_vm0, %v2531_v41  ;;  %5887 = vmatprep.mubr.msk.f32.mxu1 %vm275_vm0, %v2687_v9 }
 0x22b   : > { %5872 = vmatmul.mubr.msk.f32.gmra.mxu0 %vm275_vm0, %v2533_v8  ;;  %5888 = vmatmul.mubr.msk.f32.gmra.mxu1 %vm275_vm0, %v2689_v46 }
 0x22c   : > { %5894 = vmatprep.mubr.msk.f32.mxu0 %vm275_vm0, %v2831_v2  ;;  %5910 = vmatprep.mubr.msk.f32.mxu1 %vm275_vm0, %v2987_v20 }
 0x22f   : > { %5895 = vmatmul.mubr.msk.f32.vlgmr.msra.gmra.mxu0 %vm275_vm0, %v2833_v36  ;;  %5911 = vmatmul.mubr.msk.f32.vlgmr.msra.gmra.mxu1 %vm275_vm0, %v2989_v26 }
 0x230   : > { %5897 = vmatprep.mubr.msk.f32.mxu0 %vm275_vm0, %v2835_v24  ;;  %5913 = vmatprep.mubr.msk.f32.mxu1 %vm275_vm0, %v2991_v0 }
 0x231   : > { %5923 = vmatpush3.msra.mxu0 %v5418_v52  ;;  %5934 = vmatpush3.msra.mxu1 %v3195_v13 }
 0x232   : > { %5924 = vmatprep.subr.mxu0 %v5417_v22  ;;  %5935 = vmatprep.subr.mxu1 %v3194_v21 }
 0x233   : > { %5898 = vmatmul.mubr.msk.f32.gmra.mxu0 %vm275_vm0, %v2837_v23  ;;  %5914 = vmatmul.mubr.msk.f32.gmra.mxu1 %vm275_vm0, %v2993_v5 }
 0x234   : > { %5900 = vmatprep.mubr.msk.f32.mxu0 %vm275_vm0, %v2839_v51  ;;  %5916 = vmatprep.mubr.msk.f32.mxu1 %vm275_vm0, %v2995_v54 }
 0x235   : > { %5925 = vmatpush3.msra.mxu0 %v5417_v22  ;;  %5936 = vmatpush3.msra.mxu1 %v3194_v21 }
 0x236   : > { %5926 = vmatprep.subr.mxu0 %v5416_v60  ;;  %5937 = vmatprep.subr.mxu1 %v3193_v40 }
 0x237   : > { %5901 = vmatmul.mubr.msk.f32.gmra.mxu0 %vm275_vm0, %v2841_v19  ;;  %5917 = vmatmul.mubr.msk.f32.gmra.mxu1 %vm275_vm0, %v2997_v34  ;;  %v7460_v19 = vld [vmem:[%s8109_s3] ss:$0 sm:$0xff] }
 0x238   : > { %5903 = vmatprep.mubr.msk.f32.mxu0 %vm275_vm0, %v2843_v48  ;;  %5919 = vmatprep.mubr.msk.f32.mxu1 %vm275_vm0, %v2999_v18 }
 0x239   : > { %5927 = vmatpush3.msra.mxu0 %v5416_v60  ;;  %5938 = vmatpush3.msra.mxu1 %v3193_v40 }
 0x23a   : > { %5928 = vmatprep.subr.mxu0 %v5415_v47  ;;  %5939 = vmatprep.subr.mxu1 %v3192_v53 }
 0x23b   : > { %5904 = vmatmul.mubr.msk.f32.gmra.mxu0 %vm275_vm0, %v2845_v32  ;;  %5920 = vmatmul.mubr.msk.f32.gmra.mxu1 %vm275_vm0, %v3001_v55  ;;  %vm319_vm0 = vcmask 254976  }
 0x23c   : > { %320 = vst.msk [vmem:[#allocation3 + $0x40] sm:$0x3] %vm319_vm0, %v8162_v42  ;;  %5929 = vmatpush3.msra.mxu0 %v5415_v47  ;;  %5940 = vmatpush3.msra.mxu1 %v3192_v53 }
 0x23d   : > { %5944 = vmatprep.subr.mxu0 %v7448_v25  ;;  %5955 = vmatprep.subr.mxu1 %v7453_v49 }
 0x27a   : > { %v5835_v59 = vpop.f32.mrf.mxu0  ;;  %v5851_v33 = vpop.f32.mrf.mxu1 }
 0x27b   : > { %v2495_v41 = vadd.f32 %v5851_v33, %v5835_v59 }
 0x27c   : > { %v2360_v44 = vpop.f32.mrf.mxu0  ;;  %v2489_v15 = vpop.f32.mrf.mxu1 }
 0x27d   : > { %v2490_v36 = vadd.f32 %v2489_v15, %v2360_v44 }
 0x2bb   : > { %v5838_v12 = vpop.f32.mrf.mxu0  ;;  %v5854_v43 = vpop.f32.mrf.mxu1 }
 0x2bc   : > { %v2505_v5 = vadd.f32 %v5854_v43, %v5838_v12 }
 0x2bd   : > { %v2370_v4 = vpop.f32.mrf.mxu0  ;;  %v2499_v61 = vpop.f32.mrf.mxu1 }
 0x2be   : > { %v2500_v51 = vadd.f32 %v2499_v61, %v2370_v4 }
 0x2db   : > { %v5841_v30 = vpop.f32.mrf.mxu0  ;;  %v5857_v31 = vpop.f32.mrf.mxu1 }
 0x2dc   : > { %v2515_v52 = vadd.f32 %v5857_v31, %v5841_v30 }
 0x2dd   : > { %v2380_v57 = vpop.f32.mrf.mxu0  ;;  %v2509_v56 = vpop.f32.mrf.mxu1 }
 0x2de   : > { %v2510_v11 = vadd.f32 %v2509_v56, %v2380_v57 }
 0x2df   : > { %v5864_v28 = vpop.f32.mrf.mxu0  ;;  %v5880_v45 = vpop.f32.mrf.mxu1 }
 0x2e0   : > { %v2667_v7 = vadd.f32 %v5864_v28, %v2485_v58 }
 0x2e1   : > { %v2627_v10 = vpop.f32.mrf.mxu0  ;;  %v2783_v29 = vpop.f32.mrf.mxu1 }
 0x2e2   : > { %v2666_v9 = vadd.f32 %v2627_v10, %v2480_v1  ;;  %v2823_v2 = vadd.f32 %v5880_v45, %v2667_v7 }
 0x2e3   : > { %v5867_v14 = vpop.f32.mrf.mxu0  ;;  %v5883_v6 = vpop.f32.mrf.mxu1 }
 0x2e4   : > { %v2669_v20 = vadd.f32 %v5867_v14, %v2495_v41  ;;  %v2822_v0 = vadd.f32 %v2783_v29, %v2666_v9 }
 0x2e5   : > { %v2637_v16 = vpop.f32.mrf.mxu0  ;;  %v2793_v62 = vpop.f32.mrf.mxu1 }
 0x2e6   : > { %v2668_v54 = vadd.f32 %v2637_v16, %v2490_v36  ;;  %v2825_v18 = vadd.f32 %v5883_v6, %v2669_v20 }
 0x2e7   : > { %v5870_v39 = vpop.f32.mrf.mxu0  ;;  %v5886_v38 = vpop.f32.mrf.mxu1 }
 0x2e8   : > { %v2671_v13 = vadd.f32 %v5870_v39, %v2505_v5  ;;  %v2824_v50 = vadd.f32 %v2793_v62, %v2668_v54 }
 0x2e9   : > { %v2647_v37 = vpop.f32.mrf.mxu0  ;;  %v2803_v63 = vpop.f32.mrf.mxu1 }
 0x2ea   : > { %v2670_v22 = vadd.f32 %v2647_v37, %v2500_v51  ;;  %v2827_v12 = vadd.f32 %v5886_v38, %v2671_v13 }
 0x2eb   : > { %v5873_v17 = vpop.f32.mrf.mxu0  ;;  %v5889_v35 = vpop.f32.mrf.mxu1 }
 0x2ec   : > { %v2673_v3 = vadd.f32 %v5873_v17, %v2515_v52  ;;  %v2826_v43 = vadd.f32 %v2803_v63, %v2670_v22 }
 0x2ed   : > { %v2657_v8 = vpop.f32.mrf.mxu0  ;;  %v2813_v46 = vpop.f32.mrf.mxu1 }
 0x2ee   : > { %v2672_v4 = vadd.f32 %v2657_v8, %v2510_v11  ;;  %v2829_v56 = vadd.f32 %v5889_v35, %v2673_v3  ;;  %v5430_v11 = vld [vmem:[%s8110_s4 + $0x68] sm:$0xff]  ;;  %v5444_v3 = vld [vmem:[%s8110_s4 + $0xb8] sm:$0xff] }
 0x2ef   : > { %v5896_v26 = vpop.f32.mrf.mxu0  ;;  %v5912_v24 = vpop.f32.mrf.mxu1 }
 0x2f0   : > { %v2979_v23 = vadd.f32 %v5896_v26, %v2823_v2  ;;  %v2828_v1 = vadd.f32 %v2813_v46, %v2672_v4  ;;  %v5442_v4 = vld [vmem:[%s8110_s4 + $0xa8] sm:$0xff] }
 0x2f1   : > { %v2939_v34 = vpop.f32.mrf.mxu0  ;;  %v3095_v48 = vpop.f32.mrf.mxu1 }
 0x2f2   : > { %v3135_v32 = vadd.f32 %v5912_v24, %v2979_v23  ;;  %v2978_v55 = vadd.f32 %v2939_v34, %v2822_v0 }
 0x2f3   : > { %v5899_v21 = vpop.f32.mrf.mxu0  ;;  %v5915_v60 = vpop.f32.mrf.mxu1 }
 0x2f4   : > { %v3149_v40 = vadd.f32 %v7460_v19, %v3135_v32  ;;  %v3134_v47 = vadd.f32 %v3095_v48, %v2978_v55  ;;  %v2981_v53 = vadd.f32 %v5899_v21, %v2825_v18 }
 0x2f5   : > { %v2949_v27 = vpop.f32.mrf.mxu0  ;;  %v3105_v59 = vpop.f32.mrf.mxu1 }
 0x2f6   : > { %vm3157_vm5 = vcmp.gt.f32.partialorder %v3149_v40, 0.0  ;;  %v3165_v33 = vmul.f32 0.2, %v3149_v40  ;;  %v3148_v44 = vadd.f32 %v7460_v19, %v3134_v47  ;;  %v3137_v15 = vadd.f32 %v5915_v60, %v2981_v53  ;;  %v5431_v60 = vld [vmem:[%s8110_s4 + $0x70] sm:$0xff]  ;;  %v5424_v53 = vld [vmem:[%s8110_s4 + $0x48] sm:$0xff] }
 0x2f7   : > { %v2980_v61 = vadd.f32 %v2949_v27, %v2824_v50  ;;  %v5902_v30 = vpop.f32.mrf.mxu0  ;;  %v5918_v31 = vpop.f32.mrf.mxu1  ;;  %v5438_v50 = vld [vmem:[%s8110_s4 + $0x98] sm:$0xff] }
 0x2f8   : > { %v3173_v28 = vsel %vm3157_vm5, %v3149_v40, %v3165_v33  ;;  %vm3156_vm6 = vcmp.gt.f32.partialorder %v3148_v44, 0.0  ;;  %v3164_v45 = vmul.f32 0.2, %v3148_v44  ;;  %v3151_v57 = vadd.f32 %v7460_v19, %v3137_v15  ;;  %v5443_v15 = vld [vmem:[%s8110_s4 + $0xb0] sm:$0xff] }
 0x2f9   : > { %3181 = vst.msk [vmem:[#allocation3 + $0x9] sm:$0xff] %vm310_vm4, %v3173_v28  ;;  %v3136_v10 = vadd.f32 %v3105_v59, %v2980_v61  ;;  %v2983_v29 = vadd.f32 %v5902_v30, %v2827_v12  ;;  %v2959_v14 = vpop.f32.mrf.mxu0  ;;  %v3115_v6 = vpop.f32.mrf.mxu1  ;;  %v5435_v61 = vld [vmem:[%s8110_s4 + $0x80] sm:$0xff] }
 0x2fa   : > { %v3172_v16 = vsel %vm3156_vm6, %v3148_v44, %v3164_v45  ;;  %vm3159_vm7 = vcmp.gt.f32.partialorder %v3151_v57, 0.0  ;;  %v3167_v62 = vmul.f32 0.2, %v3151_v57  ;;  %v2982_v39 = vadd.f32 %v2959_v14, %v2826_v43  ;;  %v5437_v44 = vld [vmem:[%s8110_s4 + $0x90] sm:$0xff]  ;;  %v5436_v43 = vld [vmem:[%s8110_s4 + $0x88] sm:$0xff]  ;;  %v5441_v30 = vld [vmem:[%s8110_s4 + $0xa0] sm:$0xff] }
 0x2fb   : > { %3180 = vst.msk [vmem:[#allocation3 + $0x1] sm:$0xff] %vm310_vm4, %v3172_v16  ;;  %v3150_v38 = vadd.f32 %v7460_v19, %v3136_v10  ;;  %v3139_v58 = vadd.f32 %v5918_v31, %v2983_v29  ;;  %v5905_v37 = vpop.f32.mrf.mxu0  ;;  %v5921_v63 = vpop.f32.mrf.mxu1  ;;  %v5455_v45 = vld [vmem:[%s8112_s6 + $0x78] sm:$0xff]  ;;  %v3759_v10 = vld [vmem:[%s8112_s6 + $0x30] sm:$0xff]  ;;  %v5453_v29 = vld [vmem:[%s8112_s6 + $0x68] sm:$0xff] }
 0x2fc   : > { %v3175_v7 = vsel %vm3159_vm7, %v3151_v57, %v3167_v62  ;;  %v3138_v17 = vadd.f32 %v3115_v6, %v2982_v39  ;;  %v2985_v35 = vadd.f32 %v5905_v37, %v2829_v56  ;;  %v3760_v57 = vld [vmem:[%s8112_s6 + $0x38] sm:$0xff]  ;;  %v5454_v56 = vld [vmem:[%s8112_s6 + $0x70] sm:$0xff]  ;;  %v3758_v14 = vld [vmem:[%s8112_s6 + $0x28] sm:$0xff] }
 0x2fd   : > { %3183 = vst.msk [vmem:[#allocation3 + $0x19] sm:$0xff] %vm310_vm4, %v3175_v7  ;;  %vm3158_vm8 = vcmp.gt.f32.partialorder %v3150_v38, 0.0  ;;  %v3166_v41 = vmul.f32 0.2, %v3150_v38  ;;  %v3153_v9 = vadd.f32 %v7460_v19, %v3139_v58  ;;  %v2969_v8 = vpop.f32.mrf.mxu0  ;;  %v3125_v0 = vpop.f32.mrf.mxu1  ;;  %v5452_v6 = vld [vmem:[%s8112_s6 + $0x60] sm:$0xff]  ;;  %v5451_v62 = vld [vmem:[%s8112_s6 + $0x58] sm:$0xff] }
 0x2fe   : > { %v3152_v2 = vadd.f32 %v7460_v19, %v3138_v17  ;;  %v3141_v20 = vadd.f32 %v5921_v63, %v2985_v35  ;;  %v2984_v36 = vadd.f32 %v2969_v8, %v2828_v1  ;;  %v3757_v16 = vld [vmem:[%s8112_s6 + $0x20] sm:$0xff]  ;;  %v3756_v39 = vld [vmem:[%s8112_s6 + $0x18] sm:$0xff]  ;;  %v3755_v58 = vld [vmem:[%s8112_s6 + $0x10] sm:$0xff] }
 0x2ff   : > { %v3174_v26 = vsel %vm3158_vm8, %v3150_v38, %v3166_v41  ;;  %vm3161_vm9 = vcmp.gt.f32.partialorder %v3153_v9, 0.0  ;;  %v3169_v24 = vmul.f32 0.2, %v3153_v9  ;;  %v5450_v38 = vld [vmem:[%s8112_s6 + $0x50] sm:$0xff]  ;;  %v5449_v37 = vld [vmem:[%s8112_s6 + $0x48] sm:$0xff]  ;;  %v5448_v1 = vld [vmem:[%s8112_s6 + $0x40] sm:$0xff] }
 0x300   : > { %3182 = vst.msk [vmem:[#allocation3 + $0x11] sm:$0xff] %vm310_vm4, %v3174_v26  ;;  %vm3160_vm10 = vcmp.gt.f32.partialorder %v3152_v2, 0.0  ;;  %v3168_v46 = vmul.f32 0.2, %v3152_v2  ;;  %v3155_v23 = vadd.f32 %v7460_v19, %v3141_v20  ;;  %v3140_v5 = vadd.f32 %v3125_v0, %v2984_v36  ;;  %v3754_v63 = vld [vmem:[%s8112_s6 + $0x8] sm:$0xff]  ;;  %v3753_v7 = vld [vmem:[%s8112_s6] sm:$0xff] }
 0x301   : > { %v3177_v51 = vsel %vm3161_vm9, %v3153_v9, %v3169_v24 }
 0x302   : > { %3185 = vst.msk [vmem:[#allocation3 + $0x29] sm:$0xff] %vm310_vm4, %v3177_v51  ;;  %v3176_v54 = vsel %vm3160_vm10, %v3152_v2, %v3168_v46  ;;  %vm3163_vm11 = vcmp.gt.f32.partialorder %v3155_v23, 0.0  ;;  %v3171_v34 = vmul.f32 0.2, %v3155_v23  ;;  %v3154_v48 = vadd.f32 %v7460_v19, %v3140_v5  ;;  %v5425_v19 = vld [vmem:[%s8110_s4 + $0x50] sm:$0xff] }
 0x303   : > { %3184 = vst.msk [vmem:[#allocation3 + $0x21] sm:$0xff] %vm310_vm4, %v3176_v54 }
 0x304   : > { %v3179_v18 = vsel %vm3163_vm11, %v3155_v23, %v3171_v34  ;;  %vm3162_vm12 = vcmp.gt.f32.partialorder %v3154_v48, 0.0  ;;  %v3170_v32 = vmul.f32 0.2, %v3154_v48 }
 0x305   : > { %3187 = vst.msk [vmem:[#allocation3 + $0x39] sm:$0xff] %vm310_vm4, %v3179_v18 }
 0x306   : > { %v3178_v55 = vsel %vm3162_vm12, %v3154_v48, %v3170_v32  ;;  %v5447_v48 = vld [vmem:[%s8111_s5] ss:$0 sm:$0xff] }
 0x307   : > { %3186 = vst.msk [vmem:[#allocation3 + $0x31] sm:$0xff] %vm310_vm4, %v3178_v55  ;;  %v3197_v52 = vld [vmem:[#allocation3 + $0x1] ss:$4 sm:$0xff]  ;;  %v3189_v13 = vld [vmem:[#allocation3] ss:$4 sm:$0xff] }
 0x308   : > { %5930 = vmatprep.mubr.msk.f32.mxu0 %vm310_vm4, %v3197_v52  ;;  %5941 = vmatprep.mubr.msk.f32.mxu1 %vm310_vm4, %v3189_v13  ;;  %v3368_v40 = vld [vmem:[#allocation3 + $0x2] ss:$4 sm:$0xff]  ;;  %v3460_v47 = vld [vmem:[#allocation3 + $0x3] ss:$4 sm:$0xff]  ;;  %v3552_v33 = vld [vmem:[#allocation3 + $0x4] ss:$4 sm:$0xff] }
 0x30a   : > { %v3644_v12 = vld [vmem:[#allocation3 + $0x5] ss:$4 sm:$0xff] }
 0x30e   : > { %v3199_v22 = vld [vmem:[#allocation3 + $0x21] ss:$4 sm:$0xff]  ;;  %v3191_v21 = vld [vmem:[#allocation3 + $0x20] ss:$4 sm:$0xff]  ;;  %v3370_v27 = vld [vmem:[#allocation3 + $0x22] ss:$4 sm:$0xff] }
 0x30f   : > { %5931 = vmatmul.mubr.msk.f32.vlgmr.msra.gmra.mxu0 %vm310_vm4, %v3199_v22  ;;  %5942 = vmatmul.mubr.msk.f32.vlgmr.msra.gmra.mxu1 %vm310_vm4, %v3191_v21  ;;  %v3462_v59 = vld [vmem:[#allocation3 + $0x23] ss:$4 sm:$0xff]  ;;  %v3554_v31 = vld [vmem:[#allocation3 + $0x24] ss:$4 sm:$0xff]  ;;  %v3646_v28 = vld [vmem:[#allocation3 + $0x25] ss:$4 sm:$0xff] }
 0x310   : > { %5945 = vmatpush3.msra.mxu0 %v7448_v25  ;;  %5956 = vmatpush3.msra.mxu1 %v7453_v49  ;;  %v5423_v25 = vld [vmem:[%s8110_s4 + $0x40] sm:$0xff] }
 0x311   : > { %5946 = vmatprep.subr.mxu0 %v5425_v19  ;;  %5952 = vmatprep.mubr.msk.f32.mxu0 %vm310_vm4, %v3368_v40  ;;  %v5429_v49 = vld [vmem:[%s8110_s4 + $0x60] sm:$0xff] }
 0x312   : > { %5957 = vmatprep.subr.mxu1 %v5431_v60  ;;  %5963 = vmatprep.mubr.msk.f32.mxu1 %vm310_vm4, %v3460_v47 }
 0x313   : > { %5947 = vmatpush3.msra.mxu0 %v5425_v19  ;;  %5958 = vmatpush3.msra.mxu1 %v5431_v60 }
 0x314   : > { %5948 = vmatprep.subr.mxu0 %v5424_v53  ;;  %5959 = vmatprep.subr.mxu1 %v5430_v11 }
 0x315   : > { %5949 = vmatpush3.msra.mxu0 %v5424_v53  ;;  %5960 = vmatpush3.msra.mxu1 %v5430_v11  ;;  %v5465_v53 = vld [vmem:[%s8112_s6 + $0xb8] sm:$0xff] }
 0x316   : > { %5950 = vmatprep.subr.mxu0 %v5423_v25  ;;  %5961 = vmatprep.subr.mxu1 %v5429_v49  ;;  %v5474_v11 = vld [vmem:[%s8112_s6 + $0xf8] sm:$0xff] }
 0x317   : > { %5951 = vmatpush3.msra.mxu0 %v5423_v25  ;;  %5962 = vmatpush3.msra.mxu1 %v5429_v49 }
 0x318   : > { %5953 = vmatmul.mubr.msk.f32.vlgmr.msra.gmra.mxu0 %vm310_vm4, %v3370_v27  ;;  %5964 = vmatmul.mubr.msk.f32.vlgmr.msra.gmra.mxu1 %vm310_vm4, %v3462_v59  ;;  %v5463_v27 = vld [vmem:[%s8112_s6 + $0xa8] sm:$0xff] }
 0x319   : > { %5966 = vmatprep.subr.mxu0 %v5438_v50  ;;  %5977 = vmatprep.subr.mxu1 %v5444_v3  ;;  %v5472_v59 = vld [vmem:[%s8112_s6 + $0xe8] sm:$0xff] }
 0x31a   : > { %5967 = vmatpush3.msra.mxu0 %v5438_v50  ;;  %5974 = vmatprep.mubr.msk.f32.mxu0 %vm310_vm4, %v3552_v33  ;;  %v5464_v50 = vld [vmem:[%s8112_s6 + $0xb0] sm:$0xff]  ;;  %v5462_v33 = vld [vmem:[%s8112_s6 + $0xa0] sm:$0xff] }
 0x31b   : > { %5978 = vmatpush3.msra.mxu1 %v5444_v3  ;;  %5985 = vmatprep.mubr.msk.f32.mxu1 %vm310_vm4, %v3644_v12  ;;  %v5473_v3 = vld [vmem:[%s8112_s6 + $0xf0] sm:$0xff]  ;;  %v5470_v12 = vld [vmem:[%s8112_s6 + $0xd8] sm:$0xff] }
 0x31c   : > { %5968 = vmatprep.subr.mxu0 %v5437_v44  ;;  %5979 = vmatprep.subr.mxu1 %v5443_v15 }
 0x31d   : > { %5969 = vmatpush3.msra.mxu0 %v5437_v44  ;;  %5980 = vmatpush3.msra.mxu1 %v5443_v15  ;;  %v5471_v44 = vld [vmem:[%s8112_s6 + $0xe0] sm:$0xff]  ;;  %v5461_v15 = vld [vmem:[%s8112_s6 + $0x98] sm:$0xff] }
 0x31e   : > { %5970 = vmatprep.subr.mxu0 %v5436_v43  ;;  %5981 = vmatprep.subr.mxu1 %v5442_v4 }
 0x31f   : > { %5971 = vmatpush3.msra.mxu0 %v5436_v43  ;;  %5982 = vmatpush3.msra.mxu1 %v5442_v4  ;;  %v5460_v43 = vld [vmem:[%s8112_s6 + $0x90] sm:$0xff] }
 0x320   : > { %5972 = vmatprep.subr.mxu0 %v5435_v61  ;;  %5983 = vmatprep.subr.mxu1 %v5441_v30  ;;  %v5469_v4 = vld [vmem:[%s8112_s6 + $0xd0] sm:$0xff] }
 0x321   : > { %5973 = vmatpush3.msra.mxu0 %v5435_v61  ;;  %5984 = vmatpush3.msra.mxu1 %v5441_v30  ;;  %v5459_v61 = vld [vmem:[%s8112_s6 + $0x88] sm:$0xff] }
 0x322   : > { %5975 = vmatmul.mubr.msk.f32.vlgmr.msra.gmra.mxu0 %vm310_vm4, %v3554_v31  ;;  %5986 = vmatmul.mubr.msk.f32.vlgmr.msra.gmra.mxu1 %vm310_vm4, %v3646_v28  ;;  %v5468_v30 = vld [vmem:[%s8112_s6 + $0xc8] sm:$0xff]  ;;  %v5458_v31 = vld [vmem:[%s8112_s6 + $0x80] sm:$0xff] }
 0x323   : > { %5988 = vmatprep.subr.mxu0 %v8162_v42  ;;  %6007 = vmatprep.subr.mxu1 %v8162_v42  ;;  %v5467_v28 = vld [vmem:[%s8112_s6 + $0xc0] sm:$0xff] }
 0x324   : > { %5989 = vmatpush3.msra.mxu0 %v5455_v45  ;;  %6008 = vmatpush3.msra.mxu1 %v3760_v57  ;;  %v5483_v45 = vld [vmem:[%s8112_s6 + $0x138] sm:$0xff] }
 0x325   : > { %5990 = vmatprep.subr.mxu0 %v8162_v42  ;;  %6009 = vmatprep.subr.mxu1 %v8162_v42 }
 0x326   : > { %5991 = vmatpush3.msra.mxu0 %v5454_v56  ;;  %6010 = vmatpush3.msra.mxu1 %v3759_v10  ;;  %v5492_v10 = vld [vmem:[%s8112_s6 + $0x178] sm:$0xff] }
 0x327   : > { %5992 = vmatprep.subr.mxu0 %v8162_v42  ;;  %6011 = vmatprep.subr.mxu1 %v8162_v42 }
 0x328   : > { %5993 = vmatpush3.msra.mxu0 %v5453_v29  ;;  %6012 = vmatpush3.msra.mxu1 %v3758_v14  ;;  %v5482_v29 = vld [vmem:[%s8112_s6 + $0x130] sm:$0xff] }
 0x329   : > { %5994 = vmatprep.subr.mxu0 %v8162_v42  ;;  %6013 = vmatprep.subr.mxu1 %v8162_v42  ;;  %v5491_v14 = vld [vmem:[%s8112_s6 + $0x170] sm:$0xff] }
 0x32a   : > { %5995 = vmatpush3.msra.mxu0 %v5452_v6  ;;  %6014 = vmatpush3.msra.mxu1 %v3757_v16  ;;  %v5481_v6 = vld [vmem:[%s8112_s6 + $0x128] sm:$0xff] }
 0x32b   : > { %5996 = vmatprep.subr.mxu0 %v8162_v42  ;;  %6015 = vmatprep.subr.mxu1 %v8162_v42  ;;  %v5490_v16 = vld [vmem:[%s8112_s6 + $0x168] sm:$0xff] }
 0x32c   : > { %5997 = vmatpush3.msra.mxu0 %v5451_v62  ;;  %6016 = vmatpush3.msra.mxu1 %v3756_v39  ;;  %v5480_v62 = vld [vmem:[%s8112_s6 + $0x120] sm:$0xff] }
 0x32d   : > { %5998 = vmatprep.subr.mxu0 %v8162_v42  ;;  %6017 = vmatprep.subr.mxu1 %v8162_v42  ;;  %v5489_v39 = vld [vmem:[%s8112_s6 + $0x160] sm:$0xff] }
 0x32e   : > { %5999 = vmatpush3.msra.mxu0 %v5450_v38  ;;  %6018 = vmatpush3.msra.mxu1 %v3755_v58  ;;  %v5479_v38 = vld [vmem:[%s8112_s6 + $0x118] sm:$0xff] }
 0x32f   : > { %6000 = vmatprep.subr.mxu0 %v8162_v42  ;;  %6019 = vmatprep.subr.mxu1 %v8162_v42  ;;  %v5488_v58 = vld [vmem:[%s8112_s6 + $0x158] sm:$0xff] }
 0x330   : > { %6001 = vmatpush3.msra.mxu0 %v5449_v37  ;;  %6020 = vmatpush3.msra.mxu1 %v3754_v63  ;;  %v5478_v37 = vld [vmem:[%s8112_s6 + $0x110] sm:$0xff] }
 0x331   : > { %6002 = vmatprep.subr.mxu0 %v8162_v42  ;;  %6021 = vmatprep.subr.mxu1 %v8162_v42  ;;  %v5487_v63 = vld [vmem:[%s8112_s6 + $0x150] sm:$0xff] }
 0x332   : > { %6003 = vmatpush3.msra.mxu0 %v5448_v1  ;;  %6022 = vmatpush3.msra.mxu1 %v3753_v7  ;;  %v5477_v1 = vld [vmem:[%s8112_s6 + $0x108] sm:$0xff] }
 0x333   : > { %6004 = vmatprep.mubr.msk.f32.mxu0 %vm6324_vm13, %v8162_v42  ;;  %6023 = vmatprep.mubr.msk.f32.mxu1 %vm6324_vm13, %v8162_v42  ;;  %v5486_v7 = vld [vmem:[%s8112_s6 + $0x148] sm:$0xff] }
 0x334   : > { %6026 = vmatprep.subr.mxu0 %v8162_v42  ;;  %6045 = vmatprep.subr.mxu1 %v8162_v42 }
 0x3cf   : > { %v5932_v17 = vpop.f32.mrf.mxu0  ;;  %v5943_v35 = vpop.f32.mrf.mxu1 }
 0x3d0   : > { %v3364_v2 = vadd.f32 %v5943_v35, %v5932_v17  ;;  %v5476_v17 = vld [vmem:[%s8112_s6 + $0x100] sm:$0xff] }
 0x3d1   : > { %v3277_v41 = vpop.f32.mrf.mxu0  ;;  %v3358_v8 = vpop.f32.mrf.mxu1  ;;  %v5485_v35 = vld [vmem:[%s8112_s6 + $0x140] sm:$0xff] }
 0x3d2   : > { %v3359_v26 = vadd.f32 %v3358_v8, %v3277_v41  ;;  %v5501_v41 = vld [vmem:[%s8112_s6 + $0x1b8] sm:$0xff] }
 0x3d8   : > { %v5954_v9 = vpop.f32.mrf.mxu0  ;;  %v5965_v20 = vpop.f32.mrf.mxu1 }
 0x3d9   : > { %v3458_v24 = vadd.f32 %v5954_v9, %v3364_v2  ;;  %v5510_v2 = vld [vmem:[%s8112_s6 + $0x1f8] sm:$0xff] }
 0x3da   : > { %v3448_v36 = vpop.f32.mrf.mxu0  ;;  %v3540_v46 = vpop.f32.mrf.mxu1 }
 0x3db   : > { %v3457_v0 = vadd.f32 %v3448_v36, %v3359_v26  ;;  %v3550_v23 = vadd.f32 %v5965_v20, %v3458_v24  ;;  %v5500_v20 = vld [vmem:[%s8112_s6 + $0x1b0] sm:$0xff]  ;;  %v5499_v26 = vld [vmem:[%s8112_s6 + $0x1a8] sm:$0xff] }
 0x3dc   : > { %v5509_v36 = vld [vmem:[%s8112_s6 + $0x1f0] sm:$0xff]  ;;  %v5508_v24 = vld [vmem:[%s8112_s6 + $0x1e8] sm:$0xff] }
 0x3dd   : > { %v3549_v54 = vadd.f32 %v3540_v46, %v3457_v0  ;;  %v5498_v0 = vld [vmem:[%s8112_s6 + $0x1a0] sm:$0xff] }
 0x3de   : > { %v5507_v46 = vld [vmem:[%s8112_s6 + $0x1e0] sm:$0xff] }
 0x3e2   : > { %v5976_v5 = vpop.f32.mrf.mxu0  ;;  %v5987_v51 = vpop.f32.mrf.mxu1 }
 0x3e3   : > { %v3642_v34 = vadd.f32 %v5976_v5, %v3550_v23  ;;  %v5497_v23 = vld [vmem:[%s8112_s6 + $0x198] sm:$0xff] }
 0x3e4   : > { %v3632_v18 = vpop.f32.mrf.mxu0  ;;  %v3724_v52 = vpop.f32.mrf.mxu1  ;;  %v5506_v5 = vld [vmem:[%s8112_s6 + $0x1d8] sm:$0xff] }
 0x3e5   : > { %v3734_v32 = vadd.f32 %v5987_v51, %v3642_v34  ;;  %v3641_v55 = vadd.f32 %v3632_v18, %v3549_v54  ;;  %v5496_v51 = vld [vmem:[%s8112_s6 + $0x190] sm:$0xff]  ;;  %v5495_v34 = vld [vmem:[%s8112_s6 + $0x188] sm:$0xff]  ;;  %v5494_v18 = vld [vmem:[%s8112_s6 + $0x180] sm:$0xff] }
 0x3e6   : > { %v5505_v54 = vld [vmem:[%s8112_s6 + $0x1d0] sm:$0xff] }
 0x3e7   : > { %v3742_v13 = vadd.f32 %v5447_v48, %v3734_v32  ;;  %v3733_v22 = vadd.f32 %v3724_v52, %v3641_v55  ;;  %v5503_v32 = vld [vmem:[%s8112_s6 + $0x1c0] sm:$0xff]  ;;  %v5519_v55 = vld [vmem:[%s8112_s6 + $0x238] sm:$0xff] }
 0x3e9   : > { %vm3744_vm14 = vcmp.gt.f32.partialorder %v3742_v13, 0.0  ;;  %v3746_v21 = vmul.f32 0.2, %v3742_v13  ;;  %v3741_v19 = vadd.f32 %v5447_v48, %v3733_v22  ;;  %v5504_v48 = vld [vmem:[%s8112_s6 + $0x1c8] sm:$0xff]  ;;  %v5528_v22 = vld [vmem:[%s8112_s6 + $0x278] sm:$0xff] }
 0x3eb   : > { %v3748_v60 = vsel %vm3744_vm14, %v3742_v13, %v3746_v21  ;;  %vm3743_vm1 = vcmp.gt.f32.partialorder %v3741_v19, 0.0  ;;  %v3745_v40 = vmul.f32 0.2, %v3741_v19  ;;  %v5518_v21 = vld [vmem:[%s8112_s6 + $0x230] sm:$0xff] }
 0x3ec   : > { %3751 = vst.msk [vmem:[#allocation4 + $0x8] sm:$0xff] %vm3749_vm15, %v3748_v60  ;;  %v5517_v60 = vld [vmem:[%s8112_s6 + $0x228] sm:$0xff] }
 0x3ed   : > { %v3747_v47 = vsel %vm3743_vm1, %v3741_v19, %v3745_v40  ;;  %v5527_v19 = vld [vmem:[%s8112_s6 + $0x270] sm:$0xff]  ;;  %v5526_v40 = vld [vmem:[%s8112_s6 + $0x268] sm:$0xff] }
 0x3ee   : > { %3750 = vst.msk [vmem:[#allocation4] sm:$0xff] %vm3749_vm15, %v3747_v47  ;;  %v5516_v47 = vld [vmem:[%s8112_s6 + $0x220] sm:$0xff] }
 0x3f5   : > { %v3761_v25 = vld [vmem:[#allocation4 + $0x1] sm:$0x1]  ;;  %v3752_v49 = vld [vmem:[#allocation4] sm:$0x1]  ;;  %v3917_v57 = vld [vmem:[#allocation4 + $0x2] sm:$0x1] }
 0x3f6   : > { %6005 = vmatmul.mubr.msk.f32.vlgmr.msra.gmra.mxu0 %vm3749_vm15, %v3761_v25  ;;  %6024 = vmatmul.mubr.msk.f32.vlgmr.msra.gmra.mxu1 %vm3749_vm15, %v3752_v49  ;;  %v4001_v56 = vld [vmem:[#allocation4 + $0x3] sm:$0x1]  ;;  %v4085_v9 = vld [vmem:[#allocation4 + $0x4] sm:$0x1]  ;;  %v4169_v8 = vld [vmem:[#allocation4 + $0x5] sm:$0x1] }
 0x3f7   : > { %6027 = vmatpush3.msra.mxu0 %v5465_v53  ;;  %6046 = vmatpush3.msra.mxu1 %v5474_v11  ;;  %v4253_v52 = vld [vmem:[#allocation4 + $0x6] sm:$0x1]  ;;  %v4337_v13 = vld [vmem:[#allocation4 + $0x7] sm:$0x1]  ;;  %v5525_v53 = vld [vmem:[%s8112_s6 + $0x260] sm:$0xff] }
 0x3f8   : > { %6028 = vmatprep.subr.mxu0 %v8162_v42  ;;  %6047 = vmatprep.subr.mxu1 %v8162_v42  ;;  %v5515_v11 = vld [vmem:[%s8112_s6 + $0x218] sm:$0xff]  ;;  %v5514_v49 = vld [vmem:[%s8112_s6 + $0x210] sm:$0xff] }
 0x3f9   : > { %6029 = vmatpush3.msra.mxu0 %v5464_v50  ;;  %6048 = vmatpush3.msra.mxu1 %v5473_v3  ;;  %v5524_v25 = vld [vmem:[%s8112_s6 + $0x258] sm:$0xff]  ;;  %v5523_v50 = vld [vmem:[%s8112_s6 + $0x250] sm:$0xff]  ;;  %v5513_v3 = vld [vmem:[%s8112_s6 + $0x208] sm:$0xff] }
 0x3fa   : > { %6030 = vmatprep.subr.mxu0 %v8162_v42  ;;  %6049 = vmatprep.subr.mxu1 %v8162_v42 }
 0x3fb   : > { %6031 = vmatpush3.msra.mxu0 %v5463_v27  ;;  %6050 = vmatpush3.msra.mxu1 %v5472_v59  ;;  %v5522_v27 = vld [vmem:[%s8112_s6 + $0x248] sm:$0xff]  ;;  %v5512_v59 = vld [vmem:[%s8112_s6 + $0x200] sm:$0xff] }
 0x3fc   : > { %6032 = vmatprep.subr.mxu0 %v8162_v42  ;;  %6051 = vmatprep.subr.mxu1 %v8162_v42 }
 0x3fd   : > { %6033 = vmatpush3.msra.mxu0 %v5462_v33  ;;  %6052 = vmatpush3.msra.mxu1 %v5471_v44  ;;  %v5521_v33 = vld [vmem:[%s8112_s6 + $0x240] sm:$0xff]  ;;  %v5537_v44 = vld [vmem:[%s8112_s6 + $0x2b8] sm:$0xff] }
 0x3fe   : > { %6034 = vmatprep.subr.mxu0 %v8162_v42  ;;  %6053 = vmatprep.subr.mxu1 %v8162_v42 }
 0x3ff   : > { %6035 = vmatpush3.msra.mxu0 %v5461_v15  ;;  %6054 = vmatpush3.msra.mxu1 %v5470_v12  ;;  %v4421_v15 = vld [vmem:[#allocation4 + $0x8] sm:$0x1]  ;;  %v4505_v12 = vld [vmem:[#allocation4 + $0x9] sm:$0x1] }
 0x400   : > { %6036 = vmatprep.subr.mxu0 %v8162_v42  ;;  %6055 = vmatprep.subr.mxu1 %v8162_v42 }
 0x401   : > { %6037 = vmatpush3.msra.mxu0 %v5460_v43  ;;  %6056 = vmatpush3.msra.mxu1 %v5469_v4  ;;  %v5546_v43 = vld [vmem:[%s8112_s6 + $0x2f8] sm:$0xff]  ;;  %v5536_v4 = vld [vmem:[%s8112_s6 + $0x2b0] sm:$0xff] }
 0x402   : > { %6038 = vmatprep.subr.mxu0 %v8162_v42  ;;  %6057 = vmatprep.subr.mxu1 %v8162_v42 }
 0x403   : > { %6039 = vmatpush3.msra.mxu0 %v5459_v61  ;;  %6058 = vmatpush3.msra.mxu1 %v5468_v30  ;;  %v5545_v61 = vld [vmem:[%s8112_s6 + $0x2f0] sm:$0xff]  ;;  %v5535_v30 = vld [vmem:[%s8112_s6 + $0x2a8] sm:$0xff] }
 0x404   : > { %6040 = vmatprep.subr.mxu0 %v8162_v42  ;;  %6059 = vmatprep.subr.mxu1 %v8162_v42 }
 0x405   : > { %6041 = vmatpush3.msra.mxu0 %v5458_v31  ;;  %6042 = vmatprep.mubr.msk.f32.mxu0 %vm6324_vm13, %v8162_v42  ;;  %v5544_v31 = vld [vmem:[%s8112_s6 + $0x2e8] sm:$0xff] }
 0x406   : > { %6060 = vmatpush3.msra.mxu1 %v5467_v28  ;;  %6061 = vmatprep.mubr.msk.f32.mxu1 %vm6324_vm13, %v8162_v42  ;;  %v5534_v28 = vld [vmem:[%s8112_s6 + $0x2a0] sm:$0xff] }
 0x407   : > { %6043 = vmatmul.mubr.msk.f32.vlgmr.msra.gmra.mxu0 %vm3749_vm15, %v3917_v57  ;;  %6062 = vmatmul.mubr.msk.f32.vlgmr.msra.gmra.mxu1 %vm3749_vm15, %v4001_v56  ;;  %v5533_v57 = vld [vmem:[%s8112_s6 + $0x298] sm:$0xff] }
 0x408   : > { %6064 = vmatprep.subr.mxu0 %v8162_v42  ;;  %6083 = vmatprep.subr.mxu1 %v8162_v42  ;;  %v5542_v56 = vld [vmem:[%s8112_s6 + $0x2d8] sm:$0xff] }
 0x409   : > { %6065 = vmatpush3.msra.mxu0 %v5483_v45  ;;  %6084 = vmatpush3.msra.mxu1 %v5492_v10  ;;  %v5543_v45 = vld [vmem:[%s8112_s6 + $0x2e0] sm:$0xff]  ;;  %v5532_v10 = vld [vmem:[%s8112_s6 + $0x290] sm:$0xff] }
 0x40a   : > { %6066 = vmatprep.subr.mxu0 %v8162_v42  ;;  %6085 = vmatprep.subr.mxu1 %v8162_v42 }
 0x40b   : > { %6067 = vmatpush3.msra.mxu0 %v5482_v29  ;;  %6086 = vmatpush3.msra.mxu1 %v5491_v14  ;;  %v5541_v29 = vld [vmem:[%s8112_s6 + $0x2d0] sm:$0xff]  ;;  %v5531_v14 = vld [vmem:[%s8112_s6 + $0x288] sm:$0xff] }
 0x40c   : > { %6068 = vmatprep.subr.mxu0 %v8162_v42  ;;  %6087 = vmatprep.subr.mxu1 %v8162_v42 }
 0x40d   : > { %6069 = vmatpush3.msra.mxu0 %v5481_v6  ;;  %6088 = vmatpush3.msra.mxu1 %v5490_v16  ;;  %v5540_v6 = vld [vmem:[%s8112_s6 + $0x2c8] sm:$0xff]  ;;  %v5530_v16 = vld [vmem:[%s8112_s6 + $0x280] sm:$0xff] }
 0x40e   : > { %6070 = vmatprep.subr.mxu0 %v8162_v42  ;;  %6089 = vmatprep.subr.mxu1 %v8162_v42 }
 0x40f   : > { %6071 = vmatpush3.msra.mxu0 %v5480_v62  ;;  %6090 = vmatpush3.msra.mxu1 %v5489_v39  ;;  %v5539_v62 = vld [vmem:[%s8112_s6 + $0x2c0] sm:$0xff]  ;;  %v5555_v39 = vld [vmem:[%s8112_s6 + $0x338] sm:$0xff] }
 0x410   : > { %6072 = vmatprep.subr.mxu0 %v8162_v42  ;;  %6091 = vmatprep.subr.mxu1 %v8162_v42 }
 0x411   : > { %6073 = vmatpush3.msra.mxu0 %v5479_v38  ;;  %6092 = vmatpush3.msra.mxu1 %v5488_v58  ;;  %v4589_v38 = vld [vmem:[#allocation4 + $0xa] sm:$0x1]  ;;  %v4673_v58 = vld [vmem:[#allocation4 + $0xb] sm:$0x1] }
 0x412   : > { %6074 = vmatprep.subr.mxu0 %v8162_v42  ;;  %6093 = vmatprep.subr.mxu1 %v8162_v42 }
 0x413   : > { %6075 = vmatpush3.msra.mxu0 %v5478_v37  ;;  %6094 = vmatpush3.msra.mxu1 %v5487_v63  ;;  %v5564_v37 = vld [vmem:[%s8112_s6 + $0x378] sm:$0xff]  ;;  %v5554_v63 = vld [vmem:[%s8112_s6 + $0x330] sm:$0xff] }
 0x414   : > { %6076 = vmatprep.subr.mxu0 %v8162_v42  ;;  %6095 = vmatprep.subr.mxu1 %v8162_v42 }
 0x415   : > { %6077 = vmatpush3.msra.mxu0 %v5477_v1  ;;  %6096 = vmatpush3.msra.mxu1 %v5486_v7  ;;  %v5563_v1 = vld [vmem:[%s8112_s6 + $0x370] sm:$0xff]  ;;  %v5553_v7 = vld [vmem:[%s8112_s6 + $0x328] sm:$0xff] }
 0x416   : > { %6078 = vmatprep.subr.mxu0 %v8162_v42  ;;  %6097 = vmatprep.subr.mxu1 %v8162_v42 }
 0x417   : > { %6079 = vmatpush3.msra.mxu0 %v5476_v17  ;;  %6080 = vmatprep.mubr.msk.f32.mxu0 %vm6324_vm13, %v8162_v42  ;;  %v5562_v17 = vld [vmem:[%s8112_s6 + $0x368] sm:$0xff] }
 0x418   : > { %6098 = vmatpush3.msra.mxu1 %v5485_v35  ;;  %6099 = vmatprep.mubr.msk.f32.mxu1 %vm6324_vm13, %v8162_v42  ;;  %v5552_v35 = vld [vmem:[%s8112_s6 + $0x320] sm:$0xff] }
 0x419   : > { %6081 = vmatmul.mubr.msk.f32.vlgmr.msra.gmra.mxu0 %vm3749_vm15, %v4085_v9  ;;  %6100 = vmatmul.mubr.msk.f32.vlgmr.msra.gmra.mxu1 %vm3749_vm15, %v4169_v8  ;;  %v5551_v9 = vld [vmem:[%s8112_s6 + $0x318] sm:$0xff] }
 0x41a   : > { %6102 = vmatprep.subr.mxu0 %v8162_v42  ;;  %6121 = vmatprep.subr.mxu1 %v8162_v42  ;;  %v5560_v8 = vld [vmem:[%s8112_s6 + $0x358] sm:$0xff] }
 0x41b   : > { %6103 = vmatpush3.msra.mxu0 %v5501_v41  ;;  %6122 = vmatpush3.msra.mxu1 %v5510_v2  ;;  %v5561_v41 = vld [vmem:[%s8112_s6 + $0x360] sm:$0xff]  ;;  %v5550_v2 = vld [vmem:[%s8112_s6 + $0x310] sm:$0xff] }
 0x41c   : > { %6104 = vmatprep.subr.mxu0 %v8162_v42  ;;  %6123 = vmatprep.subr.mxu1 %v8162_v42 }
 0x41d   : > { %6105 = vmatpush3.msra.mxu0 %v5500_v20  ;;  %6124 = vmatpush3.msra.mxu1 %v5509_v36  ;;  %v5559_v20 = vld [vmem:[%s8112_s6 + $0x350] sm:$0xff]  ;;  %v5549_v36 = vld [vmem:[%s8112_s6 + $0x308] sm:$0xff] }
 0x41e   : > { %6106 = vmatprep.subr.mxu0 %v8162_v42  ;;  %6125 = vmatprep.subr.mxu1 %v8162_v42 }
 0x41f   : > { %6107 = vmatpush3.msra.mxu0 %v5499_v26  ;;  %6126 = vmatpush3.msra.mxu1 %v5508_v24  ;;  %v5558_v26 = vld [vmem:[%s8112_s6 + $0x348] sm:$0xff]  ;;  %v5548_v24 = vld [vmem:[%s8112_s6 + $0x300] sm:$0xff] }
 0x420   : > { %6108 = vmatprep.subr.mxu0 %v8162_v42  ;;  %6127 = vmatprep.subr.mxu1 %v8162_v42 }
 0x421   : > { %6109 = vmatpush3.msra.mxu0 %v5498_v0  ;;  %6128 = vmatpush3.msra.mxu1 %v5507_v46  ;;  %v5557_v0 = vld [vmem:[%s8112_s6 + $0x340] sm:$0xff]  ;;  %v5573_v46 = vld [vmem:[%s8112_s6 + $0x3b8] sm:$0xff] }
 0x422   : > { %6110 = vmatprep.subr.mxu0 %v8162_v42  ;;  %6129 = vmatprep.subr.mxu1 %v8162_v42 }
 0x423   : > { %6111 = vmatpush3.msra.mxu0 %v5497_v23  ;;  %6130 = vmatpush3.msra.mxu1 %v5506_v5  ;;  %v4757_v23 = vld [vmem:[#allocation4 + $0xc] sm:$0x1]  ;;  %v4841_v5 = vld [vmem:[#allocation4 + $0xd] sm:$0x1] }
 0x424   : > { %6112 = vmatprep.subr.mxu0 %v8162_v42  ;;  %6131 = vmatprep.subr.mxu1 %v8162_v42 }
 0x425   : > { %6113 = vmatpush3.msra.mxu0 %v5496_v51  ;;  %6132 = vmatpush3.msra.mxu1 %v5505_v54  ;;  %v5582_v51 = vld [vmem:[%s8112_s6 + $0x3f8] sm:$0xff]  ;;  %v5572_v54 = vld [vmem:[%s8112_s6 + $0x3b0] sm:$0xff] }
 0x426   : > { %6114 = vmatprep.subr.mxu0 %v8162_v42  ;;  %6133 = vmatprep.subr.mxu1 %v8162_v42 }
 0x427   : > { %6115 = vmatpush3.msra.mxu0 %v5495_v34  ;;  %6134 = vmatpush3.msra.mxu1 %v5504_v48  ;;  %v5581_v34 = vld [vmem:[%s8112_s6 + $0x3f0] sm:$0xff]  ;;  %v5571_v48 = vld [vmem:[%s8112_s6 + $0x3a8] sm:$0xff] }
 0x428   : > { %6116 = vmatprep.subr.mxu0 %v8162_v42  ;;  %6135 = vmatprep.subr.mxu1 %v8162_v42 }
 0x429   : > { %6117 = vmatpush3.msra.mxu0 %v5494_v18  ;;  %6118 = vmatprep.mubr.msk.f32.mxu0 %vm6324_vm13, %v8162_v42  ;;  %v5580_v18 = vld [vmem:[%s8112_s6 + $0x3e8] sm:$0xff] }
 0x42a   : > { %6136 = vmatpush3.msra.mxu1 %v5503_v32  ;;  %6137 = vmatprep.mubr.msk.f32.mxu1 %vm6324_vm13, %v8162_v42  ;;  %v5570_v32 = vld [vmem:[%s8112_s6 + $0x3a0] sm:$0xff] }
 0x42b   : > { %6119 = vmatmul.mubr.msk.f32.vlgmr.msra.gmra.mxu0 %vm3749_vm15, %v4253_v52  ;;  %6138 = vmatmul.mubr.msk.f32.vlgmr.msra.gmra.mxu1 %vm3749_vm15, %v4337_v13  ;;  %v5569_v52 = vld [vmem:[%s8112_s6 + $0x398] sm:$0xff] }
 0x42c   : > { %6140 = vmatprep.subr.mxu0 %v8162_v42  ;;  %6159 = vmatprep.subr.mxu1 %v8162_v42  ;;  %v5578_v13 = vld [vmem:[%s8112_s6 + $0x3d8] sm:$0xff] }
 0x42d   : > { %6141 = vmatpush3.msra.mxu0 %v5519_v55  ;;  %6160 = vmatpush3.msra.mxu1 %v5528_v22  ;;  %v5579_v55 = vld [vmem:[%s8112_s6 + $0x3e0] sm:$0xff]  ;;  %v5568_v22 = vld [vmem:[%s8112_s6 + $0x390] sm:$0xff] }
 0x42e   : > { %6142 = vmatprep.subr.mxu0 %v8162_v42  ;;  %6161 = vmatprep.subr.mxu1 %v8162_v42 }
 0x42f   : > { %6143 = vmatpush3.msra.mxu0 %v5518_v21  ;;  %6162 = vmatpush3.msra.mxu1 %v5527_v19  ;;  %v5577_v21 = vld [vmem:[%s8112_s6 + $0x3d0] sm:$0xff]  ;;  %v5567_v19 = vld [vmem:[%s8112_s6 + $0x388] sm:$0xff] }
 0x430   : > { %6144 = vmatprep.subr.mxu0 %v8162_v42  ;;  %6163 = vmatprep.subr.mxu1 %v8162_v42 }
 0x431   : > { %6145 = vmatpush3.msra.mxu0 %v5517_v60  ;;  %6164 = vmatpush3.msra.mxu1 %v5526_v40  ;;  %v5576_v60 = vld [vmem:[%s8112_s6 + $0x3c8] sm:$0xff]  ;;  %v5566_v40 = vld [vmem:[%s8112_s6 + $0x380] sm:$0xff] }
 0x432   : > { %6146 = vmatprep.subr.mxu0 %v8162_v42  ;;  %6165 = vmatprep.subr.mxu1 %v8162_v42 }
 0x433   : > { %6147 = vmatpush3.msra.mxu0 %v5516_v47  ;;  %6166 = vmatpush3.msra.mxu1 %v5525_v53  ;;  %v5575_v47 = vld [vmem:[%s8112_s6 + $0x3c0] sm:$0xff]  ;;  %v4925_v53 = vld [vmem:[#allocation4 + $0xe] sm:$0x1] }
 0x434   : > { %6148 = vmatprep.subr.mxu0 %v8162_v42  ;;  %6167 = vmatprep.subr.mxu1 %v8162_v42 }
 0x435   : > { %6149 = vmatpush3.msra.mxu0 %v5515_v11  ;;  %6168 = vmatpush3.msra.mxu1 %v5524_v25  ;;  %v5009_v11 = vld [vmem:[#allocation4 + $0xf] sm:$0x1] }
 0x436   : > { %6150 = vmatprep.subr.mxu0 %v8162_v42  ;;  %6169 = vmatprep.subr.mxu1 %v8162_v42 }
 0x437   : > { %6151 = vmatpush3.msra.mxu0 %v5514_v49  ;;  %6170 = vmatpush3.msra.mxu1 %v5523_v50 }
 0x438   : > { %6152 = vmatprep.subr.mxu0 %v8162_v42  ;;  %6171 = vmatprep.subr.mxu1 %v8162_v42 }
 0x439   : > { %6153 = vmatpush3.msra.mxu0 %v5513_v3  ;;  %6172 = vmatpush3.msra.mxu1 %v5522_v27 }
 0x43a   : > { %6154 = vmatprep.subr.mxu0 %v8162_v42  ;;  %6173 = vmatprep.subr.mxu1 %v8162_v42 }
 0x43b   : > { %6155 = vmatpush3.msra.mxu0 %v5512_v59  ;;  %6156 = vmatprep.mubr.msk.f32.mxu0 %vm6324_vm13, %v8162_v42 }
 0x43c   : > { %6174 = vmatpush3.msra.mxu1 %v5521_v33  ;;  %6175 = vmatprep.mubr.msk.f32.mxu1 %vm6324_vm13, %v8162_v42 }
 0x43d   : > { %6157 = vmatmul.mubr.msk.f32.vlgmr.msra.gmra.mxu0 %vm3749_vm15, %v4421_v15  ;;  %6176 = vmatmul.mubr.msk.f32.vlgmr.msra.gmra.mxu1 %vm3749_vm15, %v4505_v12 }
 0x43e   : > { %6178 = vmatprep.subr.mxu0 %v8162_v42  ;;  %6197 = vmatprep.subr.mxu1 %v8162_v42 }
 0x43f   : > { %6179 = vmatpush3.msra.mxu0 %v5537_v44  ;;  %6198 = vmatpush3.msra.mxu1 %v5546_v43 }
 0x440   : > { %6180 = vmatprep.subr.mxu0 %v8162_v42  ;;  %6199 = vmatprep.subr.mxu1 %v8162_v42 }
 0x441   : > { %6181 = vmatpush3.msra.mxu0 %v5536_v4  ;;  %6200 = vmatpush3.msra.mxu1 %v5545_v61 }
 0x442   : > { %6182 = vmatprep.subr.mxu0 %v8162_v42  ;;  %6201 = vmatprep.subr.mxu1 %v8162_v42 }
 0x443   : > { %6183 = vmatpush3.msra.mxu0 %v5535_v30  ;;  %6202 = vmatpush3.msra.mxu1 %v5544_v31 }
 0x444   : > { %6184 = vmatprep.subr.mxu0 %v8162_v42  ;;  %6203 = vmatprep.subr.mxu1 %v8162_v42 }
 0x445   : > { %6185 = vmatpush3.msra.mxu0 %v5534_v28  ;;  %6204 = vmatpush3.msra.mxu1 %v5543_v45 }
 0x446   : > { %6186 = vmatprep.subr.mxu0 %v8162_v42  ;;  %6205 = vmatprep.subr.mxu1 %v8162_v42 }
 0x447   : > { %6187 = vmatpush3.msra.mxu0 %v5533_v57  ;;  %6206 = vmatpush3.msra.mxu1 %v5542_v56 }
 0x448   : > { %6188 = vmatprep.subr.mxu0 %v8162_v42  ;;  %6207 = vmatprep.subr.mxu1 %v8162_v42 }
 0x449   : > { %6189 = vmatpush3.msra.mxu0 %v5532_v10  ;;  %6208 = vmatpush3.msra.mxu1 %v5541_v29 }
 0x44a   : > { %6190 = vmatprep.subr.mxu0 %v8162_v42  ;;  %6209 = vmatprep.subr.mxu1 %v8162_v42 }
 0x44b   : > { %6191 = vmatpush3.msra.mxu0 %v5531_v14  ;;  %6210 = vmatpush3.msra.mxu1 %v5540_v6 }
 0x44c   : > { %6192 = vmatprep.subr.mxu0 %v8162_v42  ;;  %6211 = vmatprep.subr.mxu1 %v8162_v42 }
 0x44d   : > { %6193 = vmatpush3.msra.mxu0 %v5530_v16  ;;  %6194 = vmatprep.mubr.msk.f32.mxu0 %vm6324_vm13, %v8162_v42 }
 0x44e   : > { %6212 = vmatpush3.msra.mxu1 %v5539_v62  ;;  %6213 = vmatprep.mubr.msk.f32.mxu1 %vm6324_vm13, %v8162_v42 }
 0x44f   : > { %6195 = vmatmul.mubr.msk.f32.vlgmr.msra.gmra.mxu0 %vm3749_vm15, %v4589_v38  ;;  %6214 = vmatmul.mubr.msk.f32.vlgmr.msra.gmra.mxu1 %vm3749_vm15, %v4673_v58 }
 0x450   : > { %6216 = vmatprep.subr.mxu0 %v8162_v42  ;;  %6235 = vmatprep.subr.mxu1 %v8162_v42 }
 0x451   : > { %6217 = vmatpush3.msra.mxu0 %v5555_v39  ;;  %6236 = vmatpush3.msra.mxu1 %v5564_v37 }
 0x452   : > { %6218 = vmatprep.subr.mxu0 %v8162_v42  ;;  %6237 = vmatprep.subr.mxu1 %v8162_v42 }
 0x453   : > { %6219 = vmatpush3.msra.mxu0 %v5554_v63  ;;  %6238 = vmatpush3.msra.mxu1 %v5563_v1 }
 0x454   : > { %6220 = vmatprep.subr.mxu0 %v8162_v42  ;;  %6239 = vmatprep.subr.mxu1 %v8162_v42 }
 0x455   : > { %6221 = vmatpush3.msra.mxu0 %v5553_v7  ;;  %6240 = vmatpush3.msra.mxu1 %v5562_v17 }
 0x456   : > { %6222 = vmatprep.subr.mxu0 %v8162_v42  ;;  %6241 = vmatprep.subr.mxu1 %v8162_v42 }
 0x457   : > { %6223 = vmatpush3.msra.mxu0 %v5552_v35  ;;  %6242 = vmatpush3.msra.mxu1 %v5561_v41 }
 0x458   : > { %6224 = vmatprep.subr.mxu0 %v8162_v42  ;;  %6243 = vmatprep.subr.mxu1 %v8162_v42 }
 0x459   : > { %6225 = vmatpush3.msra.mxu0 %v5551_v9  ;;  %6244 = vmatpush3.msra.mxu1 %v5560_v8 }
 0x45a   : > { %6226 = vmatprep.subr.mxu0 %v8162_v42  ;;  %6245 = vmatprep.subr.mxu1 %v8162_v42 }
 0x45b   : > { %6227 = vmatpush3.msra.mxu0 %v5550_v2  ;;  %6246 = vmatpush3.msra.mxu1 %v5559_v20 }
 0x45c   : > { %6228 = vmatprep.subr.mxu0 %v8162_v42  ;;  %6247 = vmatprep.subr.mxu1 %v8162_v42 }
 0x45d   : > { %6229 = vmatpush3.msra.mxu0 %v5549_v36  ;;  %6248 = vmatpush3.msra.mxu1 %v5558_v26 }
 0x45e   : > { %6230 = vmatprep.subr.mxu0 %v8162_v42  ;;  %6249 = vmatprep.subr.mxu1 %v8162_v42 }
 0x45f   : > { %6231 = vmatpush3.msra.mxu0 %v5548_v24  ;;  %6232 = vmatprep.mubr.msk.f32.mxu0 %vm6324_vm13, %v8162_v42 }
 0x460   : > { %6250 = vmatpush3.msra.mxu1 %v5557_v0  ;;  %6251 = vmatprep.mubr.msk.f32.mxu1 %vm6324_vm13, %v8162_v42 }
 0x461   : > { %6233 = vmatmul.mubr.msk.f32.vlgmr.msra.gmra.mxu0 %vm3749_vm15, %v4757_v23  ;;  %6252 = vmatmul.mubr.msk.f32.vlgmr.msra.gmra.mxu1 %vm3749_vm15, %v4841_v5 }
 0x462   : > { %6254 = vmatprep.subr.mxu0 %v8162_v42  ;;  %6273 = vmatprep.subr.mxu1 %v8162_v42 }
 0x463   : > { %6255 = vmatpush3.msra.mxu0 %v5573_v46  ;;  %6274 = vmatpush3.msra.mxu1 %v5582_v51 }
 0x464   : > { %6256 = vmatprep.subr.mxu0 %v8162_v42  ;;  %6275 = vmatprep.subr.mxu1 %v8162_v42 }
 0x465   : > { %6257 = vmatpush3.msra.mxu0 %v5572_v54  ;;  %6276 = vmatpush3.msra.mxu1 %v5581_v34 }
 0x466   : > { %6258 = vmatprep.subr.mxu0 %v8162_v42  ;;  %6277 = vmatprep.subr.mxu1 %v8162_v42 }
 0x467   : > { %6259 = vmatpush3.msra.mxu0 %v5571_v48  ;;  %6278 = vmatpush3.msra.mxu1 %v5580_v18 }
 0x468   : > { %6260 = vmatprep.subr.mxu0 %v8162_v42  ;;  %6279 = vmatprep.subr.mxu1 %v8162_v42 }
 0x469   : > { %6261 = vmatpush3.msra.mxu0 %v5570_v32  ;;  %6280 = vmatpush3.msra.mxu1 %v5579_v55 }
 0x46a   : > { %6262 = vmatprep.subr.mxu0 %v8162_v42  ;;  %6281 = vmatprep.subr.mxu1 %v8162_v42 }
 0x46b   : > { %6263 = vmatpush3.msra.mxu0 %v5569_v52  ;;  %6282 = vmatpush3.msra.mxu1 %v5578_v13 }
 0x46c   : > { %6264 = vmatprep.subr.mxu0 %v8162_v42  ;;  %6283 = vmatprep.subr.mxu1 %v8162_v42 }
 0x46d   : > { %6265 = vmatpush3.msra.mxu0 %v5568_v22  ;;  %6284 = vmatpush3.msra.mxu1 %v5577_v21 }
 0x46e   : > { %6266 = vmatprep.subr.mxu0 %v8162_v42  ;;  %6285 = vmatprep.subr.mxu1 %v8162_v42 }
 0x46f   : > { %6267 = vmatpush3.msra.mxu0 %v5567_v19  ;;  %6286 = vmatpush3.msra.mxu1 %v5576_v60 }
 0x470   : > { %6268 = vmatprep.subr.mxu0 %v8162_v42  ;;  %6287 = vmatprep.subr.mxu1 %v8162_v42 }
 0x471   : > { %6269 = vmatpush3.msra.mxu0 %v5566_v40  ;;  %6270 = vmatprep.mubr.msk.f32.mxu0 %vm6324_vm13, %v8162_v42 }
 0x472   : > { %6288 = vmatpush3.msra.mxu1 %v5575_v47  ;;  %6289 = vmatprep.mubr.msk.f32.mxu1 %vm6324_vm13, %v8162_v42 }
 0x473   : > { %6271 = vmatmul.mubr.msk.f32.vlgmr.msra.gmra.mxu0 %vm3749_vm15, %v4925_v53  ;;  %6290 = vmatmul.mubr.msk.f32.vlgmr.msra.gmra.mxu1 %vm3749_vm15, %v5009_v11 }
 0x4b6   : > { %v3840_v25 = vpop.f32.mrf.mxu0  ;;  %v3913_v49 = vpop.f32.mrf.mxu1 }
 0x4b7   : > { %v3914_v50 = vadd.f32 %v3913_v49, %v3840_v25 }
 0x4b8   : > { %v6006_v3 = vpop.f32.mrf.mxu0  ;;  %v6025_v27 = vpop.f32.mrf.mxu1 }
 0x4c7   : > { %v3996_v59 = vpop.f32.mrf.mxu0  ;;  %v4080_v33 = vpop.f32.mrf.mxu1 }
 0x4c8   : > { %v4000_v44 = vadd.f32 %v3996_v59, %v3914_v50 }
 0x4c9   : > { %v6044_v15 = vpop.f32.mrf.mxu0  ;;  %v6063_v12 = vpop.f32.mrf.mxu1 }
 0x4ca   : > { %v4084_v43 = vadd.f32 %v4080_v33, %v4000_v44 }
 0x4d9   : > { %v4164_v4 = vpop.f32.mrf.mxu0  ;;  %v4248_v61 = vpop.f32.mrf.mxu1 }
 0x4da   : > { %v4168_v42 = vadd.f32 %v4164_v4, %v4084_v43 }
 0x4db   : > { %v6082_v30 = vpop.f32.mrf.mxu0  ;;  %v6101_v31 = vpop.f32.mrf.mxu1 }
 0x4dc   : > { %v4252_v28 = vadd.f32 %v4248_v61, %v4168_v42 }
 0x4eb   : > { %v4332_v45 = vpop.f32.mrf.mxu0  ;;  %v4416_v57 = vpop.f32.mrf.mxu1 }
 0x4ec   : > { %v4336_v37 = vadd.f32 %v4332_v45, %v4252_v28 }
 0x4ed   : > { %v6120_v56 = vpop.f32.mrf.mxu0  ;;  %v6139_v10 = vpop.f32.mrf.mxu1 }
 0x4ee   : > { %v4420_v63 = vadd.f32 %v4416_v57, %v4336_v37 }
 0x4fd   : > { %v4500_v29 = vpop.f32.mrf.mxu0  ;;  %v4584_v14 = vpop.f32.mrf.mxu1 }
 0x4fe   : > { %v4504_v17 = vadd.f32 %v4500_v29, %v4420_v63 }
 0x4ff   : > { %v6158_v6 = vpop.f32.mrf.mxu0  ;;  %v6177_v16 = vpop.f32.mrf.mxu1 }
 0x500   : > { %v4588_v9 = vadd.f32 %v4584_v14, %v4504_v17 }
 0x50f   : > { %v4668_v62 = vpop.f32.mrf.mxu0  ;;  %v4752_v39 = vpop.f32.mrf.mxu1 }
 0x510   : > { %v4672_v8 = vadd.f32 %v4668_v62, %v4588_v9 }
 0x511   : > { %v6196_v38 = vpop.f32.mrf.mxu0  ;;  %v6215_v58 = vpop.f32.mrf.mxu1 }
 0x512   : > { %v4756_v2 = vadd.f32 %v4752_v39, %v4672_v8 }
 0x521   : > { %v4836_v1 = vpop.f32.mrf.mxu0  ;;  %v4920_v7 = vpop.f32.mrf.mxu1 }
 0x522   : > { %v4840_v20 = vadd.f32 %v4836_v1, %v4756_v2 }
 0x523   : > { %v6234_v35 = vpop.f32.mrf.mxu0  ;;  %v6253_v41 = vpop.f32.mrf.mxu1 }
 0x524   : > { %v4924_v36 = vadd.f32 %v4920_v7, %v4840_v20 }
 0x533   : > { %v5004_v26 = vpop.f32.mrf.mxu0  ;;  %v5088_v24 = vpop.f32.mrf.mxu1 }
 0x534   : > { %v5008_v0 = vadd.f32 %v5004_v26, %v4924_v36 }
 0x535   : > { %v6272_v46 = vpop.f32.mrf.mxu0  ;;  %v6291_v23 = vpop.f32.mrf.mxu1 }
 0x536   : > { %v5092_v5 = vadd.f32 %v5088_v24, %v5008_v0 }
 0x538   : > { %v5093_v51 = vsub.f32 0.0, %v5092_v5 }
 0x53a   : > { %v5094_v54 = vmul.f32 1.442695, %v5093_v51 }
 0x53c   : > { %6306 = vpow2.f32 %v5094_v54 }
 0x549   : > { %v6307_v34 = vpop.eup %6306 }
 0x54a   : > { %v5096_v48 = vadd.f32 1.0, %v6307_v34 }
 0x54c   : > { %6308 = vrcp.f32 %v5096_v48 }
 0x559   : > { %v6309_v18 = vpop.eup %6308 }
 0x55a   : > { %5100 = vst.msk [vmem:[%s274_s27] sm:$0x1] %vm5099_vm2, %v6309_v18 }
 0x55b PF: > { %s17_s24 = sadd.s32 1, %s6320_s24  }
 0x55c   : > { %p14_p4 = scmp.ge.s32.totalorder %s17_s24, 4  }
 0x55e   :  { %16 = sbr.rel (!%p14_p4) target bundleno = 1 (0x1), region = 357 }

</bundles_post_ra>
